<compile_context>
chip_gen: v7x
topology: tpu7x:2x2x1
jax: 0.10.0
libtpu: 0.0.40
codegen_flags: <defaults>
</compile_context>

<pallas_src>
import functools

import jax
import jax.numpy as jnp
import numpy as np
from jax.experimental import pallas as pl
from jax.experimental.pallas import tpu as pltpu


def _round_up(x, m):
    return (x + m - 1) // m * m


# ------------------------------- fused kernel -------------------------------

def _fused_kernel(zk_ref, xk_ref, x0_ref, y_ref,
                  wa0_ref, wa_ref, waT_ref, wa0T_ref, wr1_ref, wr2_ref,
                  br1_ref, br2_ref, mask_ref,
                  out_ref,
                  stk_ref,
                  *, Wp, Mpad, c1, c2, c3, lr, wd, eps):
    """One full deblur-DEQ iteration for one batch element, entirely in VMEM.

    Padded-flat layout: rows = channels, lanes = zero-padded (H+2)*(W+2) image
    (lane-padded to a multiple of 128).  Every tensor fed to a conv keeps a zero
    halo, so a 3x3 zero-padded 'same' conv is exactly: stack the 9 lane-rolled tap
    copies along sublanes (in VMEM scratch) and do one (Cout,9*Cin)@(9*Cin,Mpad)
    matmul.  Non-interior lanes are re-zeroed with `mask` wherever a result feeds
    another conv; the final output's halo garbage is sliced off host-side.
    """
    mask = mask_ref[...]                                    # (1, Mpad)

    def fill_taps(x, base, stride):
        """Write the 9 lane-rolled 3x3-tap copies of x into stk_ref at rows
        base + t*stride (tap-major layout, matching _stack_w's column order)."""
        nrows = x.shape[0]
        t = 0
        for dh in range(3):
            for dw in range(3):
                k = (dh - 1) * Wp + (dw - 1)                # flat source offset of tap
                # want s[:, p] = x[:, p + k] for interior p; roll wraps only hit
                # halo / pad lanes (masked or discarded downstream).
                shifted = x if k == 0 else pltpu.roll(x, (-k) % Mpad, axis=1)
                stk_ref[pl.ds(base + t * stride, nrows), :] = shifted
                t += 1

    def conv(x, w):
        """3x3 zero-padded 'same' conv as ONE matmul: (Cout,9*Cin)@(9*Cin,Mpad)."""
        nrows = x.shape[0]
        fill_taps(x, 0, nrows)
        return jnp.dot(w, stk_ref[pl.ds(0, 9 * nrows), :],
                       preferred_element_type=jnp.float32)

    zk, xk, x0, yv = zk_ref[0], xk_ref[0], x0_ref[0], y_ref[0]
    C = zk.shape[0]

    # ---- netA forward on Zk: yinit = A0(Zk); yk = yinit + convA(yinit) ------
    yinit = conv(zk, wa0_ref[...]) * mask
    a1 = conv(yinit, wa_ref[...]) * mask

    # ---- manual VJP of lossZ = mse(y,yk) + gamma*mse(yk,yinit) + lamb*mse(Xk,Zk)
    gyk = c1 * (yinit + a1 - yv) + c2 * a1                  # d lossZ / d yk
    gyinit = gyk + conv(gyk, waT_ref[...]) * mask - c2 * a1  # d lossZ / d yinit
    g = conv(gyinit, wa0T_ref[...]) * mask + c3 * (zk - xk)  # d lossZ / d Zk

    # ---- first AdamW step from fresh optimizer state ------------------------
    znew = zk * (1.0 - lr * wd) - (lr * g) * pl.reciprocal(jnp.abs(g) + eps,
                                                           approx=True)

    # ---- netR layer 1: conv3x3(concat([Xk-X0, Zk_new, y], C)) + b, ReLU -----
    # Channel concat is folded into the scratch row layout: tap-major, source-
    # middle, channel-minor -> single (F, 27C) @ (27C, Mpad) matmul.
    fill_taps(xk - x0, 0 * C, 3 * C)
    fill_taps(znew, 1 * C, 3 * C)
    fill_taps(yv, 2 * C, 3 * C)
    h = jnp.maximum(
        jnp.dot(wr1_ref[...], stk_ref[pl.ds(0, 27 * C), :],
                preferred_element_type=jnp.float32) + br1_ref[...],
        0.0) * mask

    # ---- netR layer 2 + residual '+ X0' fused into the epilogue -------------
    out_ref[0] = conv(h, wr2_ref[...]) + br2_ref[...] + x0


# ------------------------------ weight / layout prep ------------------------

def _stack_w(w):
    """(3,3,Cin,Cout) HWIO -> (Cout, 9*Cin): tap-major, channel-minor columns,
    matching the scratch row layout written by fill_taps."""
    _, _, cin, cout = w.shape
    return (jnp.transpose(w.reshape(9, cin, cout), (2, 0, 1))
            .reshape(cout, 9 * cin).astype(jnp.float32))


def _adjoint_w(w):
    """Adjoint of a zero-padded 3x3 'same' conv: spatial flip + swap in/out chans."""
    return jnp.transpose(w[::-1, ::-1], (0, 1, 3, 2))


# --------------------------------- forward ----------------------------------

def deblur_deq_kth_iter_forward(Xk, y, Zk, X0, params, hp):
    """Semantics of deblur_deq_kth_iter.forward with synthetic netA / netR / A0:
       A0          : fixed 3x3 blur conv (no bias)
       netA(Z, A0) : yinit = A0(Z),  yk = yinit + convA(yinit)
       criteria    : MSELoss (mean over all elements)
       netR(u,Z,y) : conv3x3(relu(conv3x3(concat([u, Z, y], C))))
    Returns netR(Xk - X0, Zk_new, y) + X0, where Zk_new is Zk after one AdamW step
    on lossZ with a freshly-constructed optimizer (as in the reference module)."""
    B, C, H, W = Xk.shape
    Hp, Wp = H + 2, W + 2
    Mp = Hp * Wp
    Mpad = _round_up(Mp, 128)                # lane-dense blocks / unmasked stores
    N = B * C * H * W                        # MSE normalizer (batch mean)
    c1 = 2.0 / N
    c2 = 2.0 * hp['gamma'] / N
    c3 = 2.0 * hp['lamb'] / N
    F = params['b_r1'].shape[0]

    def pad_flat(x):                         # NCHW -> (B, C, Mpad) zero-halo layout
        xp = jnp.pad(x.astype(jnp.float32), ((0, 0), (0, 0), (1, 1), (1, 1)))
        return jnp.pad(xp.reshape(B, C, Mp), ((0, 0), (0, 0), (0, Mpad - Mp)))

    zk, xk, x0, y_ = map(pad_flat, (Zk, Xk, X0, y))

    r = jnp.arange(Hp)[:, None]
    c = jnp.arange(Wp)[None, :]
    mask = ((r >= 1) & (r <= H) & (c >= 1) & (c <= W)).astype(jnp.float32)
    mask = jnp.pad(mask.reshape(1, Mp), ((0, 0), (0, Mpad - Mp)))

    w_a0 = _stack_w(params['w_a0'])                     # (C, 9C)
    w_a = _stack_w(params['w_a'])                       # (C, 9C)
    w_aT = _stack_w(_adjoint_w(params['w_a']))          # (C, 9C)
    w_a0T = _stack_w(_adjoint_w(params['w_a0']))        # (C, 9C)
    w_r1 = _stack_w(params['w_r1'])                     # (F, 27C)
    w_r2 = _stack_w(params['w_r2'])                     # (C, 9F)
    b_r1 = params['b_r1'].reshape(-1, 1).astype(jnp.float32)
    b_r2 = params['b_r2'].reshape(-1, 1).astype(jnp.float32)

    batched = (zk, xk, x0, y_)
    consts = (w_a0, w_a, w_aT, w_a0T, w_r1, w_r2, b_r1, b_r2, mask)

    kernel = functools.partial(
        _fused_kernel, Wp=Wp, Mpad=Mpad, c1=c1, c2=c2, c3=c3,
        lr=hp['lr_Z'], wd=hp['adamw_wd'], eps=hp['adamw_eps'])

    # TODO(synk): lossA.backward() + optA.step() only mutates netA's weights and optA's
    # optimizer state; it does not affect the returned tensor, so that side-effect is
    # omitted (as is the in-place update of the module-held self.Zk).
    outp = pl.pallas_call(
        kernel,
        grid=(B,),
        in_specs=[pl.BlockSpec((1, C, Mpad), lambda b: (b, 0, 0))] * len(batched)
                 + [pl.BlockSpec(cst.shape, lambda b: (0, 0)) for cst in consts],
        out_specs=pl.BlockSpec((1, C, Mpad), lambda b: (b, 0, 0)),
        out_shape=jax.ShapeDtypeStruct((B, C, Mpad), jnp.float32),
        scratch_shapes=[pltpu.VMEM((max(27 * C, 9 * F), Mpad), jnp.float32)],
        compiler_params=pltpu.CompilerParams(
            dimension_semantics=("parallel",)),
    )(*batched, *consts)

    # Drop the lane padding + zero halo (kernel-internal layout only).
    return outp[:, :, :Mp].reshape(B, C, Hp, Wp)[:, :, 1:H + 1, 1:W + 1]


# ----------------------------- pure-JAX reference ----------------------------

def _forward_ref(Xk, y, Zk, X0, params, hp):
    to_nhwc = lambda t: jnp.transpose(t, (0, 2, 3, 1)).astype(jnp.float32)
    Xk_, y_, Zk_, X0_ = map(to_nhwc, (Xk, y, Zk, X0))

    def conv(x, w, b=None, relu=False):
        o = jax.lax.conv_general_dilated(
            x, w, window_strides=(1, 1), padding='SAME',
            dimension_numbers=('NHWC', 'HWIO', 'NHWC'))
        if b is not None:
            o = o + b
        if relu:
            o = jnp.maximum(o, 0.0)
        return o

    def netA(z):
        yinit = conv(z, params['w_a0'])
        yk = yinit + conv(yinit, params['w_a'])
        return yinit, yk

    mse = lambda a, b: jnp.mean((a - b) ** 2)

    def lossZ(z):
        yinit, yk = netA(z)
        return (mse(y_, yk) + hp['gamma'] * mse(yk, yinit)
                + hp['lamb'] * mse(Xk_, z))

    g = jax.grad(lossZ)(Zk_)
    lr, wd, eps = hp['lr_Z'], hp['adamw_wd'], hp['adamw_eps']
    Zk_new = Zk_ * (1.0 - lr * wd) - lr * g / (jnp.abs(g) + eps)

    inp = jnp.concatenate([Xk_ - X0_, Zk_new, y_], axis=-1)
    h = conv(inp, params['w_r1'], params['b_r1'], relu=True)
    r = conv(h, params['w_r2'], params['b_r2'])
    return jnp.transpose(r + X0_, (0, 3, 1, 2))


# ----------------------------------- main ------------------------------------

if __name__ == "__main__":
    B, C, H, W = 2, 4, 16, 16
    F = 8                                  # hidden channels of netR

    key = jax.random.PRNGKey(0)
    ks = jax.random.split(key, 9)
    Xk = jax.random.normal(ks[0], (B, C, H, W), jnp.float32)
    y = jax.random.normal(ks[1], (B, C, H, W), jnp.float32)
    Zk = jax.random.normal(ks[2], (B, C, H, W), jnp.float32)
    X0 = jax.random.normal(ks[3], (B, C, H, W), jnp.float32)

    # A0: fixed depthwise 3x3 Gaussian blur expressed as a (3,3,C,C) conv weight.
    g3 = jnp.array([1.0, 2.0, 1.0], jnp.float32)
    blur = (g3[:, None] * g3[None, :]) / 16.0
    w_a0 = blur[:, :, None, None] * jnp.eye(C, dtype=jnp.float32)

    params = dict(
        w_a0=w_a0,
        w_a=0.1 * jax.random.normal(ks[4], (3, 3, C, C), jnp.float32),
        w_r1=0.1 * jax.random.normal(ks[5], (3, 3, 3 * C, F), jnp.float32),
        b_r1=0.01 * jax.random.normal(ks[6], (F,), jnp.float32),
        w_r2=0.1 * jax.random.normal(ks[7], (3, 3, F, C), jnp.float32),
        b_r2=0.01 * jax.random.normal(ks[8], (C,), jnp.float32),
    )
    # args.eta is an unused-in-forward nn.Parameter; gamma/lamb/lr_Z from args,
    # AdamW defaults: weight_decay=1e-2, eps=1e-8.
    hp = dict(gamma=0.5, lamb=0.1, lr_Z=1e-2, adamw_wd=1e-2, adamw_eps=1e-8)

    fwd = jax.jit(lambda a, b, c, d: deblur_deq_kth_iter_forward(
        a, b, c, d, params=params, hp=hp))
    out = jax.block_until_ready(fwd(Xk, y, Zk, X0))

    ref = jax.block_until_ready(_forward_ref(Xk, y, Zk, X0, params, hp))
    np.testing.assert_allclose(np.asarray(out), np.asarray(ref),
                               rtol=2e-2, atol=2e-3)
    assert out.shape == (B, C, H, W) and out.dtype == jnp.float32

    print("KERNEL_OK")
</pallas_src>

<mosaic_0001>
module attributes {stable_mosaic.version = 11 : i64} {
  func.func @_fused_kernel(%arg0: i32, %arg1: memref<1x4x384xf32, #tpu.memory_space<vmem>>, %arg2: memref<1x4x384xf32, #tpu.memory_space<vmem>>, %arg3: memref<1x4x384xf32, #tpu.memory_space<vmem>>, %arg4: memref<1x4x384xf32, #tpu.memory_space<vmem>>, %arg5: memref<4x36xf32, #tpu.memory_space<vmem>>, %arg6: memref<4x36xf32, #tpu.memory_space<vmem>>, %arg7: memref<4x36xf32, #tpu.memory_space<vmem>>, %arg8: memref<4x36xf32, #tpu.memory_space<vmem>>, %arg9: memref<8x108xf32, #tpu.memory_space<vmem>>, %arg10: memref<4x72xf32, #tpu.memory_space<vmem>>, %arg11: memref<8x1xf32, #tpu.memory_space<vmem>>, %arg12: memref<4x1xf32, #tpu.memory_space<vmem>>, %arg13: memref<1x384xf32, #tpu.memory_space<vmem>>, %arg14: memref<1x4x384xf32, #tpu.memory_space<vmem>>, %arg15: memref<108x384xf32, #tpu.memory_space<vmem>>) attributes {dimension_semantics = [#tpu.dimension_semantics<parallel>], iteration_bounds = array<i64: 2>, scalar_prefetch = 0 : i64, scratch_operands = 1 : i64, tpu.core_type = #tpu.core_type<tc>, window_params = [{transform_indices = @transform_0, window_bounds = array<i64: 1, 4, 384>}, {transform_indices = @transform_1, window_bounds = array<i64: 1, 4, 384>}, {transform_indices = @transform_2, window_bounds = array<i64: 1, 4, 384>}, {transform_indices = @transform_3, window_bounds = array<i64: 1, 4, 384>}, {pipeline_mode = #tpu.pipeline_mode<synchronous>, transform_indices = @transform_4, window_bounds = array<i64: 4, 36>}, {pipeline_mode = #tpu.pipeline_mode<synchronous>, transform_indices = @transform_5, window_bounds = array<i64: 4, 36>}, {pipeline_mode = #tpu.pipeline_mode<synchronous>, transform_indices = @transform_6, window_bounds = array<i64: 4, 36>}, {pipeline_mode = #tpu.pipeline_mode<synchronous>, transform_indices = @transform_7, window_bounds = array<i64: 4, 36>}, {pipeline_mode = #tpu.pipeline_mode<synchronous>, transform_indices = @transform_8, window_bounds = array<i64: 8, 108>}, {pipeline_mode = #tpu.pipeline_mode<synchronous>, transform_indices = @transform_9, window_bounds = array<i64: 4, 72>}, {pipeline_mode = #tpu.pipeline_mode<synchronous>, transform_indices = @transform_10, window_bounds = array<i64: 8, 1>}, {pipeline_mode = #tpu.pipeline_mode<synchronous>, transform_indices = @transform_11, window_bounds = array<i64: 4, 1>}, {pipeline_mode = #tpu.pipeline_mode<synchronous>, transform_indices = @transform_12, window_bounds = array<i64: 1, 384>}, {transform_indices = @transform_13, window_bounds = array<i64: 1, 4, 384>}]} {
    %c0 = arith.constant 0 : index
    %c0_0 = arith.constant 0 : index
    %0 = vector.load %arg13[%c0, %c0_0] : memref<1x384xf32, #tpu.memory_space<vmem>>, vector<1x384xf32>
    %c0_1 = arith.constant 0 : index
    %c0_2 = arith.constant 0 : index
    %c0_3 = arith.constant 0 : index
    %1 = vector.load %arg1[%c0_1, %c0_2, %c0_3] : memref<1x4x384xf32, #tpu.memory_space<vmem>>, vector<1x4x384xf32>
    %2 = vector.shape_cast %1 : vector<1x4x384xf32> to vector<4x384xf32>
    %c0_4 = arith.constant 0 : index
    %c0_5 = arith.constant 0 : index
    %c0_6 = arith.constant 0 : index
    %3 = vector.load %arg2[%c0_4, %c0_5, %c0_6] : memref<1x4x384xf32, #tpu.memory_space<vmem>>, vector<1x4x384xf32>
    %4 = vector.shape_cast %3 : vector<1x4x384xf32> to vector<4x384xf32>
    %c0_7 = arith.constant 0 : index
    %c0_8 = arith.constant 0 : index
    %c0_9 = arith.constant 0 : index
    %5 = vector.load %arg3[%c0_7, %c0_8, %c0_9] : memref<1x4x384xf32, #tpu.memory_space<vmem>>, vector<1x4x384xf32>
    %6 = vector.shape_cast %5 : vector<1x4x384xf32> to vector<4x384xf32>
    %c0_10 = arith.constant 0 : index
    %c0_11 = arith.constant 0 : index
    %c0_12 = arith.constant 0 : index
    %7 = vector.load %arg4[%c0_10, %c0_11, %c0_12] : memref<1x4x384xf32, #tpu.memory_space<vmem>>, vector<1x4x384xf32>
    %8 = vector.shape_cast %7 : vector<1x4x384xf32> to vector<4x384xf32>
    %c0_13 = arith.constant 0 : index
    %c0_14 = arith.constant 0 : index
    %9 = vector.load %arg5[%c0_13, %c0_14] : memref<4x36xf32, #tpu.memory_space<vmem>>, vector<4x36xf32>
    %c19_i32 = arith.constant 19 : i32
    %10 = tpu.dynamic_rotate %2 by %c19_i32 dim 1 : vector<4x384xf32>, i32 -> vector<4x384xf32>
    %c0_15 = arith.constant 0 : index
    %c0_16 = arith.constant 0 : index
    %11 = vector.load %arg15[%c0_15, %c0_16] : memref<108x384xf32, #tpu.memory_space<vmem>>, vector<4x384xf32>
    tpu.vector_store %arg15[%c0_15, %c0_16], %10 {strides = array<i32>} : memref<108x384xf32, #tpu.memory_space<vmem>>, vector<4x384xf32>,
    %c18_i32 = arith.constant 18 : i32
    %12 = tpu.dynamic_rotate %2 by %c18_i32 dim 1 : vector<4x384xf32>, i32 -> vector<4x384xf32>
    %c4 = arith.constant 4 : index
    %c0_17 = arith.constant 0 : index
    %13 = vector.load %arg15[%c4, %c0_17] : memref<108x384xf32, #tpu.memory_space<vmem>>, vector<4x384xf32>
    tpu.vector_store %arg15[%c4, %c0_17], %12 {strides = array<i32>} : memref<108x384xf32, #tpu.memory_space<vmem>>, vector<4x384xf32>,
    %c17_i32 = arith.constant 17 : i32
    %14 = tpu.dynamic_rotate %2 by %c17_i32 dim 1 : vector<4x384xf32>, i32 -> vector<4x384xf32>
    %c8 = arith.constant 8 : index
    %c0_18 = arith.constant 0 : index
    %15 = vector.load %arg15[%c8, %c0_18] : memref<108x384xf32, #tpu.memory_space<vmem>>, vector<4x384xf32>
    tpu.vector_store %arg15[%c8, %c0_18], %14 {strides = array<i32>} : memref<108x384xf32, #tpu.memory_space<vmem>>, vector<4x384xf32>,
    %c1_i32 = arith.constant 1 : i32
    %16 = tpu.dynamic_rotate %2 by %c1_i32 dim 1 : vector<4x384xf32>, i32 -> vector<4x384xf32>
    %c12 = arith.constant 12 : index
    %c0_19 = arith.constant 0 : index
    %17 = vector.load %arg15[%c12, %c0_19] : memref<108x384xf32, #tpu.memory_space<vmem>>, vector<4x384xf32>
    tpu.vector_store %arg15[%c12, %c0_19], %16 {strides = array<i32>} : memref<108x384xf32, #tpu.memory_space<vmem>>, vector<4x384xf32>,
    %c16 = arith.constant 16 : index
    %c0_20 = arith.constant 0 : index
    %18 = vector.load %arg15[%c16, %c0_20] : memref<108x384xf32, #tpu.memory_space<vmem>>, vector<4x384xf32>
    tpu.vector_store %arg15[%c16, %c0_20], %2 {strides = array<i32>} : memref<108x384xf32, #tpu.memory_space<vmem>>, vector<4x384xf32>,
    %c383_i32 = arith.constant 383 : i32
    %19 = tpu.dynamic_rotate %2 by %c383_i32 dim 1 : vector<4x384xf32>, i32 -> vector<4x384xf32>
    %c20 = arith.constant 20 : index
    %c0_21 = arith.constant 0 : index
    %20 = vector.load %arg15[%c20, %c0_21] : memref<108x384xf32, #tpu.memory_space<vmem>>, vector<4x384xf32>
    tpu.vector_store %arg15[%c20, %c0_21], %19 {strides = array<i32>} : memref<108x384xf32, #tpu.memory_space<vmem>>, vector<4x384xf32>,
    %c367_i32 = arith.constant 367 : i32
    %21 = tpu.dynamic_rotate %2 by %c367_i32 dim 1 : vector<4x384xf32>, i32 -> vector<4x384xf32>
    %c24 = arith.constant 24 : index
    %c0_22 = arith.constant 0 : index
    %22 = vector.load %arg15[%c24, %c0_22] : memref<108x384xf32, #tpu.memory_space<vmem>>, vector<4x384xf32>
    tpu.vector_store %arg15[%c24, %c0_22], %21 {strides = array<i32>} : memref<108x384xf32, #tpu.memory_space<vmem>>, vector<4x384xf32>,
    %c366_i32 = arith.constant 366 : i32
    %23 = tpu.dynamic_rotate %2 by %c366_i32 dim 1 : vector<4x384xf32>, i32 -> vector<4x384xf32>
    %c28 = arith.constant 28 : index
    %c0_23 = arith.constant 0 : index
    %24 = vector.load %arg15[%c28, %c0_23] : memref<108x384xf32, #tpu.memory_space<vmem>>, vector<4x384xf32>
    tpu.vector_store %arg15[%c28, %c0_23], %23 {strides = array<i32>} : memref<108x384xf32, #tpu.memory_space<vmem>>, vector<4x384xf32>,
    %c365_i32 = arith.constant 365 : i32
    %25 = tpu.dynamic_rotate %2 by %c365_i32 dim 1 : vector<4x384xf32>, i32 -> vector<4x384xf32>
    %c32 = arith.constant 32 : index
    %c0_24 = arith.constant 0 : index
    %26 = vector.load %arg15[%c32, %c0_24] : memref<108x384xf32, #tpu.memory_space<vmem>>, vector<4x384xf32>
    tpu.vector_store %arg15[%c32, %c0_24], %25 {strides = array<i32>} : memref<108x384xf32, #tpu.memory_space<vmem>>, vector<4x384xf32>,
    %c0_25 = arith.constant 0 : index
    %c0_26 = arith.constant 0 : index
    %27 = vector.load %arg15[%c0_25, %c0_26] : memref<108x384xf32, #tpu.memory_space<vmem>>, vector<36x384xf32>
    %cst = arith.constant dense<0.000000e+00> : vector<4x384xf32>
    %28 = tpu.matmul %9, %27, %cst {dimension_numbers = #tpu.dot_dimension_numbers<[1], [0], [0], [1], [0, 0, 1, 1], [], []>} : vector<4x36xf32>, vector<36x384xf32>, vector<4x384xf32> -> vector<4x384xf32>
    %29 = vector.broadcast %0 : vector<1x384xf32> to vector<4x384xf32>
    %30 = arith.mulf %28, %29 : vector<4x384xf32>
    %c0_27 = arith.constant 0 : index
    %c0_28 = arith.constant 0 : index
    %31 = vector.load %arg6[%c0_27, %c0_28] : memref<4x36xf32, #tpu.memory_space<vmem>>, vector<4x36xf32>
    %c19_i32_29 = arith.constant 19 : i32
    %32 = tpu.dynamic_rotate %30 by %c19_i32_29 dim 1 : vector<4x384xf32>, i32 -> vector<4x384xf32>
    %c0_30 = arith.constant 0 : index
    %c0_31 = arith.constant 0 : index
    %33 = vector.load %arg15[%c0_30, %c0_31] : memref<108x384xf32, #tpu.memory_space<vmem>>, vector<4x384xf32>
    tpu.vector_store %arg15[%c0_30, %c0_31], %32 {strides = array<i32>} : memref<108x384xf32, #tpu.memory_space<vmem>>, vector<4x384xf32>,
    %c18_i32_32 = arith.constant 18 : i32
    %34 = tpu.dynamic_rotate %30 by %c18_i32_32 dim 1 : vector<4x384xf32>, i32 -> vector<4x384xf32>
    %c4_33 = arith.constant 4 : index
    %c0_34 = arith.constant 0 : index
    %35 = vector.load %arg15[%c4_33, %c0_34] : memref<108x384xf32, #tpu.memory_space<vmem>>, vector<4x384xf32>
    tpu.vector_store %arg15[%c4_33, %c0_34], %34 {strides = array<i32>} : memref<108x384xf32, #tpu.memory_space<vmem>>, vector<4x384xf32>,
    %c17_i32_35 = arith.constant 17 : i32
    %36 = tpu.dynamic_rotate %30 by %c17_i32_35 dim 1 : vector<4x384xf32>, i32 -> vector<4x384xf32>
    %c8_36 = arith.constant 8 : index
    %c0_37 = arith.constant 0 : index
    %37 = vector.load %arg15[%c8_36, %c0_37] : memref<108x384xf32, #tpu.memory_space<vmem>>, vector<4x384xf32>
    tpu.vector_store %arg15[%c8_36, %c0_37], %36 {strides = array<i32>} : memref<108x384xf32, #tpu.memory_space<vmem>>, vector<4x384xf32>,
    %c1_i32_38 = arith.constant 1 : i32
    %38 = tpu.dynamic_rotate %30 by %c1_i32_38 dim 1 : vector<4x384xf32>, i32 -> vector<4x384xf32>
    %c12_39 = arith.constant 12 : index
    %c0_40 = arith.constant 0 : index
    %39 = vector.load %arg15[%c12_39, %c0_40] : memref<108x384xf32, #tpu.memory_space<vmem>>, vector<4x384xf32>
    tpu.vector_store %arg15[%c12_39, %c0_40], %38 {strides = array<i32>} : memref<108x384xf32, #tpu.memory_space<vmem>>, vector<4x384xf32>,
    %c16_41 = arith.constant 16 : index
    %c0_42 = arith.constant 0 : index
    %40 = vector.load %arg15[%c16_41, %c0_42] : memref<108x384xf32, #tpu.memory_space<vmem>>, vector<4x384xf32>
    tpu.vector_store %arg15[%c16_41, %c0_42], %30 {strides = array<i32>} : memref<108x384xf32, #tpu.memory_space<vmem>>, vector<4x384xf32>,
    %c383_i32_43 = arith.constant 383 : i32
    %41 = tpu.dynamic_rotate %30 by %c383_i32_43 dim 1 : vector<4x384xf32>, i32 -> vector<4x384xf32>
    %c20_44 = arith.constant 20 : index
    %c0_45 = arith.constant 0 : index
    %42 = vector.load %arg15[%c20_44, %c0_45] : memref<108x384xf32, #tpu.memory_space<vmem>>, vector<4x384xf32>
    tpu.vector_store %arg15[%c20_44, %c0_45], %41 {strides = array<i32>} : memref<108x384xf32, #tpu.memory_space<vmem>>, vector<4x384xf32>,
    %c367_i32_46 = arith.constant 367 : i32
    %43 = tpu.dynamic_rotate %30 by %c367_i32_46 dim 1 : vector<4x384xf32>, i32 -> vector<4x384xf32>
    %c24_47 = arith.constant 24 : index
    %c0_48 = arith.constant 0 : index
    %44 = vector.load %arg15[%c24_47, %c0_48] : memref<108x384xf32, #tpu.memory_space<vmem>>, vector<4x384xf32>
    tpu.vector_store %arg15[%c24_47, %c0_48], %43 {strides = array<i32>} : memref<108x384xf32, #tpu.memory_space<vmem>>, vector<4x384xf32>,
    %c366_i32_49 = arith.constant 366 : i32
    %45 = tpu.dynamic_rotate %30 by %c366_i32_49 dim 1 : vector<4x384xf32>, i32 -> vector<4x384xf32>
    %c28_50 = arith.constant 28 : index
    %c0_51 = arith.constant 0 : index
    %46 = vector.load %arg15[%c28_50, %c0_51] : memref<108x384xf32, #tpu.memory_space<vmem>>, vector<4x384xf32>
    tpu.vector_store %arg15[%c28_50, %c0_51], %45 {strides = array<i32>} : memref<108x384xf32, #tpu.memory_space<vmem>>, vector<4x384xf32>,
    %c365_i32_52 = arith.constant 365 : i32
    %47 = tpu.dynamic_rotate %30 by %c365_i32_52 dim 1 : vector<4x384xf32>, i32 -> vector<4x384xf32>
    %c32_53 = arith.constant 32 : index
    %c0_54 = arith.constant 0 : index
    %48 = vector.load %arg15[%c32_53, %c0_54] : memref<108x384xf32, #tpu.memory_space<vmem>>, vector<4x384xf32>
    tpu.vector_store %arg15[%c32_53, %c0_54], %47 {strides = array<i32>} : memref<108x384xf32, #tpu.memory_space<vmem>>, vector<4x384xf32>,
    %c0_55 = arith.constant 0 : index
    %c0_56 = arith.constant 0 : index
    %49 = vector.load %arg15[%c0_55, %c0_56] : memref<108x384xf32, #tpu.memory_space<vmem>>, vector<36x384xf32>
    %cst_57 = arith.constant dense<0.000000e+00> : vector<4x384xf32>
    %50 = tpu.matmul %31, %49, %cst_57 {dimension_numbers = #tpu.dot_dimension_numbers<[1], [0], [0], [1], [0, 0, 1, 1], [], []>} : vector<4x36xf32>, vector<36x384xf32>, vector<4x384xf32> -> vector<4x384xf32>
    %51 = vector.broadcast %0 : vector<1x384xf32> to vector<4x384xf32>
    %52 = arith.mulf %50, %51 : vector<4x384xf32>
    %53 = arith.addf %30, %52 : vector<4x384xf32>
    %54 = arith.subf %53, %8 : vector<4x384xf32>
    %cst_58 = arith.constant 9.765625E-4 : f32
    %55 = vector.broadcast %cst_58 : f32 to vector<4x384xf32>
    %56 = arith.mulf %55, %54 : vector<4x384xf32>
    %cst_59 = arith.constant 4.8828125E-4 : f32
    %57 = vector.broadcast %cst_59 : f32 to vector<4x384xf32>
    %58 = arith.mulf %57, %52 : vector<4x384xf32>
    %59 = arith.addf %56, %58 : vector<4x384xf32>
    %c0_60 = arith.constant 0 : index
    %c0_61 = arith.constant 0 : index
    %60 = vector.load %arg7[%c0_60, %c0_61] : memref<4x36xf32, #tpu.memory_space<vmem>>, vector<4x36xf32>
    %c19_i32_62 = arith.constant 19 : i32
    %61 = tpu.dynamic_rotate %59 by %c19_i32_62 dim 1 : vector<4x384xf32>, i32 -> vector<4x384xf32>
    %c0_63 = arith.constant 0 : index
    %c0_64 = arith.constant 0 : index
    %62 = vector.load %arg15[%c0_63, %c0_64] : memref<108x384xf32, #tpu.memory_space<vmem>>, vector<4x384xf32>
    tpu.vector_store %arg15[%c0_63, %c0_64], %61 {strides = array<i32>} : memref<108x384xf32, #tpu.memory_space<vmem>>, vector<4x384xf32>,
    %c18_i32_65 = arith.constant 18 : i32
    %63 = tpu.dynamic_rotate %59 by %c18_i32_65 dim 1 : vector<4x384xf32>, i32 -> vector<4x384xf32>
    %c4_66 = arith.constant 4 : index
    %c0_67 = arith.constant 0 : index
    %64 = vector.load %arg15[%c4_66, %c0_67] : memref<108x384xf32, #tpu.memory_space<vmem>>, vector<4x384xf32>
    tpu.vector_store %arg15[%c4_66, %c0_67], %63 {strides = array<i32>} : memref<108x384xf32, #tpu.memory_space<vmem>>, vector<4x384xf32>,
    %c17_i32_68 = arith.constant 17 : i32
    %65 = tpu.dynamic_rotate %59 by %c17_i32_68 dim 1 : vector<4x384xf32>, i32 -> vector<4x384xf32>
    %c8_69 = arith.constant 8 : index
    %c0_70 = arith.constant 0 : index
    %66 = vector.load %arg15[%c8_69, %c0_70] : memref<108x384xf32, #tpu.memory_space<vmem>>, vector<4x384xf32>
    tpu.vector_store %arg15[%c8_69, %c0_70], %65 {strides = array<i32>} : memref<108x384xf32, #tpu.memory_space<vmem>>, vector<4x384xf32>,
    %c1_i32_71 = arith.constant 1 : i32
    %67 = tpu.dynamic_rotate %59 by %c1_i32_71 dim 1 : vector<4x384xf32>, i32 -> vector<4x384xf32>
    %c12_72 = arith.constant 12 : index
    %c0_73 = arith.constant 0 : index
    %68 = vector.load %arg15[%c12_72, %c0_73] : memref<108x384xf32, #tpu.memory_space<vmem>>, vector<4x384xf32>
    tpu.vector_store %arg15[%c12_72, %c0_73], %67 {strides = array<i32>} : memref<108x384xf32, #tpu.memory_space<vmem>>, vector<4x384xf32>,
    %c16_74 = arith.constant 16 : index
    %c0_75 = arith.constant 0 : index
    %69 = vector.load %arg15[%c16_74, %c0_75] : memref<108x384xf32, #tpu.memory_space<vmem>>, vector<4x384xf32>
    tpu.vector_store %arg15[%c16_74, %c0_75], %59 {strides = array<i32>} : memref<108x384xf32, #tpu.memory_space<vmem>>, vector<4x384xf32>,
    %c383_i32_76 = arith.constant 383 : i32
    %70 = tpu.dynamic_rotate %59 by %c383_i32_76 dim 1 : vector<4x384xf32>, i32 -> vector<4x384xf32>
    %c20_77 = arith.constant 20 : index
    %c0_78 = arith.constant 0 : index
    %71 = vector.load %arg15[%c20_77, %c0_78] : memref<108x384xf32, #tpu.memory_space<vmem>>, vector<4x384xf32>
    tpu.vector_store %arg15[%c20_77, %c0_78], %70 {strides = array<i32>} : memref<108x384xf32, #tpu.memory_space<vmem>>, vector<4x384xf32>,
    %c367_i32_79 = arith.constant 367 : i32
    %72 = tpu.dynamic_rotate %59 by %c367_i32_79 dim 1 : vector<4x384xf32>, i32 -> vector<4x384xf32>
    %c24_80 = arith.constant 24 : index
    %c0_81 = arith.constant 0 : index
    %73 = vector.load %arg15[%c24_80, %c0_81] : memref<108x384xf32, #tpu.memory_space<vmem>>, vector<4x384xf32>
    tpu.vector_store %arg15[%c24_80, %c0_81], %72 {strides = array<i32>} : memref<108x384xf32, #tpu.memory_space<vmem>>, vector<4x384xf32>,
    %c366_i32_82 = arith.constant 366 : i32
    %74 = tpu.dynamic_rotate %59 by %c366_i32_82 dim 1 : vector<4x384xf32>, i32 -> vector<4x384xf32>
    %c28_83 = arith.constant 28 : index
    %c0_84 = arith.constant 0 : index
    %75 = vector.load %arg15[%c28_83, %c0_84] : memref<108x384xf32, #tpu.memory_space<vmem>>, vector<4x384xf32>
    tpu.vector_store %arg15[%c28_83, %c0_84], %74 {strides = array<i32>} : memref<108x384xf32, #tpu.memory_space<vmem>>, vector<4x384xf32>,
    %c365_i32_85 = arith.constant 365 : i32
    %76 = tpu.dynamic_rotate %59 by %c365_i32_85 dim 1 : vector<4x384xf32>, i32 -> vector<4x384xf32>
    %c32_86 = arith.constant 32 : index
    %c0_87 = arith.constant 0 : index
    %77 = vector.load %arg15[%c32_86, %c0_87] : memref<108x384xf32, #tpu.memory_space<vmem>>, vector<4x384xf32>
    tpu.vector_store %arg15[%c32_86, %c0_87], %76 {strides = array<i32>} : memref<108x384xf32, #tpu.memory_space<vmem>>, vector<4x384xf32>,
    %c0_88 = arith.constant 0 : index
    %c0_89 = arith.constant 0 : index
    %78 = vector.load %arg15[%c0_88, %c0_89] : memref<108x384xf32, #tpu.memory_space<vmem>>, vector<36x384xf32>
    %cst_90 = arith.constant dense<0.000000e+00> : vector<4x384xf32>
    %79 = tpu.matmul %60, %78, %cst_90 {dimension_numbers = #tpu.dot_dimension_numbers<[1], [0], [0], [1], [0, 0, 1, 1], [], []>} : vector<4x36xf32>, vector<36x384xf32>, vector<4x384xf32> -> vector<4x384xf32>
    %80 = vector.broadcast %0 : vector<1x384xf32> to vector<4x384xf32>
    %81 = arith.mulf %79, %80 : vector<4x384xf32>
    %82 = arith.addf %59, %81 : vector<4x384xf32>
    %cst_91 = arith.constant 4.8828125E-4 : f32
    %83 = vector.broadcast %cst_91 : f32 to vector<4x384xf32>
    %84 = arith.mulf %83, %52 : vector<4x384xf32>
    %85 = arith.subf %82, %84 : vector<4x384xf32>
    %c0_92 = arith.constant 0 : index
    %c0_93 = arith.constant 0 : index
    %86 = vector.load %arg8[%c0_92, %c0_93] : memref<4x36xf32, #tpu.memory_space<vmem>>, vector<4x36xf32>
    %c19_i32_94 = arith.constant 19 : i32
    %87 = tpu.dynamic_rotate %85 by %c19_i32_94 dim 1 : vector<4x384xf32>, i32 -> vector<4x384xf32>
    %c0_95 = arith.constant 0 : index
    %c0_96 = arith.constant 0 : index
    %88 = vector.load %arg15[%c0_95, %c0_96] : memref<108x384xf32, #tpu.memory_space<vmem>>, vector<4x384xf32>
    tpu.vector_store %arg15[%c0_95, %c0_96], %87 {strides = array<i32>} : memref<108x384xf32, #tpu.memory_space<vmem>>, vector<4x384xf32>,
    %c18_i32_97 = arith.constant 18 : i32
    %89 = tpu.dynamic_rotate %85 by %c18_i32_97 dim 1 : vector<4x384xf32>, i32 -> vector<4x384xf32>
    %c4_98 = arith.constant 4 : index
    %c0_99 = arith.constant 0 : index
    %90 = vector.load %arg15[%c4_98, %c0_99] : memref<108x384xf32, #tpu.memory_space<vmem>>, vector<4x384xf32>
    tpu.vector_store %arg15[%c4_98, %c0_99], %89 {strides = array<i32>} : memref<108x384xf32, #tpu.memory_space<vmem>>, vector<4x384xf32>,
    %c17_i32_100 = arith.constant 17 : i32
    %91 = tpu.dynamic_rotate %85 by %c17_i32_100 dim 1 : vector<4x384xf32>, i32 -> vector<4x384xf32>
    %c8_101 = arith.constant 8 : index
    %c0_102 = arith.constant 0 : index
    %92 = vector.load %arg15[%c8_101, %c0_102] : memref<108x384xf32, #tpu.memory_space<vmem>>, vector<4x384xf32>
    tpu.vector_store %arg15[%c8_101, %c0_102], %91 {strides = array<i32>} : memref<108x384xf32, #tpu.memory_space<vmem>>, vector<4x384xf32>,
    %c1_i32_103 = arith.constant 1 : i32
    %93 = tpu.dynamic_rotate %85 by %c1_i32_103 dim 1 : vector<4x384xf32>, i32 -> vector<4x384xf32>
    %c12_104 = arith.constant 12 : index
    %c0_105 = arith.constant 0 : index
    %94 = vector.load %arg15[%c12_104, %c0_105] : memref<108x384xf32, #tpu.memory_space<vmem>>, vector<4x384xf32>
    tpu.vector_store %arg15[%c12_104, %c0_105], %93 {strides = array<i32>} : memref<108x384xf32, #tpu.memory_space<vmem>>, vector<4x384xf32>,
    %c16_106 = arith.constant 16 : index
    %c0_107 = arith.constant 0 : index
    %95 = vector.load %arg15[%c16_106, %c0_107] : memref<108x384xf32, #tpu.memory_space<vmem>>, vector<4x384xf32>
    tpu.vector_store %arg15[%c16_106, %c0_107], %85 {strides = array<i32>} : memref<108x384xf32, #tpu.memory_space<vmem>>, vector<4x384xf32>,
    %c383_i32_108 = arith.constant 383 : i32
    %96 = tpu.dynamic_rotate %85 by %c383_i32_108 dim 1 : vector<4x384xf32>, i32 -> vector<4x384xf32>
    %c20_109 = arith.constant 20 : index
    %c0_110 = arith.constant 0 : index
    %97 = vector.load %arg15[%c20_109, %c0_110] : memref<108x384xf32, #tpu.memory_space<vmem>>, vector<4x384xf32>
    tpu.vector_store %arg15[%c20_109, %c0_110], %96 {strides = array<i32>} : memref<108x384xf32, #tpu.memory_space<vmem>>, vector<4x384xf32>,
    %c367_i32_111 = arith.constant 367 : i32
    %98 = tpu.dynamic_rotate %85 by %c367_i32_111 dim 1 : vector<4x384xf32>, i32 -> vector<4x384xf32>
    %c24_112 = arith.constant 24 : index
    %c0_113 = arith.constant 0 : index
    %99 = vector.load %arg15[%c24_112, %c0_113] : memref<108x384xf32, #tpu.memory_space<vmem>>, vector<4x384xf32>
    tpu.vector_store %arg15[%c24_112, %c0_113], %98 {strides = array<i32>} : memref<108x384xf32, #tpu.memory_space<vmem>>, vector<4x384xf32>,
    %c366_i32_114 = arith.constant 366 : i32
    %100 = tpu.dynamic_rotate %85 by %c366_i32_114 dim 1 : vector<4x384xf32>, i32 -> vector<4x384xf32>
    %c28_115 = arith.constant 28 : index
    %c0_116 = arith.constant 0 : index
    %101 = vector.load %arg15[%c28_115, %c0_116] : memref<108x384xf32, #tpu.memory_space<vmem>>, vector<4x384xf32>
    tpu.vector_store %arg15[%c28_115, %c0_116], %100 {strides = array<i32>} : memref<108x384xf32, #tpu.memory_space<vmem>>, vector<4x384xf32>,
    %c365_i32_117 = arith.constant 365 : i32
    %102 = tpu.dynamic_rotate %85 by %c365_i32_117 dim 1 : vector<4x384xf32>, i32 -> vector<4x384xf32>
    %c32_118 = arith.constant 32 : index
    %c0_119 = arith.constant 0 : index
    %103 = vector.load %arg15[%c32_118, %c0_119] : memref<108x384xf32, #tpu.memory_space<vmem>>, vector<4x384xf32>
    tpu.vector_store %arg15[%c32_118, %c0_119], %102 {strides = array<i32>} : memref<108x384xf32, #tpu.memory_space<vmem>>, vector<4x384xf32>,
    %c0_120 = arith.constant 0 : index
    %c0_121 = arith.constant 0 : index
    %104 = vector.load %arg15[%c0_120, %c0_121] : memref<108x384xf32, #tpu.memory_space<vmem>>, vector<36x384xf32>
    %cst_122 = arith.constant dense<0.000000e+00> : vector<4x384xf32>
    %105 = tpu.matmul %86, %104, %cst_122 {dimension_numbers = #tpu.dot_dimension_numbers<[1], [0], [0], [1], [0, 0, 1, 1], [], []>} : vector<4x36xf32>, vector<36x384xf32>, vector<4x384xf32> -> vector<4x384xf32>
    %106 = vector.broadcast %0 : vector<1x384xf32> to vector<4x384xf32>
    %107 = arith.mulf %105, %106 : vector<4x384xf32>
    %108 = arith.subf %2, %4 : vector<4x384xf32>
    %cst_123 = arith.constant 9.76562514E-5 : f32
    %109 = vector.broadcast %cst_123 : f32 to vector<4x384xf32>
    %110 = arith.mulf %109, %108 : vector<4x384xf32>
    %111 = arith.addf %107, %110 : vector<4x384xf32>
    %cst_124 = arith.constant 0.999899983 : f32
    %112 = vector.broadcast %cst_124 : f32 to vector<4x384xf32>
    %113 = arith.mulf %2, %112 : vector<4x384xf32>
    %cst_125 = arith.constant 0.00999999977 : f32
    %114 = vector.broadcast %cst_125 : f32 to vector<4x384xf32>
    %115 = arith.mulf %114, %111 : vector<4x384xf32>
    %116 = math.absf %111 : vector<4x384xf32>
    %cst_126 = arith.constant 9.99999993E-9 : f32
    %117 = vector.broadcast %cst_126 : f32 to vector<4x384xf32>
    %118 = arith.addf %116, %117 : vector<4x384xf32>
    %119 = tpu.reciprocal %118 {approx = true} : vector<4x384xf32> -> vector<4x384xf32>
    %120 = arith.mulf %115, %119 : vector<4x384xf32>
    %121 = arith.subf %113, %120 : vector<4x384xf32>
    %122 = arith.subf %4, %6 : vector<4x384xf32>
    %c19_i32_127 = arith.constant 19 : i32
    %123 = tpu.dynamic_rotate %122 by %c19_i32_127 dim 1 : vector<4x384xf32>, i32 -> vector<4x384xf32>
    %c0_128 = arith.constant 0 : index
    %c0_129 = arith.constant 0 : index
    %124 = vector.load %arg15[%c0_128, %c0_129] : memref<108x384xf32, #tpu.memory_space<vmem>>, vector<4x384xf32>
    tpu.vector_store %arg15[%c0_128, %c0_129], %123 {strides = array<i32>} : memref<108x384xf32, #tpu.memory_space<vmem>>, vector<4x384xf32>,
    %c18_i32_130 = arith.constant 18 : i32
    %125 = tpu.dynamic_rotate %122 by %c18_i32_130 dim 1 : vector<4x384xf32>, i32 -> vector<4x384xf32>
    %c12_131 = arith.constant 12 : index
    %c0_132 = arith.constant 0 : index
    %126 = vector.load %arg15[%c12_131, %c0_132] : memref<108x384xf32, #tpu.memory_space<vmem>>, vector<4x384xf32>
    tpu.vector_store %arg15[%c12_131, %c0_132], %125 {strides = array<i32>} : memref<108x384xf32, #tpu.memory_space<vmem>>, vector<4x384xf32>,
    %c17_i32_133 = arith.constant 17 : i32
    %127 = tpu.dynamic_rotate %122 by %c17_i32_133 dim 1 : vector<4x384xf32>, i32 -> vector<4x384xf32>
    %c24_134 = arith.constant 24 : index
    %c0_135 = arith.constant 0 : index
    %128 = vector.load %arg15[%c24_134, %c0_135] : memref<108x384xf32, #tpu.memory_space<vmem>>, vector<4x384xf32>
    tpu.vector_store %arg15[%c24_134, %c0_135], %127 {strides = array<i32>} : memref<108x384xf32, #tpu.memory_space<vmem>>, vector<4x384xf32>,
    %c1_i32_136 = arith.constant 1 : i32
    %129 = tpu.dynamic_rotate %122 by %c1_i32_136 dim 1 : vector<4x384xf32>, i32 -> vector<4x384xf32>
    %c36 = arith.constant 36 : index
    %c0_137 = arith.constant 0 : index
    %130 = vector.load %arg15[%c36, %c0_137] : memref<108x384xf32, #tpu.memory_space<vmem>>, vector<4x384xf32>
    tpu.vector_store %arg15[%c36, %c0_137], %129 {strides = array<i32>} : memref<108x384xf32, #tpu.memory_space<vmem>>, vector<4x384xf32>,
    %c48 = arith.constant 48 : index
    %c0_138 = arith.constant 0 : index
    %131 = vector.load %arg15[%c48, %c0_138] : memref<108x384xf32, #tpu.memory_space<vmem>>, vector<4x384xf32>
    tpu.vector_store %arg15[%c48, %c0_138], %122 {strides = array<i32>} : memref<108x384xf32, #tpu.memory_space<vmem>>, vector<4x384xf32>,
    %c383_i32_139 = arith.constant 383 : i32
    %132 = tpu.dynamic_rotate %122 by %c383_i32_139 dim 1 : vector<4x384xf32>, i32 -> vector<4x384xf32>
    %c60 = arith.constant 60 : index
    %c0_140 = arith.constant 0 : index
    %133 = vector.load %arg15[%c60, %c0_140] : memref<108x384xf32, #tpu.memory_space<vmem>>, vector<4x384xf32>
    tpu.vector_store %arg15[%c60, %c0_140], %132 {strides = array<i32>} : memref<108x384xf32, #tpu.memory_space<vmem>>, vector<4x384xf32>,
    %c367_i32_141 = arith.constant 367 : i32
    %134 = tpu.dynamic_rotate %122 by %c367_i32_141 dim 1 : vector<4x384xf32>, i32 -> vector<4x384xf32>
    %c72 = arith.constant 72 : index
    %c0_142 = arith.constant 0 : index
    %135 = vector.load %arg15[%c72, %c0_142] : memref<108x384xf32, #tpu.memory_space<vmem>>, vector<4x384xf32>
    tpu.vector_store %arg15[%c72, %c0_142], %134 {strides = array<i32>} : memref<108x384xf32, #tpu.memory_space<vmem>>, vector<4x384xf32>,
    %c366_i32_143 = arith.constant 366 : i32
    %136 = tpu.dynamic_rotate %122 by %c366_i32_143 dim 1 : vector<4x384xf32>, i32 -> vector<4x384xf32>
    %c84 = arith.constant 84 : index
    %c0_144 = arith.constant 0 : index
    %137 = vector.load %arg15[%c84, %c0_144] : memref<108x384xf32, #tpu.memory_space<vmem>>, vector<4x384xf32>
    tpu.vector_store %arg15[%c84, %c0_144], %136 {strides = array<i32>} : memref<108x384xf32, #tpu.memory_space<vmem>>, vector<4x384xf32>,
    %c365_i32_145 = arith.constant 365 : i32
    %138 = tpu.dynamic_rotate %122 by %c365_i32_145 dim 1 : vector<4x384xf32>, i32 -> vector<4x384xf32>
    %c96 = arith.constant 96 : index
    %c0_146 = arith.constant 0 : index
    %139 = vector.load %arg15[%c96, %c0_146] : memref<108x384xf32, #tpu.memory_space<vmem>>, vector<4x384xf32>
    tpu.vector_store %arg15[%c96, %c0_146], %138 {strides = array<i32>} : memref<108x384xf32, #tpu.memory_space<vmem>>, vector<4x384xf32>,
    %c19_i32_147 = arith.constant 19 : i32
    %140 = tpu.dynamic_rotate %121 by %c19_i32_147 dim 1 : vector<4x384xf32>, i32 -> vector<4x384xf32>
    %c4_148 = arith.constant 4 : index
    %c0_149 = arith.constant 0 : index
    %141 = vector.load %arg15[%c4_148, %c0_149] : memref<108x384xf32, #tpu.memory_space<vmem>>, vector<4x384xf32>
    tpu.vector_store %arg15[%c4_148, %c0_149], %140 {strides = array<i32>} : memref<108x384xf32, #tpu.memory_space<vmem>>, vector<4x384xf32>,
    %c18_i32_150 = arith.constant 18 : i32
    %142 = tpu.dynamic_rotate %121 by %c18_i32_150 dim 1 : vector<4x384xf32>, i32 -> vector<4x384xf32>
    %c16_151 = arith.constant 16 : index
    %c0_152 = arith.constant 0 : index
    %143 = vector.load %arg15[%c16_151, %c0_152] : memref<108x384xf32, #tpu.memory_space<vmem>>, vector<4x384xf32>
    tpu.vector_store %arg15[%c16_151, %c0_152], %142 {strides = array<i32>} : memref<108x384xf32, #tpu.memory_space<vmem>>, vector<4x384xf32>,
    %c17_i32_153 = arith.constant 17 : i32
    %144 = tpu.dynamic_rotate %121 by %c17_i32_153 dim 1 : vector<4x384xf32>, i32 -> vector<4x384xf32>
    %c28_154 = arith.constant 28 : index
    %c0_155 = arith.constant 0 : index
    %145 = vector.load %arg15[%c28_154, %c0_155] : memref<108x384xf32, #tpu.memory_space<vmem>>, vector<4x384xf32>
    tpu.vector_store %arg15[%c28_154, %c0_155], %144 {strides = array<i32>} : memref<108x384xf32, #tpu.memory_space<vmem>>, vector<4x384xf32>,
    %c1_i32_156 = arith.constant 1 : i32
    %146 = tpu.dynamic_rotate %121 by %c1_i32_156 dim 1 : vector<4x384xf32>, i32 -> vector<4x384xf32>
    %c40 = arith.constant 40 : index
    %c0_157 = arith.constant 0 : index
    %147 = vector.load %arg15[%c40, %c0_157] : memref<108x384xf32, #tpu.memory_space<vmem>>, vector<4x384xf32>
    tpu.vector_store %arg15[%c40, %c0_157], %146 {strides = array<i32>} : memref<108x384xf32, #tpu.memory_space<vmem>>, vector<4x384xf32>,
    %c52 = arith.constant 52 : index
    %c0_158 = arith.constant 0 : index
    %148 = vector.load %arg15[%c52, %c0_158] : memref<108x384xf32, #tpu.memory_space<vmem>>, vector<4x384xf32>
    tpu.vector_store %arg15[%c52, %c0_158], %121 {strides = array<i32>} : memref<108x384xf32, #tpu.memory_space<vmem>>, vector<4x384xf32>,
    %c383_i32_159 = arith.constant 383 : i32
    %149 = tpu.dynamic_rotate %121 by %c383_i32_159 dim 1 : vector<4x384xf32>, i32 -> vector<4x384xf32>
    %c64 = arith.constant 64 : index
    %c0_160 = arith.constant 0 : index
    %150 = vector.load %arg15[%c64, %c0_160] : memref<108x384xf32, #tpu.memory_space<vmem>>, vector<4x384xf32>
    tpu.vector_store %arg15[%c64, %c0_160], %149 {strides = array<i32>} : memref<108x384xf32, #tpu.memory_space<vmem>>, vector<4x384xf32>,
    %c367_i32_161 = arith.constant 367 : i32
    %151 = tpu.dynamic_rotate %121 by %c367_i32_161 dim 1 : vector<4x384xf32>, i32 -> vector<4x384xf32>
    %c76 = arith.constant 76 : index
    %c0_162 = arith.constant 0 : index
    %152 = vector.load %arg15[%c76, %c0_162] : memref<108x384xf32, #tpu.memory_space<vmem>>, vector<4x384xf32>
    tpu.vector_store %arg15[%c76, %c0_162], %151 {strides = array<i32>} : memref<108x384xf32, #tpu.memory_space<vmem>>, vector<4x384xf32>,
    %c366_i32_163 = arith.constant 366 : i32
    %153 = tpu.dynamic_rotate %121 by %c366_i32_163 dim 1 : vector<4x384xf32>, i32 -> vector<4x384xf32>
    %c88 = arith.constant 88 : index
    %c0_164 = arith.constant 0 : index
    %154 = vector.load %arg15[%c88, %c0_164] : memref<108x384xf32, #tpu.memory_space<vmem>>, vector<4x384xf32>
    tpu.vector_store %arg15[%c88, %c0_164], %153 {strides = array<i32>} : memref<108x384xf32, #tpu.memory_space<vmem>>, vector<4x384xf32>,
    %c365_i32_165 = arith.constant 365 : i32
    %155 = tpu.dynamic_rotate %121 by %c365_i32_165 dim 1 : vector<4x384xf32>, i32 -> vector<4x384xf32>
    %c100 = arith.constant 100 : index
    %c0_166 = arith.constant 0 : index
    %156 = vector.load %arg15[%c100, %c0_166] : memref<108x384xf32, #tpu.memory_space<vmem>>, vector<4x384xf32>
    tpu.vector_store %arg15[%c100, %c0_166], %155 {strides = array<i32>} : memref<108x384xf32, #tpu.memory_space<vmem>>, vector<4x384xf32>,
    %c19_i32_167 = arith.constant 19 : i32
    %157 = tpu.dynamic_rotate %8 by %c19_i32_167 dim 1 : vector<4x384xf32>, i32 -> vector<4x384xf32>
    %c8_168 = arith.constant 8 : index
    %c0_169 = arith.constant 0 : index
    %158 = vector.load %arg15[%c8_168, %c0_169] : memref<108x384xf32, #tpu.memory_space<vmem>>, vector<4x384xf32>
    tpu.vector_store %arg15[%c8_168, %c0_169], %157 {strides = array<i32>} : memref<108x384xf32, #tpu.memory_space<vmem>>, vector<4x384xf32>,
    %c18_i32_170 = arith.constant 18 : i32
    %159 = tpu.dynamic_rotate %8 by %c18_i32_170 dim 1 : vector<4x384xf32>, i32 -> vector<4x384xf32>
    %c20_171 = arith.constant 20 : index
    %c0_172 = arith.constant 0 : index
    %160 = vector.load %arg15[%c20_171, %c0_172] : memref<108x384xf32, #tpu.memory_space<vmem>>, vector<4x384xf32>
    tpu.vector_store %arg15[%c20_171, %c0_172], %159 {strides = array<i32>} : memref<108x384xf32, #tpu.memory_space<vmem>>, vector<4x384xf32>,
    %c17_i32_173 = arith.constant 17 : i32
    %161 = tpu.dynamic_rotate %8 by %c17_i32_173 dim 1 : vector<4x384xf32>, i32 -> vector<4x384xf32>
    %c32_174 = arith.constant 32 : index
    %c0_175 = arith.constant 0 : index
    %162 = vector.load %arg15[%c32_174, %c0_175] : memref<108x384xf32, #tpu.memory_space<vmem>>, vector<4x384xf32>
    tpu.vector_store %arg15[%c32_174, %c0_175], %161 {strides = array<i32>} : memref<108x384xf32, #tpu.memory_space<vmem>>, vector<4x384xf32>,
    %c1_i32_176 = arith.constant 1 : i32
    %163 = tpu.dynamic_rotate %8 by %c1_i32_176 dim 1 : vector<4x384xf32>, i32 -> vector<4x384xf32>
    %c44 = arith.constant 44 : index
    %c0_177 = arith.constant 0 : index
    %164 = vector.load %arg15[%c44, %c0_177] : memref<108x384xf32, #tpu.memory_space<vmem>>, vector<4x384xf32>
    tpu.vector_store %arg15[%c44, %c0_177], %163 {strides = array<i32>} : memref<108x384xf32, #tpu.memory_space<vmem>>, vector<4x384xf32>,
    %c56 = arith.constant 56 : index
    %c0_178 = arith.constant 0 : index
    %165 = vector.load %arg15[%c56, %c0_178] : memref<108x384xf32, #tpu.memory_space<vmem>>, vector<4x384xf32>
    tpu.vector_store %arg15[%c56, %c0_178], %8 {strides = array<i32>} : memref<108x384xf32, #tpu.memory_space<vmem>>, vector<4x384xf32>,
    %c383_i32_179 = arith.constant 383 : i32
    %166 = tpu.dynamic_rotate %8 by %c383_i32_179 dim 1 : vector<4x384xf32>, i32 -> vector<4x384xf32>
    %c68 = arith.constant 68 : index
    %c0_180 = arith.constant 0 : index
    %167 = vector.load %arg15[%c68, %c0_180] : memref<108x384xf32, #tpu.memory_space<vmem>>, vector<4x384xf32>
    tpu.vector_store %arg15[%c68, %c0_180], %166 {strides = array<i32>} : memref<108x384xf32, #tpu.memory_space<vmem>>, vector<4x384xf32>,
    %c367_i32_181 = arith.constant 367 : i32
    %168 = tpu.dynamic_rotate %8 by %c367_i32_181 dim 1 : vector<4x384xf32>, i32 -> vector<4x384xf32>
    %c80 = arith.constant 80 : index
    %c0_182 = arith.constant 0 : index
    %169 = vector.load %arg15[%c80, %c0_182] : memref<108x384xf32, #tpu.memory_space<vmem>>, vector<4x384xf32>
    tpu.vector_store %arg15[%c80, %c0_182], %168 {strides = array<i32>} : memref<108x384xf32, #tpu.memory_space<vmem>>, vector<4x384xf32>,
    %c366_i32_183 = arith.constant 366 : i32
    %170 = tpu.dynamic_rotate %8 by %c366_i32_183 dim 1 : vector<4x384xf32>, i32 -> vector<4x384xf32>
    %c92 = arith.constant 92 : index
    %c0_184 = arith.constant 0 : index
    %171 = vector.load %arg15[%c92, %c0_184] : memref<108x384xf32, #tpu.memory_space<vmem>>, vector<4x384xf32>
    tpu.vector_store %arg15[%c92, %c0_184], %170 {strides = array<i32>} : memref<108x384xf32, #tpu.memory_space<vmem>>, vector<4x384xf32>,
    %c365_i32_185 = arith.constant 365 : i32
    %172 = tpu.dynamic_rotate %8 by %c365_i32_185 dim 1 : vector<4x384xf32>, i32 -> vector<4x384xf32>
    %c104 = arith.constant 104 : index
    %c0_186 = arith.constant 0 : index
    %173 = vector.load %arg15[%c104, %c0_186] : memref<108x384xf32, #tpu.memory_space<vmem>>, vector<4x384xf32>
    tpu.vector_store %arg15[%c104, %c0_186], %172 {strides = array<i32>} : memref<108x384xf32, #tpu.memory_space<vmem>>, vector<4x384xf32>,
    %c0_187 = arith.constant 0 : index
    %c0_188 = arith.constant 0 : index
    %174 = vector.load %arg9[%c0_187, %c0_188] : memref<8x108xf32, #tpu.memory_space<vmem>>, vector<8x108xf32>
    %c0_189 = arith.constant 0 : index
    %c0_190 = arith.constant 0 : index
    %175 = vector.load %arg15[%c0_189, %c0_190] : memref<108x384xf32, #tpu.memory_space<vmem>>, vector<108x384xf32>
    %cst_191 = arith.constant dense<0.000000e+00> : vector<8x384xf32>
    %176 = tpu.matmul %174, %175, %cst_191 {dimension_numbers = #tpu.dot_dimension_numbers<[1], [0], [0], [1], [0, 0, 1, 1], [], []>} : vector<8x108xf32>, vector<108x384xf32>, vector<8x384xf32> -> vector<8x384xf32>
    %c0_192 = arith.constant 0 : index
    %c0_193 = arith.constant 0 : index
    %177 = vector.load %arg11[%c0_192, %c0_193] : memref<8x1xf32, #tpu.memory_space<vmem>>, vector<8x1xf32>
    %178 = vector.broadcast %177 : vector<8x1xf32> to vector<8x384xf32>
    %179 = arith.addf %176, %178 : vector<8x384xf32>
    %cst_194 = arith.constant 0.000000e+00 : f32
    %180 = vector.broadcast %cst_194 : f32 to vector<8x384xf32>
    %181 = arith.maximumf %179, %180 : vector<8x384xf32>
    %182 = vector.broadcast %0 : vector<1x384xf32> to vector<8x384xf32>
    %183 = arith.mulf %181, %182 : vector<8x384xf32>
    %c0_195 = arith.constant 0 : index
    %c0_196 = arith.constant 0 : index
    %184 = vector.load %arg10[%c0_195, %c0_196] : memref<4x72xf32, #tpu.memory_space<vmem>>, vector<4x72xf32>
    %c19_i32_197 = arith.constant 19 : i32
    %185 = tpu.dynamic_rotate %183 by %c19_i32_197 dim 1 : vector<8x384xf32>, i32 -> vector<8x384xf32>
    %c0_198 = arith.constant 0 : index
    %c0_199 = arith.constant 0 : index
    %186 = vector.load %arg15[%c0_198, %c0_199] : memref<108x384xf32, #tpu.memory_space<vmem>>, vector<8x384xf32>
    tpu.vector_store %arg15[%c0_198, %c0_199], %185 {strides = array<i32>} : memref<108x384xf32, #tpu.memory_space<vmem>>, vector<8x384xf32>,
    %c18_i32_200 = arith.constant 18 : i32
    %187 = tpu.dynamic_rotate %183 by %c18_i32_200 dim 1 : vector<8x384xf32>, i32 -> vector<8x384xf32>
    %c8_201 = arith.constant 8 : index
    %c0_202 = arith.constant 0 : index
    %188 = vector.load %arg15[%c8_201, %c0_202] : memref<108x384xf32, #tpu.memory_space<vmem>>, vector<8x384xf32>
    tpu.vector_store %arg15[%c8_201, %c0_202], %187 {strides = array<i32>} : memref<108x384xf32, #tpu.memory_space<vmem>>, vector<8x384xf32>,
    %c17_i32_203 = arith.constant 17 : i32
    %189 = tpu.dynamic_rotate %183 by %c17_i32_203 dim 1 : vector<8x384xf32>, i32 -> vector<8x384xf32>
    %c16_204 = arith.constant 16 : index
    %c0_205 = arith.constant 0 : index
    %190 = vector.load %arg15[%c16_204, %c0_205] : memref<108x384xf32, #tpu.memory_space<vmem>>, vector<8x384xf32>
    tpu.vector_store %arg15[%c16_204, %c0_205], %189 {strides = array<i32>} : memref<108x384xf32, #tpu.memory_space<vmem>>, vector<8x384xf32>,
    %c1_i32_206 = arith.constant 1 : i32
    %191 = tpu.dynamic_rotate %183 by %c1_i32_206 dim 1 : vector<8x384xf32>, i32 -> vector<8x384xf32>
    %c24_207 = arith.constant 24 : index
    %c0_208 = arith.constant 0 : index
    %192 = vector.load %arg15[%c24_207, %c0_208] : memref<108x384xf32, #tpu.memory_space<vmem>>, vector<8x384xf32>
    tpu.vector_store %arg15[%c24_207, %c0_208], %191 {strides = array<i32>} : memref<108x384xf32, #tpu.memory_space<vmem>>, vector<8x384xf32>,
    %c32_209 = arith.constant 32 : index
    %c0_210 = arith.constant 0 : index
    %193 = vector.load %arg15[%c32_209, %c0_210] : memref<108x384xf32, #tpu.memory_space<vmem>>, vector<8x384xf32>
    tpu.vector_store %arg15[%c32_209, %c0_210], %183 {strides = array<i32>} : memref<108x384xf32, #tpu.memory_space<vmem>>, vector<8x384xf32>,
    %c383_i32_211 = arith.constant 383 : i32
    %194 = tpu.dynamic_rotate %183 by %c383_i32_211 dim 1 : vector<8x384xf32>, i32 -> vector<8x384xf32>
    %c40_212 = arith.constant 40 : index
    %c0_213 = arith.constant 0 : index
    %195 = vector.load %arg15[%c40_212, %c0_213] : memref<108x384xf32, #tpu.memory_space<vmem>>, vector<8x384xf32>
    tpu.vector_store %arg15[%c40_212, %c0_213], %194 {strides = array<i32>} : memref<108x384xf32, #tpu.memory_space<vmem>>, vector<8x384xf32>,
    %c367_i32_214 = arith.constant 367 : i32
    %196 = tpu.dynamic_rotate %183 by %c367_i32_214 dim 1 : vector<8x384xf32>, i32 -> vector<8x384xf32>
    %c48_215 = arith.constant 48 : index
    %c0_216 = arith.constant 0 : index
    %197 = vector.load %arg15[%c48_215, %c0_216] : memref<108x384xf32, #tpu.memory_space<vmem>>, vector<8x384xf32>
    tpu.vector_store %arg15[%c48_215, %c0_216], %196 {strides = array<i32>} : memref<108x384xf32, #tpu.memory_space<vmem>>, vector<8x384xf32>,
    %c366_i32_217 = arith.constant 366 : i32
    %198 = tpu.dynamic_rotate %183 by %c366_i32_217 dim 1 : vector<8x384xf32>, i32 -> vector<8x384xf32>
    %c56_218 = arith.constant 56 : index
    %c0_219 = arith.constant 0 : index
    %199 = vector.load %arg15[%c56_218, %c0_219] : memref<108x384xf32, #tpu.memory_space<vmem>>, vector<8x384xf32>
    tpu.vector_store %arg15[%c56_218, %c0_219], %198 {strides = array<i32>} : memref<108x384xf32, #tpu.memory_space<vmem>>, vector<8x384xf32>,
    %c365_i32_220 = arith.constant 365 : i32
    %200 = tpu.dynamic_rotate %183 by %c365_i32_220 dim 1 : vector<8x384xf32>, i32 -> vector<8x384xf32>
    %c64_221 = arith.constant 64 : index
    %c0_222 = arith.constant 0 : index
    %201 = vector.load %arg15[%c64_221, %c0_222] : memref<108x384xf32, #tpu.memory_space<vmem>>, vector<8x384xf32>
    tpu.vector_store %arg15[%c64_221, %c0_222], %200 {strides = array<i32>} : memref<108x384xf32, #tpu.memory_space<vmem>>, vector<8x384xf32>,
    %c0_223 = arith.constant 0 : index
    %c0_224 = arith.constant 0 : index
    %202 = vector.load %arg15[%c0_223, %c0_224] : memref<108x384xf32, #tpu.memory_space<vmem>>, vector<72x384xf32>
    %cst_225 = arith.constant dense<0.000000e+00> : vector<4x384xf32>
    %203 = tpu.matmul %184, %202, %cst_225 {dimension_numbers = #tpu.dot_dimension_numbers<[1], [0], [0], [1], [0, 0, 1, 1], [], []>} : vector<4x72xf32>, vector<72x384xf32>, vector<4x384xf32> -> vector<4x384xf32>
    %c0_226 = arith.constant 0 : index
    %c0_227 = arith.constant 0 : index
    %204 = vector.load %arg12[%c0_226, %c0_227] : memref<4x1xf32, #tpu.memory_space<vmem>>, vector<4x1xf32>
    %205 = vector.broadcast %204 : vector<4x1xf32> to vector<4x384xf32>
    %206 = arith.addf %203, %205 : vector<4x384xf32>
    %207 = arith.addf %206, %6 : vector<4x384xf32>
    %c0_228 = arith.constant 0 : index
    %c0_229 = arith.constant 0 : index
    %c0_230 = arith.constant 0 : index
    %208 = vector.load %arg14[%c0_228, %c0_229, %c0_230] : memref<1x4x384xf32, #tpu.memory_space<vmem>>, vector<1x4x384xf32>
    %209 = vector.shape_cast %208 : vector<1x4x384xf32> to vector<4x384xf32>
    %210 = vector.shape_cast %207 : vector<4x384xf32> to vector<1x4x384xf32>
    tpu.vector_store %arg14[%c0_228, %c0_229, %c0_230], %210 {strides = array<i32>} : memref<1x4x384xf32, #tpu.memory_space<vmem>>, vector<1x4x384xf32>,
    return
  }
  func.func @transform_0(%arg0: i32) -> (i32, i32, i32) {
    %c0_i32 = arith.constant 0 : i32
    %c0_i32_0 = arith.constant 0 : i32
    %c0_i32_1 = arith.constant 0 : i32
    return %arg0, %c0_i32, %c0_i32_0 : i32, i32, i32
  }
  func.func @transform_1(%arg0: i32) -> (i32, i32, i32) {
    %c0_i32 = arith.constant 0 : i32
    %c0_i32_0 = arith.constant 0 : i32
    %c0_i32_1 = arith.constant 0 : i32
    return %arg0, %c0_i32, %c0_i32_0 : i32, i32, i32
  }
  func.func @transform_2(%arg0: i32) -> (i32, i32, i32) {
    %c0_i32 = arith.constant 0 : i32
    %c0_i32_0 = arith.constant 0 : i32
    %c0_i32_1 = arith.constant 0 : i32
    return %arg0, %c0_i32, %c0_i32_0 : i32, i32, i32
  }
  func.func @transform_3(%arg0: i32) -> (i32, i32, i32) {
    %c0_i32 = arith.constant 0 : i32
    %c0_i32_0 = arith.constant 0 : i32
    %c0_i32_1 = arith.constant 0 : i32
    return %arg0, %c0_i32, %c0_i32_0 : i32, i32, i32
  }
  func.func @transform_4(%arg0: i32) -> (i32, i32) {
    %c0_i32 = arith.constant 0 : i32
    %c0_i32_0 = arith.constant 0 : i32
    %c0_i32_1 = arith.constant 0 : i32
    return %c0_i32, %c0_i32_0 : i32, i32
  }
  func.func @transform_5(%arg0: i32) -> (i32, i32) {
    %c0_i32 = arith.constant 0 : i32
    %c0_i32_0 = arith.constant 0 : i32
    %c0_i32_1 = arith.constant 0 : i32
    return %c0_i32, %c0_i32_0 : i32, i32
  }
  func.func @transform_6(%arg0: i32) -> (i32, i32) {
    %c0_i32 = arith.constant 0 : i32
    %c0_i32_0 = arith.constant 0 : i32
    %c0_i32_1 = arith.constant 0 : i32
    return %c0_i32, %c0_i32_0 : i32, i32
  }
  func.func @transform_7(%arg0: i32) -> (i32, i32) {
    %c0_i32 = arith.constant 0 : i32
    %c0_i32_0 = arith.constant 0 : i32
    %c0_i32_1 = arith.constant 0 : i32
    return %c0_i32, %c0_i32_0 : i32, i32
  }
  func.func @transform_8(%arg0: i32) -> (i32, i32) {
    %c0_i32 = arith.constant 0 : i32
    %c0_i32_0 = arith.constant 0 : i32
    %c0_i32_1 = arith.constant 0 : i32
    return %c0_i32, %c0_i32_0 : i32, i32
  }
  func.func @transform_9(%arg0: i32) -> (i32, i32) {
    %c0_i32 = arith.constant 0 : i32
    %c0_i32_0 = arith.constant 0 : i32
    %c0_i32_1 = arith.constant 0 : i32
    return %c0_i32, %c0_i32_0 : i32, i32
  }
  func.func @transform_10(%arg0: i32) -> (i32, i32) {
    %c0_i32 = arith.constant 0 : i32
    %c0_i32_0 = arith.constant 0 : i32
    %c0_i32_1 = arith.constant 0 : i32
    return %c0_i32, %c0_i32_0 : i32, i32
  }
  func.func @transform_11(%arg0: i32) -> (i32, i32) {
    %c0_i32 = arith.constant 0 : i32
    %c0_i32_0 = arith.constant 0 : i32
    %c0_i32_1 = arith.constant 0 : i32
    return %c0_i32, %c0_i32_0 : i32, i32
  }
  func.func @transform_12(%arg0: i32) -> (i32, i32) {
    %c0_i32 = arith.constant 0 : i32
    %c0_i32_0 = arith.constant 0 : i32
    %c0_i32_1 = arith.constant 0 : i32
    return %c0_i32, %c0_i32_0 : i32, i32
  }
  func.func @transform_13(%arg0: i32) -> (i32, i32, i32) {
    %c0_i32 = arith.constant 0 : i32
    %c0_i32_0 = arith.constant 0 : i32
    %c0_i32_1 = arith.constant 0 : i32
    return %arg0, %c0_i32, %c0_i32_0 : i32, i32, i32
  }
}

</mosaic_0001>

<bundles_post_ra>
// kernel: _lambda_.1
= control target key start
LH: loop header
LB: loop body
LE: loop exit
PB: predicated region body
PF: predicated region fallthrough
CT: control target
= control target key end

     0   :  { %s3287_s25 = smov 0   ;;  %s4314_s0 = inlined_call_operand.vmem [shape: f32[2,4,384], index: 0, kind: input, shape index: {}]   ;;  %s4315_s1 = inlined_call_operand.vmem [shape: f32[2,4,384], index: 1, kind: input, shape index: {}]   ;;  %s4316_s2 = inlined_call_operand.vmem [shape: f32[2,4,384], index: 2, kind: input, shape index: {}]   ;;  %s4317_s3 = inlined_call_operand.vmem [shape: f32[2,4,384], index: 3, kind: input, shape index: {}]   ;;  %s4318_s4 = inlined_call_operand.vmem [shape: f32[4,36], index: 4, kind: input, shape index: {}, may-alias: {4,7}]   ;;  %s4319_s5 = inlined_call_operand.vmem [shape: f32[4,36], index: 5, kind: input, shape index: {}]   ;;  %s4320_s6 = inlined_call_operand.vmem [shape: f32[4,36], index: 6, kind: input, shape index: {}]   ;;  %s4321_s7 = inlined_call_operand.vmem [shape: f32[4,36], index: 7, kind: input, shape index: {}, may-alias: {4,7}]   ;;  %s4322_s8 = inlined_call_operand.vmem [shape: f32[8,108], index: 8, kind: input, shape index: {}]   ;;  %s4323_s9 = inlined_call_operand.vmem [shape: f32[4,72], index: 9, kind: input, shape index: {}]   ;;  %s4324_s10 = inlined_call_operand.vmem [shape: f32[8,1], index: 10, kind: input, shape index: {}]   ;;  %s4325_s11 = inlined_call_operand.vmem [shape: f32[4,1], index: 11, kind: input, shape index: {}]   ;;  %s4326_s12 = inlined_call_operand.vmem [shape: f32[1,384], index: 12, kind: input, shape index: {}]   ;;  %s4327_s13 = inlined_call_operand.vmem [shape: f32[2,4,384], index: 13, kind: output, shape index: {}]  }
   0x1 LB: > { %s2834_s26 = sadd.s32 4294967295, %s3202_s25   ;;  %p2838_p0 = scmp.ge.s32.totalorder %s3202_s25, 1  ;;  %s3202_s25 = sphi %s3287_s25, %s23_s25  }
   0x2   : > { %p417_p1 = scmp.lt.s32.totalorder %s3202_s25, 3 }
   0x4   : > { %p418_p2 = pnand %p2838_p0, %p417_p1 }
   0x5   : > { %p476_p3 = scmp.lt.s32.totalorder (!%p418_p2), %s2834_s26, 1  ;;  %s3204_s14 = smov (!%p418_p2), 1   ;;  %v3208_v3 = vmov (!%p418_p2), 0.0|0.0   ;;  %v3213_v4 = vmov (!%p418_p2), 0.0   ;;  %vm3214_vm0 = vmmov (!%p418_p2), 0   ;;  %v520_v5 = vlaneseq (!%p418_p2) }
   0x6   : > { %421 = sbr.rel (%p418_p2) target bundleno = 2384 (0x950), region = 72  ;;  %s3205_s15 = smov (!%p418_p2), 18   ;;  %3034 = vmatprep.subr.bf16.mxu1 (!%p418_p2), %v3208_v3  ;;  %752 = vmatprep.mubr.f32.mxu0 (!%p418_p2), %v3213_v4  ;;  %vm678_vm9 = vcmask (!%p418_p2), 1043456   ;;  %vm674_vm10 = vcmask (!%p418_p2), 293888   ;;  %vm3216_vm11 = vmmov (!%p418_p2), 1   ;;  %vm2293_vm13 = vcmask (!%p418_p2), 883712  }
   0x7   : > { %s3206_s16 = smov (!%p418_p2), 19   ;;  %s3207_s17 = smov (!%p418_p2), 17   ;;  %2932 = vmatprep.mubr.msk.f32.mxu1 (!%p418_p2), %vm3214_vm0, %v3213_v4  ;;  %v3354_v6 = vand.u32 (!%p418_p2), 127, %v520_v5  ;;  %vm3107_vm12 = vmpackc.low (!%p418_p2), %vm678_vm9, %vm3216_vm11  ;;  %vm2586_vm14 = vcmask (!%p418_p2), 588800  }
   0x8   : > { %s3209_s18 = smov (!%p418_p2), 127   ;;  %s3210_s19 = smov (!%p418_p2), 110  }
   0x9   : > { %s3211_s20 = smov (!%p418_p2), 111   ;;  %s3212_s21 = smov (!%p418_p2), 109   ;;  %vm570_vm1 = vcmp.lt.s32.totalorder (!%p418_p2), %v3354_v6, 1  ;;  %vm535_vm2 = vcmp.lt.s32.totalorder (!%p418_p2), %v3354_v6, 18  ;;  %vm522_vm3 = vcmp.lt.s32.totalorder (!%p418_p2), %v3354_v6, 19  ;;  %vm557_vm4 = vcmp.lt.s32.totalorder (!%p418_p2), %v3354_v6, 17 }
   0xa   : > { %vm595_vm5 = vcmp.lt.s32.totalorder (!%p418_p2), %v3354_v6, 127  ;;  %vm630_vm6 = vcmp.lt.s32.totalorder (!%p418_p2), %v3354_v6, 110  ;;  %vm617_vm7 = vcmp.lt.s32.totalorder (!%p418_p2), %v3354_v6, 111  ;;  %vm652_vm8 = vcmp.lt.s32.totalorder (!%p418_p2), %v3354_v6, 109 }
   0xd   : > { %s4329_s26 = smov (!%p476_p3, %s2834_s26), 1 }
   0xe   : > { %s3295_s27 = smul.u32 12, %s4329_s26 }
  0x10   : > { %s480_s30 = scalar_lea.vmem %s4314_s0, %s3295_s27  ;;  %s3753_s24 = scalar_lea.vmem %s4316_s2, %s3295_s27 }
  0x11   : > { %v3301_v0 = vld [vmem:[%s480_s30] sm:$0xff]  ;;  %v3303_v1 = vld [vmem:[%s480_s30 + $0x8] sm:$0xf]  ;;  %s3496_s30 = scalar_lea.vmem %s4317_s3, %s3295_s27 }
  0x12   : > { %564 = vrot.lane.b32.xlu1 %v3301_v0, %s3204_s14  ;;  %586 = vst [vmem:[#allocation2 + $0x30] sm:$0xf] %v3301_v0  ;;  %529 = vrot.lane.b32.xlu0 %v3301_v0, %s3205_s15  ;;  %588 = vst [vmem:[#allocation2 + $0x40] sm:$0xf] %v3303_v1  ;;  %v512_v2 = vcombine.high %v3301_v0, %v3301_v0 }
  0x14   : > { %587 = vst [vmem:[#allocation2 + $0x38] sm:$0xf] %v512_v2 }
  0x16   : > { %568 = vrot.lane.b32.xlu1 %v3303_v1, %s3204_s14  ;;  %533 = vrot.lane.b32.xlu0 %v3303_v1, %s3205_s15 }
  0x1a   : > { %566 = vrot.lane.b32.xlu1 %v512_v2, %s3204_s14  ;;  %531 = vrot.lane.b32.xlu0 %v512_v2, %s3205_s15 }
  0x1e   : > { %516 = vrot.lane.b32.xlu1 %v512_v2, %s3206_s16  ;;  %514 = vrot.lane.b32.xlu0 %v3301_v0, %s3206_s16 }
  0x22   : > { %553 = vrot.lane.b32.xlu1 %v512_v2, %s3207_s17  ;;  %551 = vrot.lane.b32.xlu0 %v3301_v0, %s3207_s17 }
  0x26   : > { %555 = vrot.lane.b32.xlu1 %v3303_v1, %s3207_s17  ;;  %518 = vrot.lane.b32.xlu0 %v3303_v1, %s3206_s16 }
  0x2a   : > { %593 = vrot.lane.b32.xlu1 %v3303_v1, %s3209_s18  ;;  %591 = vrot.lane.b32.xlu0 %v512_v2, %s3209_s18 }
  0x2e   : > { %628 = vrot.lane.b32.xlu1 %v3303_v1, %s3210_s19  ;;  %626 = vrot.lane.b32.xlu0 %v512_v2, %s3210_s19 }
  0x32   : > { %624 = vrot.lane.b32.xlu1 %v3301_v0, %s3210_s19  ;;  %589 = vrot.lane.b32.xlu0 %v3301_v0, %s3209_s18 }
  0x36   : > { %615 = vrot.lane.b32.xlu1 %v3303_v1, %s3211_s20  ;;  %613 = vrot.lane.b32.xlu0 %v512_v2, %s3211_s20 }
  0x3a   : > { %648 = vrot.lane.b32.xlu1 %v512_v2, %s3212_s21  ;;  %611 = vrot.lane.b32.xlu0 %v3301_v0, %s3211_s20 }
  0x3e   : > { %646 = vrot.lane.b32.xlu1 %v3301_v0, %s3212_s21  ;;  %650 = vrot.lane.b32.xlu0 %v3303_v1, %s3212_s21 }
  0x84   : > { %v565_v7 = vpop.permute.xlu1 %564  ;;  %v530_v8 = vpop.permute.xlu0 %529 }
  0x88   : > { %v569_v9 = vpop.permute.xlu1 %568  ;;  %v534_v10 = vpop.permute.xlu0 %533 }
  0x89   : > { %v573_v11 = vsel %vm570_vm1, %v569_v9, %v565_v7  ;;  %v538_v12 = vsel %vm535_vm2, %v534_v10, %v530_v8 }
  0x8a   : > { %v577_v13 = vrot.slane %v573_v11, 4  ;;  %v542_v14 = vrot.slane %v538_v12, 4 }
  0x8c   : > { %583 = vst [vmem:[#allocation2 + $0x18] sm:$0xf0] %v577_v13  ;;  %548 = vst [vmem:[#allocation2] sm:$0xf0] %v542_v14  ;;  %v567_v15 = vpop.permute.xlu1 %566  ;;  %v532_v16 = vpop.permute.xlu0 %531 }
  0x8d   : > { %v571_v17 = vsel %vm570_vm1, %v567_v15, %v569_v9  ;;  %v572_v18 = vsel %vm570_vm1, %v565_v7, %v567_v15  ;;  %v536_v19 = vsel %vm535_vm2, %v532_v16, %v534_v10  ;;  %v537_v20 = vsel %vm535_vm2, %v530_v8, %v532_v16 }
  0x8e   : > { %v578_v21 = vrot.slane %v572_v18, 4  ;;  %v579_v22 = vrot.slane %v571_v17, 4  ;;  %v543_v23 = vrot.slane %v537_v20, 4  ;;  %v544_v24 = vrot.slane %v536_v19, 4 }
  0x90   : > { %584 = vst [vmem:[#allocation2 + $0x20] sm:$0xf0] %v578_v21  ;;  %585 = vst [vmem:[#allocation2 + $0x28] sm:$0xf0] %v579_v22  ;;  %v517_v25 = vpop.permute.xlu1 %516  ;;  %v515_v26 = vpop.permute.xlu0 %514 }
  0x91   : > { %549 = vst [vmem:[#allocation2 + $0x8] sm:$0xf0] %v543_v23  ;;  %550 = vst [vmem:[#allocation2 + $0x10] sm:$0xf0] %v544_v24  ;;  %v524_v27 = vsel %vm522_vm3, %v515_v26, %v517_v25 }
  0x92   : > { %527 = vst [vmem:[#allocation2 + $0x8] sm:$0xf] %v524_v27 }
  0x94   : > { %v554_v28 = vpop.permute.xlu1 %553  ;;  %v552_v29 = vpop.permute.xlu0 %551 }
  0x95   : > { %v559_v30 = vsel %vm557_vm4, %v552_v29, %v554_v28 }
  0x96   : > { %562 = vst [vmem:[#allocation2 + $0x20] sm:$0xf] %v559_v30 }
  0x98   : > { %v556_v31 = vpop.permute.xlu1 %555  ;;  %v519_v32 = vpop.permute.xlu0 %518 }
  0x99   : > { %v558_v33 = vsel %vm557_vm4, %v554_v28, %v556_v31  ;;  %v560_v34 = vsel %vm557_vm4, %v556_v31, %v552_v29  ;;  %v523_v35 = vsel %vm522_vm3, %v517_v25, %v519_v32  ;;  %v525_v36 = vsel %vm522_vm3, %v519_v32, %v515_v26  ;;  %v660_v40 = vld [vmem:[#allocation2 + $0x8] sm:$0xff]  ;;  %v510_v29 = vld [vmem:[%s4318_s4] sm:$0xf] }
  0x9a   : > { %561 = vst [vmem:[#allocation2 + $0x18] sm:$0xf] %v560_v34  ;;  %563 = vst [vmem:[#allocation2 + $0x28] sm:$0xf] %v558_v33  ;;  %v831_v31 = vshrl.u32 %v520_v5, 7 }
  0x9b   : > { %526 = vst [vmem:[#allocation2] sm:$0xf] %v525_v36  ;;  %528 = vst [vmem:[#allocation2 + $0x10] sm:$0xf] %v523_v35  ;;  %v501_v34 = vld [vmem:[%s4326_s12] sm:$0x7] }
  0x9c   : > { %v594_v37 = vpop.permute.xlu1 %593  ;;  %v592_v38 = vpop.permute.xlu0 %591  ;;  %v840_v32 = vsub.s32 2, %v831_v31  ;;  %v832_v33 = vsub.s32 0, %v831_v31  ;;  %v836_v35 = vsub.s32 1, %v831_v31 }
  0x9d   : > { %v596_v39 = vsel %vm595_vm5, %v592_v38, %v594_v37  ;;  %v663_v41 = vld [vmem:[#allocation2 + $0x20] sm:$0xff] }
  0x9e   : > { %v603_v42 = vrot.slane %v596_v39, 4  ;;  %v3026_v43 = vpack.c.bf16 %v663_v41, %v660_v40  ;;  %v3430_v36 = vrot.slane %v501_v34, %v840_v32 }
  0xa0   : > { %609 = vst [vmem:[#allocation2 + $0x38] sm:$0xf0] %v603_v42  ;;  %v629_v44 = vpop.permute.xlu1 %628  ;;  %3027 = vmatprep.subr.bf16.mxu0 %v3026_v43  ;;  %v627_v45 = vpop.permute.xlu0 %626 }
  0xa1   : > { %v631_v46 = vsel %vm630_vm6, %v627_v45, %v629_v44  ;;  %v662_v48 = vld [vmem:[#allocation2 + $0x18] sm:$0xff]  ;;  %v664_v52 = vld [vmem:[#allocation2 + $0x28] sm:$0xff] }
  0xa2   : > { %v659_v47 = vld [vmem:[#allocation2] sm:$0xff]  ;;  %v661_v49 = vld [vmem:[#allocation2 + $0x10] sm:$0xff]  ;;  %v638_v50 = vrot.slane %v631_v46, 4 }
  0xa3   : > { %v3028_v51 = vpack.c.bf16 %v662_v48, %v659_v47  ;;  %v3035_v53 = vpack.c.bf16 %v664_v52, %v661_v49 }
  0xa4   : > { %644 = vst [vmem:[#allocation2 + $0x50] sm:$0xf0] %v638_v50  ;;  %v625_v54 = vpop.permute.xlu1 %624  ;;  %v590_v55 = vpop.permute.xlu0 %589 }
  0xa5   : > { %3029 = vmatpush1.bf16.msra.mxu0 %v3028_v51  ;;  %v632_v56 = vsel %vm630_vm6, %v625_v54, %v627_v45  ;;  %v633_v57 = vsel %vm630_vm6, %v629_v44, %v625_v54  ;;  %3036 = vmatpush3.bf16.msra.mxu1 %v3035_v53  ;;  %v597_v58 = vsel %vm595_vm5, %v590_v55, %v592_v38  ;;  %v3503_v45 = vld [vmem:[%s3496_s30] sm:$0xff] }
  0xa6   : > { %v598_v59 = vsel %vm595_vm5, %v594_v37, %v590_v55  ;;  %v637_v60 = vrot.slane %v632_v56, 4  ;;  %v639_v61 = vrot.slane %v633_v57, 4  ;;  %v602_v62 = vrot.slane %v597_v58, 4  ;;  %3037 = vmatprep.subr.bf16.mxu1 %v3208_v3  ;;  %2175 = vst [vmem:[#allocation2 + $0xa8] sm:$0xf] %v3503_v45 }
  0xa7   : > { %v604_v63 = vrot.slane %v598_v59, 4  ;;  %v666_v18 = vld [vmem:[#allocation2 + $0x38] sm:$0xff]  ;;  %v3432_v37 = vrot.slane %v501_v34, %v832_v33  ;;  %v3434_v38 = vrot.slane %v501_v34, %v836_v35 }
  0xa8   : > { %643 = vst [vmem:[#allocation2 + $0x48] sm:$0xf0] %v637_v60  ;;  %645 = vst [vmem:[#allocation2 + $0x58] sm:$0xf0] %v639_v61  ;;  %v616_v2 = vpop.permute.xlu1 %615  ;;  %v614_v7 = vpop.permute.xlu0 %613 }
  0xa9   : > { %608 = vst [vmem:[#allocation2 + $0x30] sm:$0xf0] %v602_v62  ;;  %610 = vst [vmem:[#allocation2 + $0x40] sm:$0xf0] %v604_v63  ;;  %v618_v8 = vsel %vm617_vm7, %v614_v7, %v616_v2 }
  0xaa   : > { %622 = vst [vmem:[#allocation2 + $0x50] sm:$0xf] %v618_v8 }
  0xac   : > { %v649_v9 = vpop.permute.xlu1 %648  ;;  %v612_v10 = vpop.permute.xlu0 %611 }
  0xad   : > { %v619_v11 = vsel %vm617_vm7, %v612_v10, %v614_v7  ;;  %v620_v12 = vsel %vm617_vm7, %v616_v2, %v612_v10 }
  0xae   : > { %621 = vst [vmem:[#allocation2 + $0x48] sm:$0xf] %v619_v11  ;;  %623 = vst [vmem:[#allocation2 + $0x58] sm:$0xf] %v620_v12 }
  0xb0   : > { %v647_v13 = vpop.permute.xlu1 %646  ;;  %v651_v14 = vpop.permute.xlu0 %650  ;;  %v665_v21 = vld [vmem:[#allocation2 + $0x30] sm:$0xff]  ;;  %v667_v23 = vld [vmem:[#allocation2 + $0x40] sm:$0xff] }
  0xb1   : > { %v654_v15 = vsel %vm652_vm8, %v647_v13, %v649_v9  ;;  %v653_v16 = vsel %vm652_vm8, %v649_v9, %v651_v14  ;;  %v655_v17 = vsel %vm652_vm8, %v651_v14, %v647_v13  ;;  %v669_v19 = vld [vmem:[#allocation2 + $0x50] sm:$0xff] }
  0xb2   : > { %656 = vst [vmem:[#allocation2 + $0x60] sm:$0xf] %v654_v15  ;;  %657 = vst [vmem:[#allocation2 + $0x68] sm:$0xf] %v653_v16  ;;  %v3030_v20 = vpack.c.bf16 %v669_v19, %v666_v18 }
  0xb3   : > { %658 = vst [vmem:[#allocation2 + $0x70] sm:$0xf] %v655_v17 }
  0xb4   : > { %3031 = vmatprep.subr.bf16.mxu0 %v3030_v20 }
  0xb5   : > { %v668_v22 = vld [vmem:[#allocation2 + $0x48] sm:$0xff]  ;;  %v670_v24 = vld [vmem:[#allocation2 + $0x58] sm:$0xff] }
  0xb6   : > { %v3032_v25 = vpack.c.bf16 %v668_v22, %v665_v21  ;;  %v3038_v26 = vpack.c.bf16 %v670_v24, %v667_v23 }
  0xb8   : > { %3033 = vmatpush1.bf16.msra.mxu0 %v3032_v25  ;;  %3039 = vmatpush3.bf16.msra.mxu1 %v3038_v26 }
  0xb9   : > { %v672_v27 = vld [vmem:[#allocation2 + $0x68] sm:$0xf]  ;;  %2930 = vmatprep.subr.mxu1 %v3213_v4  ;;  %v671_v30 = vld [vmem:[#allocation2 + $0x60] sm:$0xf] }
  0xba   : > { %v673_v28 = vld [vmem:[#allocation2 + $0x70] sm:$0xf]  ;;  %2844 = vmatprep.subr.msk.mxu0 %vm678_vm9, %v672_v27 }
  0xbc   : > { %2845 = vmatpush1.msk.msra.mxu0 %vm678_vm9, %v671_v30  ;;  %2931 = vmatpush3.msk.msra.mxu1 %vm678_vm9, %v673_v28 }
  0xbd   : > { %2933 = vmatmul.mubr.msk.f32.vlgmr.msra.gmra.mrb[0].mxu1 %vm674_vm10, %v510_v29  ;;  %2846 = vmatmul.mubr.msk.f32.vlgmr.msra.gmra.mrb[0].mxu0 %vm674_vm10, %v510_v29 }
  0xbe   : > { %3048 = vmatprep.subr.bf16.mxu1 %v3208_v3  ;;  %1075 = vmatprep.mubr.f32.mxu0 %v3213_v4 }
  0xbf   : > { %2945 = vmatprep.mubr.msk.f32.mxu1 %vm3214_vm0, %v3213_v4 }
 0x190   : > { %v825_v39 = vpop.f32.mrb[0].mxu1  ;;  %v754_v40 = vpop.f32.mrb[0].mxu0 }
 0x191   : > { %v3437_v41 = vmul.f32 %v3430_v36, %v825_v39  ;;  %v2934_v42 = vpop.f32.mrb[1].mxu1  ;;  %v3440_v5 = vmul.f32 %v3432_v37, %v754_v40  ;;  %v756_v43 = vpop.f32.mrb[1].mxu0 }
 0x192   : > { %v3443_v44 = vmul.f32 %v3434_v38, %v756_v43 }
 0x193   : > { %917 = vst [vmem:[#allocation2 + $0x40] sm:$0xf] %v3437_v41  ;;  %898 = vrot.lane.b32.xlu1 %v3437_v41, %s3204_s14  ;;  %865 = vrot.lane.b32.xlu0 %v3437_v41, %s3205_s15  ;;  %915 = vst [vmem:[#allocation2 + $0x30] sm:$0xf] %v3440_v5 }
 0x194   : > { %916 = vst [vmem:[#allocation2 + $0x38] sm:$0xf] %v3443_v44 }
 0x197   : > { %886 = vrot.lane.b32.xlu1 %v3437_v41, %s3207_s17  ;;  %853 = vrot.lane.b32.xlu0 %v3437_v41, %s3206_s16 }
 0x19b   : > { %922 = vrot.lane.b32.xlu1 %v3437_v41, %s3209_s18  ;;  %861 = vrot.lane.b32.xlu0 %v3440_v5, %s3205_s15 }
 0x19f   : > { %955 = vrot.lane.b32.xlu1 %v3437_v41, %s3210_s19  ;;  %894 = vrot.lane.b32.xlu0 %v3440_v5, %s3204_s14 }
 0x1a3   : > { %951 = vrot.lane.b32.xlu1 %v3440_v5, %s3210_s19  ;;  %849 = vrot.lane.b32.xlu0 %v3440_v5, %s3206_s16 }
 0x1a7   : > { %882 = vrot.lane.b32.xlu0 %v3440_v5, %s3207_s17  ;;  %863 = vrot.lane.b32.xlu1 %v3443_v44, %s3205_s15 }
 0x1ab   : > { %918 = vrot.lane.b32.xlu0 %v3440_v5, %s3209_s18  ;;  %896 = vrot.lane.b32.xlu1 %v3443_v44, %s3204_s14 }
 0x1af   : > { %920 = vrot.lane.b32.xlu0 %v3443_v44, %s3209_s18  ;;  %851 = vrot.lane.b32.xlu1 %v3443_v44, %s3206_s16 }
 0x1b3   : > { %953 = vrot.lane.b32.xlu0 %v3443_v44, %s3210_s19  ;;  %884 = vrot.lane.b32.xlu1 %v3443_v44, %s3207_s17 }
 0x1b7   : > { %941 = vrot.lane.b32.xlu0 %v3443_v44, %s3211_s20  ;;  %943 = vrot.lane.b32.xlu1 %v3437_v41, %s3211_s20 }
 0x1bb   : > { %939 = vrot.lane.b32.xlu0 %v3440_v5, %s3211_s20  ;;  %974 = vrot.lane.b32.xlu1 %v3443_v44, %s3212_s21 }
 0x1bf   : > { %976 = vrot.lane.b32.xlu0 %v3437_v41, %s3212_s21  ;;  %972 = vrot.lane.b32.xlu1 %v3440_v5, %s3212_s21 }
 0x205   : > { %v899_v46 = vpop.permute.xlu1 %898  ;;  %v866_v47 = vpop.permute.xlu0 %865 }
 0x209   : > { %v887_v48 = vpop.permute.xlu1 %886  ;;  %v854_v49 = vpop.permute.xlu0 %853 }
 0x20d   : > { %v923_v50 = vpop.permute.xlu1 %922  ;;  %v862_v51 = vpop.permute.xlu0 %861 }
 0x20e   : > { %v869_v52 = vsel %vm535_vm2, %v866_v47, %v862_v51 }
 0x20f   : > { %v873_v53 = vrot.slane %v869_v52, 4 }
 0x211   : > { %879 = vst [vmem:[#allocation2] sm:$0xf0] %v873_v53  ;;  %v956_v54 = vpop.permute.xlu1 %955  ;;  %v895_v55 = vpop.permute.xlu0 %894 }
 0x212   : > { %v902_v56 = vsel %vm570_vm1, %v899_v46, %v895_v55 }
 0x213   : > { %v906_v57 = vrot.slane %v902_v56, 4 }
 0x215   : > { %912 = vst [vmem:[#allocation2 + $0x18] sm:$0xf0] %v906_v57  ;;  %v952_v58 = vpop.permute.xlu1 %951  ;;  %v850_v59 = vpop.permute.xlu0 %849 }
 0x216   : > { %v959_v60 = vsel %vm630_vm6, %v956_v54, %v952_v58  ;;  %v857_v61 = vsel %vm522_vm3, %v854_v49, %v850_v59 }
 0x217   : > { %v965_v62 = vrot.slane %v959_v60, 4  ;;  %858 = vst [vmem:[#allocation2] sm:$0xf] %v857_v61 }
 0x219   : > { %971 = vst [vmem:[#allocation2 + $0x58] sm:$0xf0] %v965_v62  ;;  %v883_v63 = vpop.permute.xlu0 %882  ;;  %v864_v2 = vpop.permute.xlu1 %863 }
 0x21a   : > { %v890_v7 = vsel %vm557_vm4, %v887_v48, %v883_v63  ;;  %v867_v8 = vsel %vm535_vm2, %v864_v2, %v866_v47  ;;  %v868_v9 = vsel %vm535_vm2, %v862_v51, %v864_v2 }
 0x21b   : > { %891 = vst [vmem:[#allocation2 + $0x18] sm:$0xf] %v890_v7  ;;  %v874_v10 = vrot.slane %v868_v9, 4  ;;  %v875_v11 = vrot.slane %v867_v8, 4 }
 0x21d   : > { %880 = vst [vmem:[#allocation2 + $0x8] sm:$0xf0] %v874_v10  ;;  %881 = vst [vmem:[#allocation2 + $0x10] sm:$0xf0] %v875_v11  ;;  %v919_v12 = vpop.permute.xlu0 %918  ;;  %v897_v13 = vpop.permute.xlu1 %896 }
 0x21e   : > { %v926_v14 = vsel %vm595_vm5, %v923_v50, %v919_v12  ;;  %v900_v15 = vsel %vm570_vm1, %v897_v13, %v899_v46  ;;  %v901_v16 = vsel %vm570_vm1, %v895_v55, %v897_v13  ;;  %v984_v56 = vld [vmem:[#allocation2] sm:$0xff] }
 0x21f   : > { %v932_v17 = vrot.slane %v926_v14, 4  ;;  %v907_v18 = vrot.slane %v901_v16, 4  ;;  %v908_v19 = vrot.slane %v900_v15, 4  ;;  %v848_v15 = vld [vmem:[%s4319_s5] sm:$0xf] }
 0x221   : > { %938 = vst [vmem:[#allocation2 + $0x40] sm:$0xf0] %v932_v17  ;;  %913 = vst [vmem:[#allocation2 + $0x20] sm:$0xf0] %v907_v18  ;;  %v921_v20 = vpop.permute.xlu0 %920  ;;  %v852_v21 = vpop.permute.xlu1 %851  ;;  %v3569_v18 = vld [vmem:[%s3496_s30 + $0x8] sm:$0xf]  ;;  %s485_s30 = scalar_lea.vmem %s4315_s1, %s3295_s27 }
 0x222   : > { %914 = vst [vmem:[#allocation2 + $0x28] sm:$0xf0] %v908_v19  ;;  %v924_v22 = vsel %vm595_vm5, %v921_v20, %v923_v50  ;;  %v925_v23 = vsel %vm595_vm5, %v919_v12, %v921_v20  ;;  %v855_v24 = vsel %vm522_vm3, %v852_v21, %v854_v49  ;;  %v856_v25 = vsel %vm522_vm3, %v850_v59, %v852_v21  ;;  %v987_v49 = vld [vmem:[#allocation2 + $0x18] sm:$0xff] }
 0x223   : > { %v930_v26 = vrot.slane %v925_v23, 4  ;;  %v931_v27 = vrot.slane %v924_v22, 4  ;;  %859 = vst [vmem:[#allocation2 + $0x8] sm:$0xf] %v856_v25  ;;  %860 = vst [vmem:[#allocation2 + $0x10] sm:$0xf] %v855_v24  ;;  %v3042_v57 = vpack.c.bf16 %v987_v49, %v984_v56  ;;  %v3573_v19 = vcombine.high %v3503_v45, %v3503_v45 }
 0x224   : > { %2177 = vst [vmem:[#allocation2 + $0xb8] sm:$0xf] %v3569_v18 }
 0x225   : > { %936 = vst [vmem:[#allocation2 + $0x30] sm:$0xf0] %v930_v26  ;;  %937 = vst [vmem:[#allocation2 + $0x38] sm:$0xf0] %v931_v27  ;;  %v954_v28 = vpop.permute.xlu0 %953  ;;  %v885_v29 = vpop.permute.xlu1 %884 }
 0x226   : > { %v957_v30 = vsel %vm630_vm6, %v954_v28, %v956_v54  ;;  %v958_v31 = vsel %vm630_vm6, %v952_v58, %v954_v28  ;;  %v888_v32 = vsel %vm557_vm4, %v885_v29, %v887_v48  ;;  %v889_v33 = vsel %vm557_vm4, %v883_v63, %v885_v29  ;;  %2176 = vst [vmem:[#allocation2 + $0xb0] sm:$0xf] %v3573_v19 }
 0x227   : > { %v963_v34 = vrot.slane %v958_v31, 4  ;;  %v964_v35 = vrot.slane %v957_v30, 4  ;;  %892 = vst [vmem:[#allocation2 + $0x20] sm:$0xf] %v889_v33  ;;  %893 = vst [vmem:[#allocation2 + $0x28] sm:$0xf] %v888_v32 }
 0x228   : > { %v992_v8 = vld [vmem:[#allocation2 + $0x40] sm:$0xff] }
 0x229   : > { %969 = vst [vmem:[#allocation2 + $0x48] sm:$0xf0] %v963_v34  ;;  %970 = vst [vmem:[#allocation2 + $0x50] sm:$0xf0] %v964_v35  ;;  %v942_v39 = vpop.permute.xlu0 %941  ;;  %v944_v40 = vpop.permute.xlu1 %943 }
 0x22a   : > { %v945_v42 = vsel %vm617_vm7, %v942_v39, %v944_v40  ;;  %v985_v47 = vld [vmem:[#allocation2 + $0x8] sm:$0xff]  ;;  %v986_v52 = vld [vmem:[#allocation2 + $0x10] sm:$0xff] }
 0x22b   : > { %949 = vst [vmem:[#allocation2 + $0x50] sm:$0xf] %v945_v42 }
 0x22c   : > { %v991_v63 = vld [vmem:[#allocation2 + $0x38] sm:$0xff]  ;;  %v990_v9 = vld [vmem:[#allocation2 + $0x30] sm:$0xff] }
 0x22d   : > { %v940_v43 = vpop.permute.xlu0 %939  ;;  %v975_v46 = vpop.permute.xlu1 %974 }
 0x22e   : > { %v946_v48 = vsel %vm617_vm7, %v940_v43, %v942_v39  ;;  %v947_v50 = vsel %vm617_vm7, %v944_v40, %v940_v43  ;;  %v988_v51 = vld [vmem:[#allocation2 + $0x20] sm:$0xff]  ;;  %v989_v53 = vld [vmem:[#allocation2 + $0x28] sm:$0xff] }
 0x22f   : > { %948 = vst [vmem:[#allocation2 + $0x48] sm:$0xf] %v946_v48  ;;  %950 = vst [vmem:[#allocation2 + $0x58] sm:$0xf] %v947_v50  ;;  %v3040_v54 = vpack.c.bf16 %v988_v51, %v985_v47  ;;  %v3049_v55 = vpack.c.bf16 %v989_v53, %v986_v52 }
 0x231   : > { %v977_v58 = vpop.permute.xlu0 %976  ;;  %3041 = vmatprep.subr.bf16.mxu0 %v3040_v54  ;;  %3050 = vmatpush3.bf16.msra.mxu1 %v3049_v55  ;;  %v973_v59 = vpop.permute.xlu1 %972 }
 0x232   : > { %v978_v60 = vsel %vm652_vm8, %v975_v46, %v977_v58  ;;  %v979_v61 = vsel %vm652_vm8, %v973_v59, %v975_v46  ;;  %v980_v62 = vsel %vm652_vm8, %v977_v58, %v973_v59  ;;  %3043 = vmatpush1.bf16.msra.mxu0 %v3042_v57  ;;  %v994_v2 = vld [vmem:[#allocation2 + $0x50] sm:$0xff]  ;;  %3051 = vmatprep.subr.bf16.mxu1 %v3208_v3 }
 0x233   : > { %982 = vst [vmem:[#allocation2 + $0x68] sm:$0xf] %v978_v60  ;;  %981 = vst [vmem:[#allocation2 + $0x60] sm:$0xf] %v979_v61  ;;  %v3044_v7 = vpack.c.bf16 %v994_v2, %v991_v63 }
 0x234   : > { %983 = vst [vmem:[#allocation2 + $0x70] sm:$0xf] %v980_v62 }
 0x235   : > { %3045 = vmatprep.subr.bf16.mxu0 %v3044_v7 }
 0x236   : > { %v993_v10 = vld [vmem:[#allocation2 + $0x48] sm:$0xff]  ;;  %v995_v11 = vld [vmem:[#allocation2 + $0x58] sm:$0xff] }
 0x237   : > { %v3046_v12 = vpack.c.bf16 %v993_v10, %v990_v9  ;;  %v3052_v13 = vpack.c.bf16 %v995_v11, %v992_v8 }
 0x239   : > { %3047 = vmatpush1.bf16.msra.mxu0 %v3046_v12  ;;  %3053 = vmatpush3.bf16.msra.mxu1 %v3052_v13 }
 0x23a   : > { %v997_v14 = vld [vmem:[#allocation2 + $0x68] sm:$0xf]  ;;  %2943 = vmatprep.subr.mxu1 %v3213_v4  ;;  %v996_v16 = vld [vmem:[#allocation2 + $0x60] sm:$0xf] }
 0x23b   : > { %2849 = vmatprep.subr.msk.mxu0 %vm678_vm9, %v997_v14  ;;  %v998_v17 = vld [vmem:[#allocation2 + $0x70] sm:$0xf] }
 0x23d   : > { %2850 = vmatpush1.msk.msra.mxu0 %vm678_vm9, %v996_v16  ;;  %2944 = vmatpush3.msk.msra.mxu1 %vm678_vm9, %v998_v17 }
 0x23e   : > { %2851 = vmatmul.mubr.msk.f32.vlgmr.msra.gmra.mrb[2].mxu0 %vm674_vm10, %v848_v15  ;;  %2946 = vmatmul.mubr.msk.f32.vlgmr.msra.gmra.mrb[2].mxu1 %vm674_vm10, %v848_v15 }
 0x23f   : > { %3062 = vmatprep.subr.bf16.mxu1 %v3208_v3  ;;  %1400 = vmatprep.mubr.f32.mxu0 %v3213_v4 }
 0x240   : > { %2958 = vmatprep.mubr.msk.f32.mxu1 %vm3214_vm0, %v3213_v4 }
 0x311   : > { %v1077_v20 = vpop.f32.mrb[2].mxu0  ;;  %v1148_v21 = vpop.f32.mrb[2].mxu1 }
 0x312   : > { %v1152_v22 = vmul.f32 %v1077_v20, %v3432_v37  ;;  %v1154_v23 = vmul.f32 %v1148_v21, %v3430_v36  ;;  %v1079_v24 = vpop.f32.mrb[3].mxu0  ;;  %v2947_v25 = vpop.f32.mrb[3].mxu1 }
 0x313   : > { %v1153_v26 = vmul.f32 %v1079_v24, %v3434_v38 }
 0x314   : > { %v1155_v27 = vadd.f32 %v1152_v22, %v3440_v5  ;;  %v1157_v28 = vadd.f32 %v1154_v23, %v3437_v41  ;;  %v3584_v31 = vmul.f32 0.00048828125, %v1152_v22  ;;  %v3590_v40 = vmul.f32 0.00048828125, %v1154_v23 }
 0x315   : > { %v1156_v29 = vadd.f32 %v1153_v26, %v3443_v44  ;;  %v3588_v34 = vmul.f32 0.00048828125, %v1153_v26 }
 0x316   : > { %v1161_v30 = vsub.f32 %v1155_v27, %v3503_v45  ;;  %v1163_v32 = vsub.f32 %v1157_v28, %v3569_v18 }
 0x317   : > { %v1162_v33 = vsub.f32 %v1156_v29, %v3573_v19 }
 0x318   : > { %v1164_v35 = vmul.f32 0.0009765625, %v1161_v30  ;;  %v1166_v39 = vmul.f32 0.0009765625, %v1163_v32 }
 0x319   : > { %v1165_v42 = vmul.f32 0.0009765625, %v1162_v33 }
 0x31a   : > { %v3593_v5 = vadd.f32 %v3584_v31, %v1164_v35  ;;  %v3596_v41 = vadd.f32 %v3590_v40, %v1166_v39 }
 0x31b   : > { %v3599_v44 = vadd.f32 %v3588_v34, %v1165_v42 }
 0x31c   : > { %1240 = vst [vmem:[#allocation2 + $0x30] sm:$0xf] %v3593_v5  ;;  %1242 = vst [vmem:[#allocation2 + $0x40] sm:$0xf] %v3596_v41  ;;  %1223 = vrot.lane.b32.xlu1 %v3596_v41, %s3204_s14  ;;  %1190 = vrot.lane.b32.xlu0 %v3596_v41, %s3205_s15 }
 0x31d   : > { %1241 = vst [vmem:[#allocation2 + $0x38] sm:$0xf] %v3599_v44 }
 0x320   : > { %1211 = vrot.lane.b32.xlu1 %v3596_v41, %s3207_s17  ;;  %1178 = vrot.lane.b32.xlu0 %v3596_v41, %s3206_s16 }
 0x324   : > { %1247 = vrot.lane.b32.xlu1 %v3596_v41, %s3209_s18  ;;  %1186 = vrot.lane.b32.xlu0 %v3593_v5, %s3205_s15 }
 0x328   : > { %1280 = vrot.lane.b32.xlu1 %v3596_v41, %s3210_s19  ;;  %1219 = vrot.lane.b32.xlu0 %v3593_v5, %s3204_s14 }
 0x32c   : > { %1276 = vrot.lane.b32.xlu1 %v3593_v5, %s3210_s19  ;;  %1174 = vrot.lane.b32.xlu0 %v3593_v5, %s3206_s16 }
 0x330   : > { %1207 = vrot.lane.b32.xlu0 %v3593_v5, %s3207_s17  ;;  %1188 = vrot.lane.b32.xlu1 %v3599_v44, %s3205_s15 }
 0x334   : > { %1243 = vrot.lane.b32.xlu0 %v3593_v5, %s3209_s18  ;;  %1221 = vrot.lane.b32.xlu1 %v3599_v44, %s3204_s14 }
 0x338   : > { %1245 = vrot.lane.b32.xlu0 %v3599_v44, %s3209_s18  ;;  %1176 = vrot.lane.b32.xlu1 %v3599_v44, %s3206_s16 }
 0x33c   : > { %1278 = vrot.lane.b32.xlu0 %v3599_v44, %s3210_s19  ;;  %1209 = vrot.lane.b32.xlu1 %v3599_v44, %s3207_s17 }
 0x340   : > { %1266 = vrot.lane.b32.xlu0 %v3599_v44, %s3211_s20  ;;  %1268 = vrot.lane.b32.xlu1 %v3596_v41, %s3211_s20 }
 0x344   : > { %1264 = vrot.lane.b32.xlu0 %v3593_v5, %s3211_s20  ;;  %1299 = vrot.lane.b32.xlu1 %v3599_v44, %s3212_s21 }
 0x348   : > { %1301 = vrot.lane.b32.xlu0 %v3596_v41, %s3212_s21  ;;  %1297 = vrot.lane.b32.xlu1 %v3593_v5, %s3212_s21 }
 0x38e   : > { %v1224_v43 = vpop.permute.xlu1 %1223  ;;  %v1191_v46 = vpop.permute.xlu0 %1190 }
 0x392   : > { %v1212_v47 = vpop.permute.xlu1 %1211  ;;  %v1179_v49 = vpop.permute.xlu0 %1178 }
 0x396   : > { %v1248_v48 = vpop.permute.xlu1 %1247  ;;  %v1187_v50 = vpop.permute.xlu0 %1186 }
 0x397   : > { %v1194_v51 = vsel %vm535_vm2, %v1191_v46, %v1187_v50 }
 0x398   : > { %v1198_v52 = vrot.slane %v1194_v51, 4 }
 0x39a   : > { %1204 = vst [vmem:[#allocation2] sm:$0xf0] %v1198_v52  ;;  %v1281_v53 = vpop.permute.xlu1 %1280  ;;  %v1220_v54 = vpop.permute.xlu0 %1219 }
 0x39b   : > { %v1227_v55 = vsel %vm570_vm1, %v1224_v43, %v1220_v54 }
 0x39c   : > { %v1231_v56 = vrot.slane %v1227_v55, 4 }
 0x39e   : > { %1237 = vst [vmem:[#allocation2 + $0x18] sm:$0xf0] %v1231_v56  ;;  %v1277_v57 = vpop.permute.xlu1 %1276  ;;  %v1175_v58 = vpop.permute.xlu0 %1174 }
 0x39f   : > { %v1284_v59 = vsel %vm630_vm6, %v1281_v53, %v1277_v57  ;;  %v1182_v60 = vsel %vm522_vm3, %v1179_v49, %v1175_v58 }
 0x3a0   : > { %v1290_v61 = vrot.slane %v1284_v59, 4  ;;  %1183 = vst [vmem:[#allocation2] sm:$0xf] %v1182_v60 }
 0x3a2   : > { %1296 = vst [vmem:[#allocation2 + $0x58] sm:$0xf0] %v1290_v61  ;;  %v1208_v62 = vpop.permute.xlu0 %1207  ;;  %v1189_v63 = vpop.permute.xlu1 %1188 }
 0x3a3   : > { %v1215_v2 = vsel %vm557_vm4, %v1212_v47, %v1208_v62  ;;  %v1192_v7 = vsel %vm535_vm2, %v1189_v63, %v1191_v46  ;;  %v1193_v8 = vsel %vm535_vm2, %v1187_v50, %v1189_v63 }
 0x3a4   : > { %1216 = vst [vmem:[#allocation2 + $0x18] sm:$0xf] %v1215_v2  ;;  %v1199_v9 = vrot.slane %v1193_v8, 4  ;;  %v1200_v10 = vrot.slane %v1192_v7, 4 }
 0x3a6   : > { %1205 = vst [vmem:[#allocation2 + $0x8] sm:$0xf0] %v1199_v9  ;;  %1206 = vst [vmem:[#allocation2 + $0x10] sm:$0xf0] %v1200_v10  ;;  %v1244_v11 = vpop.permute.xlu0 %1243  ;;  %v1222_v12 = vpop.permute.xlu1 %1221 }
 0x3a7   : > { %v1251_v13 = vsel %vm595_vm5, %v1248_v48, %v1244_v11  ;;  %v1225_v14 = vsel %vm570_vm1, %v1222_v12, %v1224_v43  ;;  %v1226_v15 = vsel %vm570_vm1, %v1220_v54, %v1222_v12  ;;  %v1309_v60 = vld [vmem:[#allocation2] sm:$0xff] }
 0x3a8   : > { %v1257_v16 = vrot.slane %v1251_v13, 4  ;;  %v1232_v17 = vrot.slane %v1226_v15, 4  ;;  %v1233_v20 = vrot.slane %v1225_v14, 4 }
 0x3aa   : > { %1263 = vst [vmem:[#allocation2 + $0x40] sm:$0xf0] %v1257_v16  ;;  %1238 = vst [vmem:[#allocation2 + $0x20] sm:$0xf0] %v1232_v17  ;;  %v1246_v21 = vpop.permute.xlu0 %1245  ;;  %v1177_v22 = vpop.permute.xlu1 %1176 }
 0x3ab   : > { %1239 = vst [vmem:[#allocation2 + $0x28] sm:$0xf0] %v1233_v20  ;;  %v1249_v23 = vsel %vm595_vm5, %v1246_v21, %v1248_v48  ;;  %v1250_v24 = vsel %vm595_vm5, %v1244_v11, %v1246_v21  ;;  %v1180_v25 = vsel %vm522_vm3, %v1177_v22, %v1179_v49  ;;  %v1181_v26 = vsel %vm522_vm3, %v1175_v58, %v1177_v22  ;;  %v1173_v21 = vld [vmem:[%s4320_s6] sm:$0xf] }
 0x3ac   : > { %v1255_v27 = vrot.slane %v1250_v24, 4  ;;  %v1256_v28 = vrot.slane %v1249_v23, 4  ;;  %1184 = vst [vmem:[#allocation2 + $0x8] sm:$0xf] %v1181_v26  ;;  %1185 = vst [vmem:[#allocation2 + $0x10] sm:$0xf] %v1180_v25 }
 0x3ae   : > { %1261 = vst [vmem:[#allocation2 + $0x30] sm:$0xf0] %v1255_v27  ;;  %1262 = vst [vmem:[#allocation2 + $0x38] sm:$0xf0] %v1256_v28  ;;  %v1279_v29 = vpop.permute.xlu0 %1278  ;;  %v1210_v30 = vpop.permute.xlu1 %1209 }
 0x3af   : > { %v1282_v32 = vsel %vm630_vm6, %v1279_v29, %v1281_v53  ;;  %v1283_v33 = vsel %vm630_vm6, %v1277_v57, %v1279_v29  ;;  %v1213_v35 = vsel %vm557_vm4, %v1210_v30, %v1212_v47  ;;  %v1214_v39 = vsel %vm557_vm4, %v1208_v62, %v1210_v30  ;;  %v1312_v53 = vld [vmem:[#allocation2 + $0x18] sm:$0xff] }
 0x3b0   : > { %v1288_v42 = vrot.slane %v1283_v33, 4  ;;  %v1289_v43 = vrot.slane %v1282_v32, 4  ;;  %1217 = vst [vmem:[#allocation2 + $0x20] sm:$0xf] %v1214_v39  ;;  %1218 = vst [vmem:[#allocation2 + $0x28] sm:$0xf] %v1213_v35  ;;  %v3056_v61 = vpack.c.bf16 %v1312_v53, %v1309_v60 }
 0x3b1   : > { %v1317_v12 = vld [vmem:[#allocation2 + $0x40] sm:$0xff] }
 0x3b2   : > { %1294 = vst [vmem:[#allocation2 + $0x48] sm:$0xf0] %v1288_v42  ;;  %1295 = vst [vmem:[#allocation2 + $0x50] sm:$0xf0] %v1289_v43  ;;  %v1267_v46 = vpop.permute.xlu0 %1266  ;;  %v1269_v49 = vpop.permute.xlu1 %1268 }
 0x3b3   : > { %v1270_v48 = vsel %vm617_vm7, %v1267_v46, %v1269_v49  ;;  %v1310_v52 = vld [vmem:[#allocation2 + $0x8] sm:$0xff]  ;;  %v1311_v56 = vld [vmem:[#allocation2 + $0x10] sm:$0xff] }
 0x3b4   : > { %1274 = vst [vmem:[#allocation2 + $0x50] sm:$0xf] %v1270_v48 }
 0x3b5   : > { %v1316_v9 = vld [vmem:[#allocation2 + $0x38] sm:$0xff]  ;;  %v1315_v13 = vld [vmem:[#allocation2 + $0x30] sm:$0xff] }
 0x3b6   : > { %v1265_v50 = vpop.permute.xlu0 %1264  ;;  %v1300_v51 = vpop.permute.xlu1 %1299 }
 0x3b7   : > { %v1271_v47 = vsel %vm617_vm7, %v1265_v50, %v1267_v46  ;;  %v1272_v54 = vsel %vm617_vm7, %v1269_v49, %v1265_v50  ;;  %v1313_v55 = vld [vmem:[#allocation2 + $0x20] sm:$0xff]  ;;  %v1314_v57 = vld [vmem:[#allocation2 + $0x28] sm:$0xff] }
 0x3b8   : > { %1273 = vst [vmem:[#allocation2 + $0x48] sm:$0xf] %v1271_v47  ;;  %1275 = vst [vmem:[#allocation2 + $0x58] sm:$0xf] %v1272_v54  ;;  %v3054_v58 = vpack.c.bf16 %v1313_v55, %v1310_v52  ;;  %v3063_v59 = vpack.c.bf16 %v1314_v57, %v1311_v56 }
 0x3ba   : > { %v1302_v62 = vpop.permute.xlu0 %1301  ;;  %3055 = vmatprep.subr.bf16.mxu0 %v3054_v58  ;;  %3064 = vmatpush3.bf16.msra.mxu1 %v3063_v59  ;;  %v1298_v63 = vpop.permute.xlu1 %1297 }
 0x3bb   : > { %v1303_v2 = vsel %vm652_vm8, %v1300_v51, %v1302_v62  ;;  %v1304_v7 = vsel %vm652_vm8, %v1298_v63, %v1300_v51  ;;  %v1305_v8 = vsel %vm652_vm8, %v1302_v62, %v1298_v63  ;;  %3057 = vmatpush1.bf16.msra.mxu0 %v3056_v61  ;;  %v1319_v10 = vld [vmem:[#allocation2 + $0x50] sm:$0xff]  ;;  %3065 = vmatprep.subr.bf16.mxu1 %v3208_v3 }
 0x3bc   : > { %1307 = vst [vmem:[#allocation2 + $0x68] sm:$0xf] %v1303_v2  ;;  %1306 = vst [vmem:[#allocation2 + $0x60] sm:$0xf] %v1304_v7  ;;  %v3058_v11 = vpack.c.bf16 %v1319_v10, %v1316_v9 }
 0x3bd   : > { %1308 = vst [vmem:[#allocation2 + $0x70] sm:$0xf] %v1305_v8 }
 0x3be   : > { %3059 = vmatprep.subr.bf16.mxu0 %v3058_v11 }
 0x3bf   : > { %v1318_v14 = vld [vmem:[#allocation2 + $0x48] sm:$0xff]  ;;  %v1320_v15 = vld [vmem:[#allocation2 + $0x58] sm:$0xff] }
 0x3c0   : > { %v3060_v16 = vpack.c.bf16 %v1318_v14, %v1315_v13  ;;  %v3066_v17 = vpack.c.bf16 %v1320_v15, %v1317_v12 }
 0x3c2   : > { %3061 = vmatpush1.bf16.msra.mxu0 %v3060_v16  ;;  %3067 = vmatpush3.bf16.msra.mxu1 %v3066_v17 }
 0x3c3   : > { %v1322_v20 = vld [vmem:[#allocation2 + $0x68] sm:$0xf]  ;;  %2956 = vmatprep.subr.mxu1 %v3213_v4  ;;  %v1321_v22 = vld [vmem:[#allocation2 + $0x60] sm:$0xf] }
 0x3c4   : > { %2854 = vmatprep.subr.msk.mxu0 %vm678_vm9, %v1322_v20  ;;  %v1323_v23 = vld [vmem:[#allocation2 + $0x70] sm:$0xf] }
 0x3c6   : > { %2855 = vmatpush1.msk.msra.mxu0 %vm678_vm9, %v1321_v22  ;;  %2957 = vmatpush3.msk.msra.mxu1 %vm678_vm9, %v1323_v23 }
 0x3c7   : > { %2856 = vmatmul.mubr.msk.f32.vlgmr.msra.gmra.mrb[4].mxu0 %vm674_vm10, %v1173_v21  ;;  %2959 = vmatmul.mubr.msk.f32.vlgmr.msra.gmra.mrb[4].mxu1 %vm674_vm10, %v1173_v21 }
 0x3c8   : > { %3076 = vmatprep.subr.bf16.mxu1 %v3208_v3  ;;  %1713 = vmatprep.mubr.f32.mxu0 %v3213_v4 }
 0x3c9   : > { %2971 = vmatprep.mubr.msk.f32.mxu1 %vm3214_vm0, %v3213_v4 }
 0x49a   : > { %v1402_v24 = vpop.f32.mrb[4].mxu0  ;;  %v1473_v25 = vpop.f32.mrb[4].mxu1 }
 0x49b   : > { %v1477_v26 = vmul.f32 %v1402_v24, %v3432_v37  ;;  %v1479_v27 = vmul.f32 %v1473_v25, %v3430_v36  ;;  %v1404_v28 = vpop.f32.mrb[5].mxu0  ;;  %v2960_v29 = vpop.f32.mrb[5].mxu1 }
 0x49c   : > { %v1478_v30 = vmul.f32 %v1404_v28, %v3434_v38 }
 0x49d   : > { %v1480_v32 = vadd.f32 %v1477_v26, %v3593_v5  ;;  %v1482_v33 = vadd.f32 %v1479_v27, %v3596_v41  ;;  %v3763_v5 = vld [vmem:[%s485_s30 + $0x8] sm:$0xf] }
 0x49e   : > { %v1481_v35 = vadd.f32 %v1478_v30, %v3599_v44  ;;  %v507_v41 = vld [vmem:[%s3753_s24 + $0x8] sm:$0xf] }
 0x49f   : > { %v1483_v39 = vsub.f32 %v1480_v32, %v3584_v31  ;;  %v1485_v42 = vsub.f32 %v1482_v33, %v3590_v40  ;;  %v3757_v31 = vld [vmem:[%s485_s30] sm:$0xff]  ;;  %v3767_v44 = vsub.f32 %v3763_v5, %v507_v41 }
 0x4a0   : > { %v1484_v43 = vsub.f32 %v1481_v35, %v3588_v34  ;;  %v506_v34 = vld [vmem:[%s3753_s24] sm:$0xff] }
 0x4a1   : > { %1553 = vst [vmem:[#allocation2 + $0x30] sm:$0xf] %v1483_v39  ;;  %1555 = vst [vmem:[#allocation2 + $0x40] sm:$0xf] %v1485_v42  ;;  %1536 = vrot.lane.b32.xlu1 %v1485_v42, %s3204_s14  ;;  %1503 = vrot.lane.b32.xlu0 %v1485_v42, %s3205_s15  ;;  %v3761_v40 = vsub.f32 %v3757_v31, %v506_v34 }
 0x4a2   : > { %1554 = vst [vmem:[#allocation2 + $0x38] sm:$0xf] %v1484_v43  ;;  %1899 = vst [vmem:[#allocation2 + $0xa0] sm:$0xf] %v3767_v44 }
 0x4a3   : > { %1897 = vst [vmem:[#allocation2 + $0x90] sm:$0xf] %v3761_v40  ;;  %v3772_v46 = vcombine.high %v3761_v40, %v3761_v40 }
 0x4a5   : > { %1524 = vrot.lane.b32.xlu1 %v1485_v42, %s3207_s17  ;;  %1491 = vrot.lane.b32.xlu0 %v1485_v42, %s3206_s16  ;;  %1898 = vst [vmem:[#allocation2 + $0x98] sm:$0xf] %v3772_v46 }
 0x4a9   : > { %1560 = vrot.lane.b32.xlu1 %v1485_v42, %s3209_s18  ;;  %1499 = vrot.lane.b32.xlu0 %v1483_v39, %s3205_s15 }
 0x4ad   : > { %1593 = vrot.lane.b32.xlu1 %v1485_v42, %s3210_s19  ;;  %1532 = vrot.lane.b32.xlu0 %v1483_v39, %s3204_s14 }
 0x4b1   : > { %1589 = vrot.lane.b32.xlu1 %v1483_v39, %s3210_s19  ;;  %1487 = vrot.lane.b32.xlu0 %v1483_v39, %s3206_s16 }
 0x4b5   : > { %1520 = vrot.lane.b32.xlu0 %v1483_v39, %s3207_s17  ;;  %1501 = vrot.lane.b32.xlu1 %v1484_v43, %s3205_s15 }
 0x4b9   : > { %1556 = vrot.lane.b32.xlu0 %v1483_v39, %s3209_s18  ;;  %1534 = vrot.lane.b32.xlu1 %v1484_v43, %s3204_s14 }
 0x4bd   : > { %1558 = vrot.lane.b32.xlu0 %v1484_v43, %s3209_s18  ;;  %1489 = vrot.lane.b32.xlu1 %v1484_v43, %s3206_s16 }
 0x4c1   : > { %1591 = vrot.lane.b32.xlu0 %v1484_v43, %s3210_s19  ;;  %1522 = vrot.lane.b32.xlu1 %v1484_v43, %s3207_s17 }
 0x4c5   : > { %1579 = vrot.lane.b32.xlu0 %v1484_v43, %s3211_s20  ;;  %1581 = vrot.lane.b32.xlu1 %v1485_v42, %s3211_s20 }
 0x4c9   : > { %1577 = vrot.lane.b32.xlu0 %v1483_v39, %s3211_s20  ;;  %1612 = vrot.lane.b32.xlu1 %v1484_v43, %s3212_s21 }
 0x4cd   : > { %1614 = vrot.lane.b32.xlu0 %v1485_v42, %s3212_s21  ;;  %1610 = vrot.lane.b32.xlu1 %v1483_v39, %s3212_s21 }
 0x4d1   : > { %1843 = vrot.lane.b32.xlu0 %v3761_v40, %s3205_s15  ;;  %1845 = vrot.lane.b32.xlu1 %v3772_v46, %s3205_s15 }
 0x4d5   : > { %1847 = vrot.lane.b32.xlu0 %v3767_v44, %s3205_s15  ;;  %1833 = vrot.lane.b32.xlu1 %v3772_v46, %s3206_s16 }
 0x4d9   : > { %1831 = vrot.lane.b32.xlu0 %v3761_v40, %s3206_s16  ;;  %2111 = vrot.lane.b32.xlu1 %v3573_v19, %s3206_s16 }
 0x4dd   : > { %2109 = vrot.lane.b32.xlu0 %v3503_v45, %s3206_s16  ;;  %2113 = vrot.lane.b32.xlu1 %v3569_v18, %s3206_s16 }
 0x4e1   : > { %1835 = vrot.lane.b32.xlu0 %v3767_v44, %s3206_s16  ;;  %2123 = vrot.lane.b32.xlu1 %v3573_v19, %s3205_s15 }
 0x4e5   : > { %2121 = vrot.lane.b32.xlu0 %v3503_v45, %s3205_s15  ;;  %2125 = vrot.lane.b32.xlu1 %v3569_v18, %s3205_s15 }
 0x4e9   : > { %1864 = vrot.lane.b32.xlu0 %v3761_v40, %s3207_s17  ;;  %1866 = vrot.lane.b32.xlu1 %v3772_v46, %s3207_s17 }
 0x4ed   : > { %1868 = vrot.lane.b32.xlu0 %v3767_v44, %s3207_s17  ;;  %1878 = vrot.lane.b32.xlu1 %v3772_v46, %s3204_s14 }
 0x4f1   : > { %1876 = vrot.lane.b32.xlu0 %v3761_v40, %s3204_s14  ;;  %2156 = vrot.lane.b32.xlu1 %v3573_v19, %s3204_s14 }
 0x4f5   : > { %2154 = vrot.lane.b32.xlu0 %v3503_v45, %s3204_s14  ;;  %2158 = vrot.lane.b32.xlu1 %v3569_v18, %s3204_s14 }
 0x4f9   : > { %1880 = vrot.lane.b32.xlu0 %v3767_v44, %s3204_s14  ;;  %2144 = vrot.lane.b32.xlu1 %v3573_v19, %s3207_s17 }
 0x4fd   : > { %2142 = vrot.lane.b32.xlu0 %v3503_v45, %s3207_s17  ;;  %2146 = vrot.lane.b32.xlu1 %v3569_v18, %s3207_s17 }
 0x501   : > { %1902 = vrot.lane.b32.xlu0 %v3772_v46, %s3209_s18  ;;  %1904 = vrot.lane.b32.xlu1 %v3767_v44, %s3209_s18 }
 0x505   : > { %1900 = vrot.lane.b32.xlu0 %v3761_v40, %s3209_s18  ;;  %2180 = vrot.lane.b32.xlu1 %v3573_v19, %s3209_s18 }
 0x509   : > { %2182 = vrot.lane.b32.xlu0 %v3569_v18, %s3209_s18  ;;  %1923 = vrot.lane.b32.xlu1 %v3772_v46, %s3211_s20 }
 0x50d   : > { %2178 = vrot.lane.b32.xlu0 %v3503_v45, %s3209_s18  ;;  %1921 = vrot.lane.b32.xlu1 %v3761_v40, %s3211_s20 }
 0x511   : > { %1925 = vrot.lane.b32.xlu0 %v3767_v44, %s3211_s20  ;;  %1935 = vrot.lane.b32.xlu1 %v3772_v46, %s3210_s19 }
 0x513   : > { %v1537_v49 = vpop.permute.xlu1 %1536  ;;  %v1504_v48 = vpop.permute.xlu0 %1503 }
 0x515   : > { %1937 = vrot.lane.b32.xlu0 %v3767_v44, %s3210_s19  ;;  %2213 = vrot.lane.b32.xlu1 %v3573_v19, %s3210_s19 }
 0x517   : > { %v3848_v50 = vpop.permute.xlu1 %1524  ;;  %v1492_v51 = vpop.permute.xlu0 %1491 }
 0x519   : > { %2215 = vrot.lane.b32.xlu0 %v3569_v18, %s3210_s19  ;;  %1933 = vrot.lane.b32.xlu1 %v3761_v40, %s3210_s19 }
 0x51b   : > { %v1561_v52 = vpop.permute.xlu1 %1560  ;;  %v1500_v53 = vpop.permute.xlu0 %1499 }
 0x51c   : > { %v1507_v47 = vsel %vm535_vm2, %v1504_v48, %v1500_v53 }
 0x51d   : > { %v1511_v54 = vrot.slane %v1507_v47, 4  ;;  %2211 = vrot.lane.b32.xlu0 %v3503_v45, %s3210_s19  ;;  %2201 = vrot.lane.b32.xlu1 %v3573_v19, %s3211_s20 }
 0x51f   : > { %1517 = vst [vmem:[#allocation2] sm:$0xf0] %v1511_v54  ;;  %v1594_v55 = vpop.permute.xlu1 %1593  ;;  %v1533_v56 = vpop.permute.xlu0 %1532 }
 0x520   : > { %v1540_v57 = vsel %vm570_vm1, %v1537_v49, %v1533_v56 }
 0x521   : > { %v1544_v58 = vrot.slane %v1540_v57, 4  ;;  %2203 = vrot.lane.b32.xlu0 %v3569_v18, %s3211_s20 }
 0x523   : > { %1550 = vst [vmem:[#allocation2 + $0x18] sm:$0xf0] %v1544_v58  ;;  %v1590_v59 = vpop.permute.xlu1 %1589  ;;  %v1488_v60 = vpop.permute.xlu0 %1487 }
 0x524   : > { %v1597_v61 = vsel %vm630_vm6, %v1594_v55, %v1590_v59  ;;  %v1495_v62 = vsel %vm522_vm3, %v1492_v51, %v1488_v60 }
 0x525   : > { %v1603_v63 = vrot.slane %v1597_v61, 4  ;;  %1496 = vst [vmem:[#allocation2] sm:$0xf] %v1495_v62  ;;  %2199 = vrot.lane.b32.xlu0 %v3503_v45, %s3211_s20 }
 0x527   : > { %1609 = vst [vmem:[#allocation2 + $0x58] sm:$0xf0] %v1603_v63  ;;  %v1521_v2 = vpop.permute.xlu0 %1520  ;;  %v1502_v7 = vpop.permute.xlu1 %1501 }
 0x528   : > { %v1528_v8 = vsel %vm557_vm4, %v3848_v50, %v1521_v2  ;;  %v1505_v9 = vsel %vm535_vm2, %v1502_v7, %v1504_v48  ;;  %v1506_v10 = vsel %vm535_vm2, %v1500_v53, %v1502_v7 }
 0x529   : > { %1529 = vst [vmem:[#allocation2 + $0x18] sm:$0xf] %v1528_v8  ;;  %v1512_v11 = vrot.slane %v1506_v10, 4  ;;  %v1513_v12 = vrot.slane %v1505_v9, 4 }
 0x52b   : > { %1518 = vst [vmem:[#allocation2 + $0x8] sm:$0xf0] %v1512_v11  ;;  %1519 = vst [vmem:[#allocation2 + $0x10] sm:$0xf0] %v1513_v12  ;;  %v1557_v13 = vpop.permute.xlu0 %1556  ;;  %v1535_v14 = vpop.permute.xlu1 %1534 }
 0x52c   : > { %v1564_v15 = vsel %vm595_vm5, %v1561_v52, %v1557_v13  ;;  %v1538_v16 = vsel %vm570_vm1, %v1535_v14, %v1537_v49  ;;  %v1539_v17 = vsel %vm570_vm1, %v1533_v56, %v1535_v14  ;;  %v1622_v61 = vld [vmem:[#allocation2] sm:$0xff] }
 0x52d   : > { %v1570_v20 = vrot.slane %v1564_v15, 4  ;;  %v1545_v21 = vrot.slane %v1539_v17, 4  ;;  %v1546_v22 = vrot.slane %v1538_v16, 4 }
 0x52f   : > { %1576 = vst [vmem:[#allocation2 + $0x40] sm:$0xf0] %v1570_v20  ;;  %1551 = vst [vmem:[#allocation2 + $0x20] sm:$0xf0] %v1545_v21  ;;  %v1559_v23 = vpop.permute.xlu0 %1558  ;;  %v1490_v24 = vpop.permute.xlu1 %1489 }
 0x530   : > { %1552 = vst [vmem:[#allocation2 + $0x28] sm:$0xf0] %v1546_v22  ;;  %v1562_v25 = vsel %vm595_vm5, %v1559_v23, %v1561_v52  ;;  %v1563_v26 = vsel %vm595_vm5, %v1557_v13, %v1559_v23  ;;  %v1493_v27 = vsel %vm522_vm3, %v1490_v24, %v1492_v51  ;;  %v1494_v28 = vsel %vm522_vm3, %v1488_v60, %v1490_v24  ;;  %v1625_v54 = vld [vmem:[#allocation2 + $0x18] sm:$0xff] }
 0x531   : > { %v1568_v29 = vrot.slane %v1563_v26, 4  ;;  %v1569_v30 = vrot.slane %v1562_v25, 4  ;;  %1497 = vst [vmem:[#allocation2 + $0x8] sm:$0xf] %v1494_v28  ;;  %1498 = vst [vmem:[#allocation2 + $0x10] sm:$0xf] %v1493_v27  ;;  %v3070_v62 = vpack.c.bf16 %v1625_v54, %v1622_v61 }
 0x533   : > { %1574 = vst [vmem:[#allocation2 + $0x30] sm:$0xf0] %v1568_v29  ;;  %1575 = vst [vmem:[#allocation2 + $0x38] sm:$0xf0] %v1569_v30  ;;  %v1592_v32 = vpop.permute.xlu0 %1591  ;;  %v1523_v33 = vpop.permute.xlu1 %1522  ;;  %v1486_v30 = vld [vmem:[%s4321_s7] sm:$0xf] }
 0x534   : > { %v1595_v35 = vsel %vm630_vm6, %v1592_v32, %v1594_v55  ;;  %v1596_v39 = vsel %vm630_vm6, %v1590_v59, %v1592_v32  ;;  %v1526_v42 = vsel %vm557_vm4, %v1523_v33, %v3848_v50  ;;  %v1527_v43 = vsel %vm557_vm4, %v1521_v2, %v1523_v33 }
 0x535   : > { %v1601_v34 = vrot.slane %v1596_v39, 4  ;;  %v1602_v41 = vrot.slane %v1595_v35, 4  ;;  %1530 = vst [vmem:[#allocation2 + $0x20] sm:$0xf] %v1527_v43  ;;  %1531 = vst [vmem:[#allocation2 + $0x28] sm:$0xf] %v1526_v42 }
 0x536   : > { %v1630_v13 = vld [vmem:[#allocation2 + $0x40] sm:$0xff] }
 0x537   : > { %1607 = vst [vmem:[#allocation2 + $0x48] sm:$0xf0] %v1601_v34  ;;  %1608 = vst [vmem:[#allocation2 + $0x50] sm:$0xf0] %v1602_v41  ;;  %v1580_v49 = vpop.permute.xlu0 %1579  ;;  %v1582_v48 = vpop.permute.xlu1 %1581 }
 0x538   : > { %v1583_v51 = vsel %vm617_vm7, %v1580_v49, %v1582_v48  ;;  %v1623_v47 = vld [vmem:[#allocation2 + $0x8] sm:$0xff]  ;;  %v1624_v57 = vld [vmem:[#allocation2 + $0x10] sm:$0xff] }
 0x539   : > { %1587 = vst [vmem:[#allocation2 + $0x50] sm:$0xf] %v1583_v51 }
 0x53a   : > { %v1629_v10 = vld [vmem:[#allocation2 + $0x38] sm:$0xff]  ;;  %v1628_v15 = vld [vmem:[#allocation2 + $0x30] sm:$0xff] }
 0x53b   : > { %v1578_v52 = vpop.permute.xlu0 %1577  ;;  %v1613_v53 = vpop.permute.xlu1 %1612 }
 0x53c   : > { %v1584_v50 = vsel %vm617_vm7, %v1578_v52, %v1580_v49  ;;  %v1585_v55 = vsel %vm617_vm7, %v1582_v48, %v1578_v52  ;;  %v1626_v56 = vld [vmem:[#allocation2 + $0x20] sm:$0xff]  ;;  %v1627_v58 = vld [vmem:[#allocation2 + $0x28] sm:$0xff] }
 0x53d   : > { %1586 = vst [vmem:[#allocation2 + $0x48] sm:$0xf] %v1584_v50  ;;  %1588 = vst [vmem:[#allocation2 + $0x58] sm:$0xf] %v1585_v55  ;;  %v3068_v59 = vpack.c.bf16 %v1626_v56, %v1623_v47  ;;  %v3077_v60 = vpack.c.bf16 %v1627_v58, %v1624_v57 }
 0x53f   : > { %v1615_v63 = vpop.permute.xlu0 %1614  ;;  %3069 = vmatprep.subr.bf16.mxu0 %v3068_v59  ;;  %3078 = vmatpush3.bf16.msra.mxu1 %v3077_v60  ;;  %v1611_v2 = vpop.permute.xlu1 %1610 }
 0x540   : > { %v1616_v7 = vsel %vm652_vm8, %v1613_v53, %v1615_v63  ;;  %v1617_v8 = vsel %vm652_vm8, %v1611_v2, %v1613_v53  ;;  %v1618_v9 = vsel %vm652_vm8, %v1615_v63, %v1611_v2  ;;  %3071 = vmatpush1.bf16.msra.mxu0 %v3070_v62  ;;  %v1632_v11 = vld [vmem:[#allocation2 + $0x50] sm:$0xff]  ;;  %3079 = vmatprep.subr.bf16.mxu1 %v3208_v3 }
 0x541   : > { %1620 = vst [vmem:[#allocation2 + $0x68] sm:$0xf] %v1616_v7  ;;  %1619 = vst [vmem:[#allocation2 + $0x60] sm:$0xf] %v1617_v8  ;;  %v3072_v12 = vpack.c.bf16 %v1632_v11, %v1629_v10 }
 0x542   : > { %1621 = vst [vmem:[#allocation2 + $0x70] sm:$0xf] %v1618_v9 }
 0x543   : > { %3073 = vmatprep.subr.bf16.mxu0 %v3072_v12  ;;  %v1844_v14 = vpop.permute.xlu0 %1843  ;;  %v1846_v20 = vpop.permute.xlu1 %1845 }
 0x544   : > { %v1631_v16 = vld [vmem:[#allocation2 + $0x48] sm:$0xff]  ;;  %v1633_v17 = vld [vmem:[#allocation2 + $0x58] sm:$0xff]  ;;  %v1850_v23 = vsel %vm535_vm2, %v1844_v14, %v1846_v20 }
 0x545   : > { %v3074_v21 = vpack.c.bf16 %v1631_v16, %v1628_v15  ;;  %v3080_v22 = vpack.c.bf16 %v1633_v17, %v1630_v13  ;;  %v1856_v24 = vrot.slane %v1850_v23, 4 }
 0x547   : > { %3075 = vmatpush1.bf16.msra.mxu0 %v3074_v21  ;;  %3081 = vmatpush3.bf16.msra.mxu1 %v3080_v22  ;;  %v1848_v25 = vpop.permute.xlu0 %1847  ;;  %1862 = vst [vmem:[#allocation2 + $0x20] sm:$0xf0] %v1856_v24  ;;  %v1834_v29 = vpop.permute.xlu1 %1833 }
 0x548   : > { %v1635_v26 = vld [vmem:[#allocation2 + $0x68] sm:$0xf]  ;;  %2969 = vmatprep.subr.mxu1 %v3213_v4  ;;  %v1851_v27 = vsel %vm535_vm2, %v1848_v25, %v1844_v14  ;;  %v1849_v28 = vsel %vm535_vm2, %v1846_v20, %v1848_v25  ;;  %v1634_v35 = vld [vmem:[#allocation2 + $0x60] sm:$0xf] }
 0x549   : > { %2859 = vmatprep.subr.msk.mxu0 %vm678_vm9, %v1635_v26  ;;  %v1855_v32 = vrot.slane %v1851_v27, 4  ;;  %v1857_v33 = vrot.slane %v1849_v28, 4  ;;  %v1636_v39 = vld [vmem:[#allocation2 + $0x70] sm:$0xf] }
 0x54b   : > { %2860 = vmatpush1.msk.msra.mxu0 %vm678_vm9, %v1634_v35  ;;  %2970 = vmatpush3.msk.msra.mxu1 %vm678_vm9, %v1636_v39  ;;  %1861 = vst [vmem:[#allocation2 + $0x18] sm:$0xf0] %v1855_v32  ;;  %1863 = vst [vmem:[#allocation2 + $0x28] sm:$0xf0] %v1857_v33  ;;  %v1832_v42 = vpop.permute.xlu0 %1831  ;;  %v2112_v34 = vpop.permute.xlu1 %2111 }
 0x54c   : > { %2861 = vmatmul.mubr.msk.f32.vlgmr.msra.gmra.mrb[6].mxu0 %vm674_vm10, %v1486_v30  ;;  %2972 = vmatmul.mubr.msk.f32.vlgmr.msra.gmra.mrb[6].mxu1 %vm674_vm10, %v1486_v30  ;;  %v1838_v43 = vsel %vm522_vm3, %v1832_v42, %v1834_v29 }
 0x54d   : > { %1841 = vst [vmem:[#allocation2 + $0x8] sm:$0xf] %v1838_v43  ;;  %3112 = vmatprep.subr.bf16.mxu1 %v3208_v3  ;;  %2370 = vmatprep.mubr.f32.mxu0 %v3213_v4 }
 0x54e   : > { %3002 = vmatprep.mubr.msk.f32.mxu1 %vm3214_vm0, %v3213_v4 }
 0x54f   : > { %v2110_v41 = vpop.permute.xlu0 %2109  ;;  %v2114_v48 = vpop.permute.xlu1 %2113 }
 0x550   : > { %v2116_v49 = vsel %vm522_vm3, %v2110_v41, %v2112_v34  ;;  %v2115_v51 = vsel %vm522_vm3, %v2112_v34, %v2114_v48  ;;  %v2117_v52 = vsel %vm522_vm3, %v2114_v48, %v2110_v41 }
 0x551   : > { %2119 = vst [vmem:[#allocation2 + $0x20] sm:$0xf] %v2116_v49  ;;  %2118 = vst [vmem:[#allocation2 + $0x18] sm:$0xf] %v2117_v52 }
 0x552   : > { %2120 = vst [vmem:[#allocation2 + $0x28] sm:$0xf] %v2115_v51 }
 0x553   : > { %v1836_v53 = vpop.permute.xlu0 %1835  ;;  %v2124_v50 = vpop.permute.xlu1 %2123 }
 0x554   : > { %v1837_v47 = vsel %vm522_vm3, %v1834_v29, %v1836_v53  ;;  %v1839_v54 = vsel %vm522_vm3, %v1836_v53, %v1832_v42 }
 0x555   : > { %1840 = vst [vmem:[#allocation2] sm:$0xf] %v1839_v54  ;;  %1842 = vst [vmem:[#allocation2 + $0x10] sm:$0xf] %v1837_v47 }
 0x557   : > { %v2122_v55 = vpop.permute.xlu0 %2121  ;;  %v2126_v57 = vpop.permute.xlu1 %2125 }
 0x558   : > { %v2128_v56 = vsel %vm535_vm2, %v2122_v55, %v2124_v50  ;;  %v2127_v59 = vsel %vm535_vm2, %v2124_v50, %v2126_v57  ;;  %v2129_v60 = vsel %vm535_vm2, %v2126_v57, %v2122_v55 }
 0x559   : > { %v2134_v58 = vrot.slane %v2128_v56, 4  ;;  %v2133_v61 = vrot.slane %v2129_v60, 4  ;;  %v2135_v62 = vrot.slane %v2127_v59, 4 }
 0x55b   : > { %2140 = vst [vmem:[#allocation2 + $0x38] sm:$0xf0] %v2134_v58  ;;  %v1865_v63 = vpop.permute.xlu0 %1864  ;;  %2139 = vst [vmem:[#allocation2 + $0x30] sm:$0xf0] %v2133_v61  ;;  %v1867_v2 = vpop.permute.xlu1 %1866 }
 0x55c   : > { %2141 = vst [vmem:[#allocation2 + $0x40] sm:$0xf0] %v2135_v62  ;;  %v1871_v7 = vsel %vm557_vm4, %v1865_v63, %v1867_v2 }
 0x55d   : > { %1874 = vst [vmem:[#allocation2 + $0x50] sm:$0xf] %v1871_v7 }
 0x55f   : > { %v1869_v8 = vpop.permute.xlu0 %1868  ;;  %v1879_v12 = vpop.permute.xlu1 %1878 }
 0x560   : > { %v1872_v9 = vsel %vm557_vm4, %v1869_v8, %v1865_v63  ;;  %v1870_v10 = vsel %vm557_vm4, %v1867_v2, %v1869_v8 }
 0x561   : > { %1873 = vst [vmem:[#allocation2 + $0x48] sm:$0xf] %v1872_v9  ;;  %1875 = vst [vmem:[#allocation2 + $0x58] sm:$0xf] %v1870_v10 }
 0x563   : > { %v1877_v11 = vpop.permute.xlu0 %1876  ;;  %v2157_v14 = vpop.permute.xlu1 %2156 }
 0x564   : > { %v1883_v30 = vsel %vm570_vm1, %v1877_v11, %v1879_v12 }
 0x565   : > { %v1889_v39 = vrot.slane %v1883_v30, 4 }
 0x567   : > { %v2155_v13 = vpop.permute.xlu0 %2154  ;;  %v2159_v16 = vpop.permute.xlu1 %2158  ;;  %1895 = vst [vmem:[#allocation2 + $0x68] sm:$0xf0] %v1889_v39 }
 0x568   : > { %v2161_v32 = vsel %vm570_vm1, %v2155_v13, %v2157_v14  ;;  %v2160_v41 = vsel %vm570_vm1, %v2157_v14, %v2159_v16  ;;  %v2162_v49 = vsel %vm570_vm1, %v2159_v16, %v2155_v13 }
 0x569   : > { %v2167_v42 = vrot.slane %v2161_v32, 4  ;;  %v2166_v52 = vrot.slane %v2162_v49, 4  ;;  %v2168_v53 = vrot.slane %v2160_v41, 4  ;;  %v1794_v41 = vsub.f32 %v3303_v1, %v3763_v5 }
 0x56b   : > { %v1881_v15 = vpop.permute.xlu0 %1880  ;;  %v2145_v20 = vpop.permute.xlu1 %2144  ;;  %2173 = vst [vmem:[#allocation2 + $0x80] sm:$0xf0] %v2167_v42  ;;  %2172 = vst [vmem:[#allocation2 + $0x78] sm:$0xf0] %v2166_v52 }
 0x56c   : > { %v1882_v33 = vsel %vm570_vm1, %v1879_v12, %v1881_v15  ;;  %v1884_v35 = vsel %vm570_vm1, %v1881_v15, %v1877_v11  ;;  %2174 = vst [vmem:[#allocation2 + $0x88] sm:$0xf0] %v2168_v53 }
 0x56d   : > { %v1888_v43 = vrot.slane %v1884_v35, 4  ;;  %v1890_v34 = vrot.slane %v1882_v33, 4 }
 0x56f   : > { %v2143_v17 = vpop.permute.xlu0 %2142  ;;  %v2147_v22 = vpop.permute.xlu1 %2146  ;;  %1894 = vst [vmem:[#allocation2 + $0x60] sm:$0xf0] %v1888_v43  ;;  %1896 = vst [vmem:[#allocation2 + $0x70] sm:$0xf0] %v1890_v34  ;;  %v1793_v34 = vsub.f32 %v3301_v0, %v3757_v31 }
 0x570   : > { %v2149_v48 = vsel %vm557_vm4, %v2143_v17, %v2145_v20  ;;  %v2148_v51 = vsel %vm557_vm4, %v2145_v20, %v2147_v22  ;;  %v2150_v47 = vsel %vm557_vm4, %v2147_v22, %v2143_v17 }
 0x571   : > { %2152 = vst [vmem:[#allocation2 + $0x68] sm:$0xf] %v2149_v48  ;;  %2153 = vst [vmem:[#allocation2 + $0x70] sm:$0xf] %v2148_v51  ;;  %v1795_v49 = vmul.f32 9.765625e-05, %v1793_v34 }
 0x572   : > { %2151 = vst [vmem:[#allocation2 + $0x60] sm:$0xf] %v2150_v47  ;;  %v1796_v48 = vmul.f32 9.765625e-05, %v1794_v41 }
 0x573   : > { %v1903_v21 = vpop.permute.xlu0 %1902  ;;  %v1905_v24 = vpop.permute.xlu1 %1904  ;;  %v1798_v53 = vcombine.high %v1795_v49, %v1795_v49 }
 0x574   : > { %v1906_v26 = vsel %vm595_vm5, %v1903_v21, %v1905_v24 }
 0x575   : > { %v1913_v28 = vrot.slane %v1906_v26, 4 }
 0x577   : > { %v1901_v23 = vpop.permute.xlu0 %1900  ;;  %1919 = vst [vmem:[#allocation2 + $0xb0] sm:$0xf0] %v1913_v28  ;;  %v2181_v55 = vpop.permute.xlu1 %2180 }
 0x578   : > { %v1908_v25 = vsel %vm595_vm5, %v1905_v24, %v1901_v23  ;;  %v1907_v29 = vsel %vm595_vm5, %v1901_v23, %v1903_v21 }
 0x579   : > { %v1914_v27 = vrot.slane %v1908_v25, 4  ;;  %v1912_v54 = vrot.slane %v1907_v29, 4 }
 0x57b   : > { %1920 = vst [vmem:[#allocation2 + $0xb8] sm:$0xf0] %v1914_v27  ;;  %1918 = vst [vmem:[#allocation2 + $0xa8] sm:$0xf0] %v1912_v54  ;;  %v2183_v50 = vpop.permute.xlu0 %2182  ;;  %v1924_v59 = vpop.permute.xlu1 %1923 }
 0x57c   : > { %v2184_v56 = vsel %vm595_vm5, %v2181_v55, %v2183_v50 }
 0x57d   : > { %v2191_v57 = vrot.slane %v2184_v56, 4 }
 0x57f   : > { %v2179_v58 = vpop.permute.xlu0 %2178  ;;  %2197 = vst [vmem:[#allocation2 + $0xc8] sm:$0xf0] %v2191_v57  ;;  %v1922_v7 = vpop.permute.xlu1 %1921 }
 0x580   : > { %v2186_v60 = vsel %vm595_vm5, %v2183_v50, %v2179_v58  ;;  %v2185_v61 = vsel %vm595_vm5, %v2179_v58, %v2181_v55  ;;  %v1928_v9 = vsel %vm617_vm7, %v1922_v7, %v1924_v59 }
 0x581   : > { %v2192_v62 = vrot.slane %v2186_v60, 4  ;;  %v2190_v63 = vrot.slane %v2185_v61, 4  ;;  %1930 = vst [vmem:[#allocation2 + $0xd8] sm:$0xf] %v1928_v9 }
 0x583   : > { %2198 = vst [vmem:[#allocation2 + $0xd0] sm:$0xf0] %v2192_v62  ;;  %2196 = vst [vmem:[#allocation2 + $0xc0] sm:$0xf0] %v2190_v63  ;;  %v1926_v2 = vpop.permute.xlu0 %1925  ;;  %v1936_v12 = vpop.permute.xlu1 %1935 }
 0x584   : > { %v1927_v8 = vsel %vm617_vm7, %v1924_v59, %v1926_v2  ;;  %v1929_v10 = vsel %vm617_vm7, %v1926_v2, %v1922_v7 }
 0x585   : > { %1931 = vst [vmem:[#allocation2 + $0xe0] sm:$0xf] %v1927_v8  ;;  %1932 = vst [vmem:[#allocation2 + $0xe8] sm:$0xf] %v1929_v10  ;;  %v1804_v8 = vmul.f32 0.9999, %v3303_v1 }
 0x587   : > { %v1938_v11 = vpop.permute.xlu0 %1937  ;;  %v2214_v16 = vpop.permute.xlu1 %2213 }
 0x588   : > { %v1939_v13 = vsel %vm630_vm6, %v1936_v12, %v1938_v11 }
 0x589   : > { %v1946_v14 = vrot.slane %v1939_v13, 4 }
 0x58b   : > { %v2216_v15 = vpop.permute.xlu0 %2215  ;;  %1952 = vst [vmem:[#allocation2 + $0xf8] sm:$0xf0] %v1946_v14  ;;  %v1934_v22 = vpop.permute.xlu1 %1933 }
 0x58c   : > { %v2217_v17 = vsel %vm630_vm6, %v2214_v16, %v2216_v15  ;;  %v1940_v25 = vsel %vm630_vm6, %v1934_v22, %v1936_v12  ;;  %v1941_v26 = vsel %vm630_vm6, %v1938_v11, %v1934_v22 }
 0x58d   : > { %v2224_v20 = vrot.slane %v2217_v17, 4  ;;  %v1945_v29 = vrot.slane %v1940_v25, 4  ;;  %v1947_v30 = vrot.slane %v1941_v26, 4 }
 0x58f   : > { %v2212_v21 = vpop.permute.xlu0 %2211  ;;  %2230 = vst [vmem:[#allocation2 + $0x110] sm:$0xf0] %v2224_v20  ;;  %1951 = vst [vmem:[#allocation2 + $0xf0] sm:$0xf0] %v1945_v29  ;;  %v2202_v33 = vpop.permute.xlu1 %2201 }
 0x590   : > { %v2219_v23 = vsel %vm630_vm6, %v2216_v15, %v2212_v21  ;;  %v2218_v24 = vsel %vm630_vm6, %v2212_v21, %v2214_v16  ;;  %1953 = vst [vmem:[#allocation2 + $0x100] sm:$0xf0] %v1947_v30  ;;  %v1803_v15 = vmul.f32 0.9999, %v3301_v0 }
 0x591   : > { %v2225_v27 = vrot.slane %v2219_v23, 4  ;;  %v2223_v28 = vrot.slane %v2218_v24, 4 }
 0x593   : > { %2231 = vst [vmem:[#allocation2 + $0x118] sm:$0xf0] %v2225_v27  ;;  %2229 = vst [vmem:[#allocation2 + $0x108] sm:$0xf0] %v2223_v28  ;;  %v2204_v32 = vpop.permute.xlu0 %2203 }
 0x594   : > { %v2205_v35 = vsel %vm617_vm7, %v2202_v33, %v2204_v32 }
 0x595   : > { %2209 = vst [vmem:[#allocation2 + $0xf8] sm:$0xf] %v2205_v35 }
 0x597   : > { %v2200_v39 = vpop.permute.xlu0 %2199 }
 0x598   : > { %v2207_v42 = vsel %vm617_vm7, %v2204_v32, %v2200_v39  ;;  %v2206_v43 = vsel %vm617_vm7, %v2200_v39, %v2202_v33 }
 0x599   : > { %2210 = vst [vmem:[#allocation2 + $0x100] sm:$0xf] %v2207_v42  ;;  %2208 = vst [vmem:[#allocation2 + $0xf0] sm:$0xf] %v2206_v43 }
 0x61f   : > { %v1715_v51 = vpop.f32.mrb[6].mxu0  ;;  %v1786_v52 = vpop.f32.mrb[6].mxu1 }
 0x620   : > { %v1790_v47 = vmul.f32 %v1715_v51, %v3432_v37  ;;  %v1792_v54 = vmul.f32 %v1786_v52, %v3430_v36  ;;  %v1717_v50 = vpop.f32.mrb[7].mxu0  ;;  %v2973_v55 = vpop.f32.mrb[7].mxu1 }
 0x621   : > { %v1791_v56 = vmul.f32 %v1717_v50, %v3434_v38 }
 0x622   : > { %v1800_v57 = vadd.f32 %v1795_v49, %v1790_v47  ;;  %v1802_v58 = vadd.f32 %v1796_v48, %v1792_v54 }
 0x623   : > { %v1801_v59 = vadd.f32 %v1798_v53, %v1791_v56 }
 0x624   : > { %v1808_v31 = vand.u32 2147483647, %v1800_v57  ;;  %v1810_v60 = vand.u32 2147483647, %v1802_v58  ;;  %v1805_v2 = vmul.f32 0.01, %v1800_v57 }
 0x625   : > { %v1809_v61 = vand.u32 2147483647, %v1801_v59  ;;  %v1807_v9 = vmul.f32 0.01, %v1802_v58  ;;  %v1806_v12 = vmul.f32 0.01, %v1801_v59 }
 0x626   : > { %v1811_v5 = vadd.f32 1e-08, %v1808_v31  ;;  %v1813_v62 = vadd.f32 1e-08, %v1810_v60 }
 0x627   : > { %v1812_v63 = vadd.f32 1e-08, %v1809_v61 }
 0x628   : > { %3188 = vrcp.f32 %v1811_v5 }
 0x629   : > { %3190 = vrcp.f32 %v1813_v62 }
 0x62a   : > { %3192 = vrcp.f32 %v1812_v63 }
 0x632   : > { %v3189_v7 = vpop.eup %3188 }
 0x633   : > { %v3191_v10 = vpop.eup %3190  ;;  %v1817_v11 = vmul.f32 %v3189_v7, %v1805_v2 }
 0x634   : > { %v3193_v13 = vpop.eup %3192  ;;  %v1819_v14 = vmul.f32 %v3191_v10, %v1807_v9 }
 0x635   : > { %v1818_v16 = vmul.f32 %v3193_v13, %v1806_v12  ;;  %v2250_v12 = vld [vmem:[#allocation2 + $0x28] sm:$0xff] }
 0x636   : > { %v1825_v17 = vsub.f32 %v1804_v8, %v1819_v14  ;;  %v2249_v8 = vld [vmem:[#allocation2 + $0x20] sm:$0xff] }
 0x637   : > { %v1822_v20 = vcombine.low %v1817_v11, %v1818_v16 }
 0x638   : > { %2007 = vrot.lane.b32.xlu0 %v1825_v17, %s3207_s17  ;;  %1974 = vrot.lane.b32.xlu1 %v1825_v17, %s3206_s16  ;;  %v2037_v21 = vcombine.low %v1825_v17, %v1825_v17 }
 0x639   : > { %v1824_v22 = vsub.f32 %v1803_v15, %v1822_v20 }
 0x63a   : > { %2042 = vst [vmem:[#allocation2 + $0xa0] sm:$0xf0] %v2037_v21 }
 0x63b   : > { %2041 = vst [vmem:[#allocation2 + $0x98] sm:$0xf0] %v1824_v22  ;;  %v2036_v1 = vcombine.low %v1824_v22, %v1824_v22  ;;  %v1968_v0 = vcombine.high %v1824_v22, %v1824_v22 }
 0x63c   : > { %2028 = vrot.lane.b32.xlu0 %v1825_v17, %s3204_s14  ;;  %1995 = vrot.lane.b32.xlu1 %v1825_v17, %s3205_s15 }
 0x63d   : > { %2040 = vst [vmem:[#allocation2 + $0x90] sm:$0xf0] %v2036_v1 }
 0x640   : > { %2059 = vrot.lane.b32.xlu0 %v1825_v17, %s3211_s20  ;;  %1958 = vrot.lane.b32.xlu1 %v3767_v44, %s3212_s21  ;;  %v3215_v44 = vmov 0  }
 0x641   : > { %3184 = vset.pattern.permute.xlu0 %v3215_v44 }
 0x644   : > { %2047 = vrot.lane.b32.xlu0 %v1825_v17, %s3209_s18  ;;  %2055 = vrot.lane.b32.xlu1 %v1824_v22, %s3211_s20 }
 0x648   : > { %2080 = vrot.lane.b32.xlu0 %v1825_v17, %s3210_s19  ;;  %2236 = vrot.lane.b32.xlu1 %v3569_v18, %s3212_s21  ;;  %v2287_v18 = vld [vmem:[%s4324_s10] sm:$0xff] }
 0x64c   : > { %2076 = vrot.lane.b32.xlu1 %v1824_v22, %s3210_s19  ;;  %1970 = vrot.lane.b32.xlu0 %v1824_v22, %s3206_s16 }
 0x650   : > { %2088 = vrot.lane.b32.xlu1 %v1824_v22, %s3212_s21  ;;  %2003 = vrot.lane.b32.xlu0 %v1824_v22, %s3207_s17 }
 0x654   : > { %1991 = vrot.lane.b32.xlu0 %v1824_v22, %s3205_s15  ;;  %1972 = vrot.lane.b32.xlu1 %v1968_v0, %s3206_s16 }
 0x658   : > { %2024 = vrot.lane.b32.xlu0 %v1824_v22, %s3204_s14  ;;  %2005 = vrot.lane.b32.xlu1 %v1968_v0, %s3207_s17 }
 0x65c   : > { %2092 = vrot.lane.b32.xlu0 %v1825_v17, %s3212_s21  ;;  %1993 = vrot.lane.b32.xlu1 %v1968_v0, %s3205_s15  ;;  %v2248_v17 = vld [vmem:[#allocation2 + $0x18] sm:$0xff] }
 0x660   : > { %1956 = vrot.lane.b32.xlu0 %v3772_v46, %s3212_s21  ;;  %2026 = vrot.lane.b32.xlu1 %v1968_v0, %s3204_s14 }
 0x664   : > { %2043 = vrot.lane.b32.xlu0 %v1824_v22, %s3209_s18  ;;  %2057 = vrot.lane.b32.xlu1 %v1968_v0, %s3211_s20 }
 0x668   : > { %2234 = vrot.lane.b32.xlu0 %v3573_v19, %s3212_s21  ;;  %2045 = vrot.lane.b32.xlu1 %v1968_v0, %s3209_s18 }
 0x66c   : > { %1954 = vrot.lane.b32.xlu0 %v3761_v40, %s3212_s21  ;;  %2078 = vrot.lane.b32.xlu1 %v1968_v0, %s3210_s19 }
 0x670   : > { %2090 = vrot.lane.b32.xlu1 %v1968_v0, %s3212_s21  ;;  %2290 = vperm.xlu0 %3184, %v2287_v18  }
 0x674   : > { %2232 = vrot.lane.b32.xlu1 %v3503_v45, %s3212_s21 }
 0x6aa   : > { %v2008_v19 = vpop.permute.xlu0 %2007  ;;  %v1975_v46 = vpop.permute.xlu1 %1974 }
 0x6ae   : > { %v4058_v23 = vpop.permute.xlu0 %2028  ;;  %v1996_v24 = vpop.permute.xlu1 %1995 }
 0x6b2   : > { %v4060_v40 = vpop.permute.xlu0 %2059  ;;  %v4062_v25 = vpop.permute.xlu1 %1958 }
 0x6b6   : > { %v4064_v26 = vpop.permute.xlu0 %2047  ;;  %v4066_v27 = vpop.permute.xlu1 %2055 }
 0x6b7   : > { %v2063_v45 = vsel %vm617_vm7, %v4060_v40, %v4066_v27 }
 0x6b8   : > { %v2069_v28 = vrot.slane %v2063_v45, 4 }
 0x6ba   : > { %2075 = vst [vmem:[#allocation2 + $0xe8] sm:$0xf0] %v2069_v28  ;;  %v4072_v29 = vpop.permute.xlu0 %2080  ;;  %v4074_v30 = vpop.permute.xlu1 %2236 }
 0x6be   : > { %v4076_v32 = vpop.permute.xlu1 %2076  ;;  %v1971_v33 = vpop.permute.xlu0 %1970 }
 0x6bf   : > { %v2084_v35 = vsel %vm630_vm6, %v4072_v29, %v4076_v32  ;;  %v1978_v39 = vsel %vm522_vm3, %v1975_v46, %v1971_v33 }
 0x6c0   : > { %2087 = vst [vmem:[#allocation2 + $0x118] sm:$0xf] %v2084_v35  ;;  %v1982_v42 = vrot.slane %v1978_v39, 4 }
 0x6c2   : > { %1988 = vst [vmem:[#allocation2] sm:$0xf0] %v1982_v42  ;;  %v4084_v43 = vpop.permute.xlu1 %2088  ;;  %v2004_v34 = vpop.permute.xlu0 %2003 }
 0x6c3   : > { %v2011_v41 = vsel %vm557_vm4, %v2008_v19, %v2004_v34 }
 0x6c4   : > { %v2015_v49 = vrot.slane %v2011_v41, 4 }
 0x6c6   : > { %2021 = vst [vmem:[#allocation2 + $0x48] sm:$0xf0] %v2015_v49  ;;  %v1992_v48 = vpop.permute.xlu0 %1991  ;;  %v1973_v51 = vpop.permute.xlu1 %1972 }
 0x6c7   : > { %v1999_v52 = vsel %vm535_vm2, %v1996_v24, %v1992_v48  ;;  %v1976_v53 = vsel %vm522_vm3, %v1973_v51, %v1975_v46  ;;  %v1977_v47 = vsel %vm522_vm3, %v1971_v33, %v1973_v51 }
 0x6c8   : > { %2000 = vst [vmem:[#allocation2 + $0x30] sm:$0xf] %v1999_v52  ;;  %v1983_v54 = vrot.slane %v1977_v47, 4  ;;  %v1984_v50 = vrot.slane %v1976_v53, 4  ;;  %v2258_v52 = vld [vmem:[#allocation2 + $0x68] sm:$0xff] }
 0x6c9   : > { %v2245_v9 = vld [vmem:[#allocation2] sm:$0xff] }
 0x6ca   : > { %1989 = vst [vmem:[#allocation2 + $0x8] sm:$0xf0] %v1983_v54  ;;  %1990 = vst [vmem:[#allocation2 + $0x10] sm:$0xf0] %v1984_v50  ;;  %v2025_v55 = vpop.permute.xlu0 %2024  ;;  %v2006_v56 = vpop.permute.xlu1 %2005  ;;  %v3084_v1 = vpack.c.bf16 %v2248_v17, %v2245_v9  ;;  %v2274_v17 = vld [vmem:[#allocation2 + $0xe8] sm:$0xff] }
 0x6cb   : > { %v2032_v57 = vsel %vm570_vm1, %v4058_v23, %v2025_v55  ;;  %v2009_v58 = vsel %vm557_vm4, %v2006_v56, %v2008_v19  ;;  %v2010_v59 = vsel %vm557_vm4, %v2004_v34, %v2006_v56 }
 0x6cc   : > { %2033 = vst [vmem:[#allocation2 + $0x78] sm:$0xf] %v2032_v57  ;;  %v2016_v31 = vrot.slane %v2010_v59, 4  ;;  %v2017_v60 = vrot.slane %v2009_v58, 4  ;;  %v2264_v57 = vld [vmem:[#allocation2 + $0x98] sm:$0xff] }
 0x6cd   : > { %v2254_v41 = vld [vmem:[#allocation2 + $0x48] sm:$0xff] }
 0x6ce   : > { %2022 = vst [vmem:[#allocation2 + $0x50] sm:$0xf0] %v2016_v31  ;;  %2023 = vst [vmem:[#allocation2 + $0x58] sm:$0xf0] %v2017_v60  ;;  %v4101_v61 = vpop.permute.xlu0 %2092  ;;  %v1994_v5 = vpop.permute.xlu1 %1993  ;;  %v2257_v31 = vld [vmem:[#allocation2 + $0x60] sm:$0xff] }
 0x6cf   : > { %v2096_v62 = vsel %vm652_vm8, %v4101_v61, %v4084_v43  ;;  %v1997_v63 = vsel %vm535_vm2, %v1994_v5, %v1996_v24  ;;  %v1998_v2 = vsel %vm535_vm2, %v1992_v48, %v1994_v5  ;;  %v2251_v19 = vld [vmem:[#allocation2 + $0x30] sm:$0xff]  ;;  %v2265_v5 = vld [vmem:[#allocation2 + $0xa0] sm:$0xff] }
 0x6d0   : > { %v2102_v7 = vrot.slane %v2096_v62, 4  ;;  %2001 = vst [vmem:[#allocation2 + $0x38] sm:$0xf] %v1998_v2  ;;  %2002 = vst [vmem:[#allocation2 + $0x40] sm:$0xf] %v1997_v63  ;;  %v3088_v49 = vpack.c.bf16 %v2254_v41, %v2251_v19  ;;  %v2267_v48 = vld [vmem:[#allocation2 + $0xb0] sm:$0xff] }
 0x6d1   : > { %v2246_v10 = vld [vmem:[#allocation2 + $0x8] sm:$0xff]  ;;  %v2247_v11 = vld [vmem:[#allocation2 + $0x10] sm:$0xff]  ;;  %v2268_v62 = vld [vmem:[#allocation2 + $0xb8] sm:$0xff]  ;;  %v3094_v2 = vpack.c.bf16 %v2267_v48, %v2264_v57 }
 0x6d2   : > { %2108 = vst [vmem:[#allocation2 + $0x130] sm:$0xf0] %v2102_v7  ;;  %v4111_v13 = vpop.permute.xlu0 %1956  ;;  %v2027_v14 = vpop.permute.xlu1 %2026  ;;  %v3082_v15 = vpack.c.bf16 %v2249_v8, %v2246_v10  ;;  %v3113_v16 = vpack.c.bf16 %v2250_v12, %v2247_v11  ;;  %v2263_v7 = vld [vmem:[#allocation2 + $0x90] sm:$0xff]  ;;  %v2266_v8 = vld [vmem:[#allocation2 + $0xa8] sm:$0xff] }
 0x6d3   : > { %v1960_v20 = vsel %vm652_vm8, %v4111_v13, %v4062_v25  ;;  %v2030_v21 = vsel %vm570_vm1, %v2027_v14, %v4058_v23  ;;  %v2031_v22 = vsel %vm570_vm1, %v2025_v55, %v2027_v14  ;;  %v2260_v53 = vld [vmem:[#allocation2 + $0x78] sm:$0xff] }
 0x6d4   : > { %1964 = vst [vmem:[#allocation2 + $0x128] sm:$0xf] %v1960_v20  ;;  %2034 = vst [vmem:[#allocation2 + $0x80] sm:$0xf] %v2031_v22  ;;  %3083 = vmatprep.subr.bf16.mxu0 %v3082_v15  ;;  %3114 = vmatpush3.bf16.msra.mxu1 %v3113_v16  ;;  %v3092_v60 = vpack.c.bf16 %v2260_v53, %v2257_v31  ;;  %v3096_v15 = vpack.c.bf16 %v2266_v8, %v2263_v7 }
 0x6d5   : > { %2035 = vst [vmem:[#allocation2 + $0x88] sm:$0xf] %v2030_v21  ;;  %3085 = vmatpush1.bf16.msra.mxu0 %v3084_v1  ;;  %3115 = vmatprep.subr.bf16.mxu1 %v3208_v3  ;;  %v2255_v44 = vld [vmem:[#allocation2 + $0x50] sm:$0xff]  ;;  %v2256_v33 = vld [vmem:[#allocation2 + $0x58] sm:$0xff] }
 0x6d6   : > { %v2044_v0 = vpop.permute.xlu0 %2043  ;;  %v2058_v18 = vpop.permute.xlu1 %2057 }
 0x6d7   : > { %v2051_v46 = vsel %vm595_vm5, %v4064_v26, %v2044_v0  ;;  %v2061_v23 = vsel %vm617_vm7, %v2058_v18, %v4060_v40  ;;  %v2062_v24 = vsel %vm617_vm7, %v4066_v27, %v2058_v18  ;;  %v2252_v45 = vld [vmem:[#allocation2 + $0x38] sm:$0xff]  ;;  %v2253_v28 = vld [vmem:[#allocation2 + $0x40] sm:$0xff]  ;;  %v2259_v27 = vld [vmem:[#allocation2 + $0x70] sm:$0xff] }
 0x6d8   : > { %2054 = vst [vmem:[#allocation2 + $0xd0] sm:$0xf] %v2051_v46  ;;  %v2067_v35 = vrot.slane %v2062_v24, 4  ;;  %v2068_v39 = vrot.slane %v2061_v23, 4  ;;  %v3086_v42 = vpack.c.bf16 %v2255_v44, %v2252_v45  ;;  %v3116_v34 = vpack.c.bf16 %v2256_v33, %v2253_v28  ;;  %v2280_v46 = vld [vmem:[#allocation2 + $0x118] sm:$0xff]  ;;  %v2275_v24 = vld [vmem:[#allocation2 + $0xf0] sm:$0xff] }
 0x6d9   : > { %v2276_v23 = vld [vmem:[#allocation2 + $0xf8] sm:$0xff]  ;;  %v2277_v33 = vld [vmem:[#allocation2 + $0x100] sm:$0xff] }
 0x6da   : > { %2073 = vst [vmem:[#allocation2 + $0xd8] sm:$0xf0] %v2067_v35  ;;  %2074 = vst [vmem:[#allocation2 + $0xe0] sm:$0xf0] %v2068_v39  ;;  %v4132_v51 = vpop.permute.xlu0 %2234  ;;  %3087 = vmatprep.subr.bf16.mxu0 %v3086_v42  ;;  %3117 = vmatpush3.bf16.msra.mxu1 %v3116_v34  ;;  %v2046_v40 = vpop.permute.xlu1 %2045  ;;  %v3128_v42 = vpack.c.bf16 %v2280_v46, %v2277_v33 }
 0x6db   : > { %v2238_v47 = vsel %vm652_vm8, %v4132_v51, %v4074_v30  ;;  %v2049_v54 = vsel %vm595_vm5, %v2046_v40, %v4064_v26  ;;  %v2050_v50 = vsel %vm595_vm5, %v2044_v0, %v2046_v40  ;;  %3089 = vmatpush1.bf16.msra.mxu0 %v3088_v49  ;;  %3118 = vmatprep.subr.bf16.mxu1 %v3208_v3  ;;  %v2261_v55 = vld [vmem:[#allocation2 + $0x80] sm:$0xff] }
 0x6dc   : > { %v2262_v56 = vld [vmem:[#allocation2 + $0x88] sm:$0xff]  ;;  %2242 = vst [vmem:[#allocation2 + $0x140] sm:$0xf] %v2238_v47  ;;  %2052 = vst [vmem:[#allocation2 + $0xc0] sm:$0xf] %v2050_v50  ;;  %v3090_v58 = vpack.c.bf16 %v2261_v55, %v2258_v52  ;;  %v2244_v47 = vld [vmem:[%s4322_s8] sm:$0xff] }
 0x6dd   : > { %2053 = vst [vmem:[#allocation2 + $0xc8] sm:$0xf] %v2049_v54  ;;  %v3119_v59 = vpack.c.bf16 %v2262_v56, %v2259_v27 }
 0x6de   : > { %v1955_v63 = vpop.permute.xlu0 %1954  ;;  %3091 = vmatprep.subr.bf16.mxu0 %v3090_v58  ;;  %v2079_v26 = vpop.permute.xlu1 %2078 }
 0x6df   : > { %3120 = vmatpush3.bf16.msra.mxu1 %v3119_v59  ;;  %v1961_v9 = vsel %vm652_vm8, %v1955_v63, %v4111_v13  ;;  %v1962_v10 = vsel %vm652_vm8, %v4062_v25, %v1955_v63  ;;  %v2082_v11 = vsel %vm630_vm6, %v2079_v26, %v4072_v29  ;;  %v2083_v12 = vsel %vm630_vm6, %v4076_v32, %v2079_v26  ;;  %v2271_v14 = vld [vmem:[#allocation2 + $0xd0] sm:$0xff] }
 0x6e0   : > { %3093 = vmatpush1.bf16.msra.mxu0 %v3092_v60  ;;  %1963 = vst [vmem:[#allocation2 + $0x120] sm:$0xf] %v1961_v9  ;;  %1965 = vst [vmem:[#allocation2 + $0x130] sm:$0xf] %v1962_v10  ;;  %3121 = vmatprep.subr.bf16.mxu1 %v3208_v3  ;;  %v3122_v13 = vpack.c.bf16 %v2268_v62, %v2265_v5  ;;  %v3125_v21 = vpack.c.bf16 %v2274_v17, %v2271_v14 }
 0x6e1   : > { %2085 = vst [vmem:[#allocation2 + $0x108] sm:$0xf] %v2083_v12  ;;  %2086 = vst [vmem:[#allocation2 + $0x110] sm:$0xf] %v2082_v11  ;;  %3095 = vmatprep.subr.bf16.mxu0 %v3094_v2  ;;  %v2273_v16 = vld [vmem:[#allocation2 + $0xe0] sm:$0xff]  ;;  %v2272_v1 = vld [vmem:[#allocation2 + $0xd8] sm:$0xff] }
 0x6e2   : > { %v2091_v25 = vpop.permute.xlu1 %2090 }
 0x6e3   : > { %3123 = vmatpush3.bf16.msra.mxu1 %v3122_v13  ;;  %v2094_v29 = vsel %vm652_vm8, %v2091_v25, %v4101_v61  ;;  %v2095_v32 = vsel %vm652_vm8, %v4084_v43, %v2091_v25  ;;  %v2269_v22 = vld [vmem:[#allocation2 + $0xc0] sm:$0xff] }
 0x6e4   : > { %3097 = vmatpush1.bf16.msra.mxu0 %v3096_v15  ;;  %3124 = vmatprep.subr.bf16.mxu1 %v3208_v3  ;;  %v2270_v20 = vld [vmem:[#allocation2 + $0xc8] sm:$0xff]  ;;  %v2100_v0 = vrot.slane %v2095_v32, 4  ;;  %v2101_v18 = vrot.slane %v2094_v29, 4  ;;  %v3100_v19 = vpack.c.bf16 %v2272_v1, %v2269_v22  ;;  %v2285_v49 = vld [vmem:[#allocation2 + $0x140] sm:$0xf] }
 0x6e5   : > { %v3098_v44 = vpack.c.bf16 %v2273_v16, %v2270_v20 }
 0x6e6   : > { %2106 = vst [vmem:[#allocation2 + $0x120] sm:$0xf0] %v2100_v0  ;;  %2107 = vst [vmem:[#allocation2 + $0x128] sm:$0xf0] %v2101_v18  ;;  %v2233_v61 = vpop.permute.xlu1 %2232 }
 0x6e7   : > { %3099 = vmatprep.subr.bf16.mxu0 %v3098_v44  ;;  %3126 = vmatpush3.bf16.msra.mxu1 %v3125_v21  ;;  %v2239_v43 = vsel %vm652_vm8, %v2233_v61, %v4132_v51  ;;  %v2240_v45 = vsel %vm652_vm8, %v4074_v30, %v2233_v61  ;;  %v2283_v48 = vld [vmem:[#allocation2 + $0x130] sm:$0xff] }
 0x6e8   : > { %3101 = vmatpush1.bf16.msra.mxu0 %v3100_v19  ;;  %3127 = vmatprep.subr.bf16.mxu1 %v3208_v3  ;;  %v2279_v28 = vld [vmem:[#allocation2 + $0x110] sm:$0xff]  ;;  %v2278_v35 = vld [vmem:[#allocation2 + $0x108] sm:$0xff]  ;;  %2241 = vst [vmem:[#allocation2 + $0x138] sm:$0xf] %v2239_v43  ;;  %2243 = vst [vmem:[#allocation2 + $0x148] sm:$0xf] %v2240_v45 }
 0x6e9   : > { %v3102_v39 = vpack.c.bf16 %v2279_v28, %v2276_v23  ;;  %v3104_v34 = vpack.c.bf16 %v2278_v35, %v2275_v24 }
 0x6eb   : > { %3103 = vmatprep.subr.bf16.mxu0 %v3102_v39  ;;  %3129 = vmatpush3.bf16.msra.mxu1 %v3128_v42 }
 0x6ec   : > { %3105 = vmatpush1.bf16.msra.mxu0 %v3104_v34  ;;  %3130 = vmatprep.subr.bf16.mxu1 %v3208_v3 }
 0x6ed   : > { %v2282_v41 = vld [vmem:[#allocation2 + $0x128] sm:$0xff]  ;;  %v2281_v51 = vld [vmem:[#allocation2 + $0x120] sm:$0xff] }
 0x6ee   : > { %v3106_v30 = vpack.c.bf16 %v2285_v49, %v2282_v41 }
 0x6ef   : > { %v2284_v40 = vld [vmem:[#allocation2 + $0x138] sm:$0xf]  ;;  %v2286_v52 = vld [vmem:[#allocation2 + $0x148] sm:$0xf]  ;;  %v2291_v54 = vpop.permute.xlu0 %2290 }
 0x6f0   : > { %3108 = vmatprep.subr.msk.bf16.mxu0 %vm3107_vm12, %v3106_v30  ;;  %v3109_v27 = vpack.c.bf16 %v2284_v40, %v2281_v51  ;;  %v3131_v53 = vpack.c.bf16 %v2286_v52, %v2283_v48 }
 0x6f2   : > { %3111 = vmatpush1.bf16.msk.msra.mxu0 %vm3107_vm12, %v3109_v27  ;;  %3133 = vmatpush3.bf16.msk.msra.mxu1 %vm3107_vm12, %v3131_v53 }
 0x6f3   : > { %3150 = vmatprep.subr.bf16.mxu1 %v3208_v3 }
 0x6f5   : > { %2866 = vmatmul.mubr.msk.f32.vlgmr.msra.gmra.mrb[8].mxu0 %vm2293_vm13, %v2244_v47  ;;  %3003 = vmatmul.mubr.msk.f32.vlgmr.msra.gmra.mrb[8].mxu1 %vm2293_vm13, %v2244_v47 }
 0x6f6   : > { %2654 = vmatprep.mubr.f32.mxu0 %v3213_v4  ;;  %3023 = vmatprep.mubr.msk.f32.mxu1 %vm3214_vm0, %v3213_v4 }
 0x7c8   : > { %v2372_v50 = vpop.f32.mrb[8].mxu0  ;;  %v2443_v55 = vpop.f32.mrb[8].mxu1 }
 0x7c9   : > { %v2373_v56 = vadd.f32 %v2372_v50, %v2291_v54  ;;  %v2444_v57 = vadd.f32 %v2443_v55, %v2291_v54  ;;  %v2374_v58 = vpop.f32.mrb[9].mxu0  ;;  %v3004_v59 = vpop.f32.mrb[9].mxu1 }
 0x7ca   : > { %v2375_v31 = vadd.f32 %v2374_v58, %v2291_v54 }
 0x7cb   : > { %v2447_v60 = vmax.f32 %v2373_v56, 0.0  ;;  %v2449_v5 = vmax.f32 %v2444_v57, 0.0 }
 0x7cc   : > { %v2448_v62 = vmax.f32 %v2375_v31, 0.0 }
 0x7cd   : > { %v4181_v63 = vmul.f32 %v2447_v60, %v3432_v37  ;;  %v4184_v26 = vmul.f32 %v2449_v5, %v3430_v36  ;;  %v2580_v36 = vld [vmem:[%s4325_s11] sm:$0xf] }
 0x7ce   : > { %v4187_v2 = vmul.f32 %v2448_v62, %v3434_v38 }
 0x7cf   : > { %2502 = vst [vmem:[#allocation2 + $0x60] sm:$0xff] %v4181_v63  ;;  %2504 = vst [vmem:[#allocation2 + $0x70] sm:$0xff] %v4184_v26  ;;  %2470 = vrot.lane.b32.xlu1 %v4184_v26, %s3205_s15  ;;  %2458 = vrot.lane.b32.xlu0 %v4184_v26, %s3206_s16 }
 0x7d0   : > { %2503 = vst [vmem:[#allocation2 + $0x68] sm:$0xff] %v4187_v2 }
 0x7d3   : > { %2494 = vrot.lane.b32.xlu1 %v4184_v26, %s3204_s14  ;;  %2482 = vrot.lane.b32.xlu0 %v4184_v26, %s3207_s17 }
 0x7d7   : > { %2509 = vrot.lane.b32.xlu1 %v4184_v26, %s3209_s18  ;;  %2521 = vrot.lane.b32.xlu0 %v4184_v26, %s3211_s20 }
 0x7db   : > { %2466 = vrot.lane.b32.xlu0 %v4181_v63, %s3205_s15  ;;  %2454 = vrot.lane.b32.xlu1 %v4181_v63, %s3206_s16 }
 0x7df   : > { %2478 = vrot.lane.b32.xlu0 %v4181_v63, %s3207_s17  ;;  %2456 = vrot.lane.b32.xlu1 %v4187_v2, %s3206_s16 }
 0x7e3   : > { %2490 = vrot.lane.b32.xlu0 %v4181_v63, %s3204_s14  ;;  %2468 = vrot.lane.b32.xlu1 %v4187_v2, %s3205_s15 }
 0x7e7   : > { %2505 = vrot.lane.b32.xlu0 %v4181_v63, %s3209_s18  ;;  %2480 = vrot.lane.b32.xlu1 %v4187_v2, %s3207_s17 }
 0x7eb   : > { %2507 = vrot.lane.b32.xlu0 %v4187_v2, %s3209_s18  ;;  %2492 = vrot.lane.b32.xlu1 %v4187_v2, %s3204_s14 }
 0x7ef   : > { %2533 = vrot.lane.b32.xlu0 %v4184_v26, %s3210_s19  ;;  %2517 = vrot.lane.b32.xlu1 %v4181_v63, %s3211_s20 }
 0x7f3   : > { %2529 = vrot.lane.b32.xlu0 %v4181_v63, %s3210_s19  ;;  %2519 = vrot.lane.b32.xlu1 %v4187_v2, %s3211_s20  ;;  %s500_s20 = scalar_lea.vmem %s4327_s13, %s3295_s27 }
 0x7f7   : > { %2545 = vrot.lane.b32.xlu0 %v4184_v26, %s3212_s21  ;;  %2531 = vrot.lane.b32.xlu1 %v4187_v2, %s3210_s19 }
 0x7fb   : > { %2583 = vperm.xlu0 %3184, %v2580_v36   ;;  %2543 = vrot.lane.b32.xlu1 %v4187_v2, %s3212_s21 }
 0x7ff   : > { %2541 = vrot.lane.b32.xlu1 %v4181_v63, %s3212_s21 }
 0x841   : > { %v2471_v37 = vpop.permute.xlu1 %2470  ;;  %v2459_v38 = vpop.permute.xlu0 %2458 }
 0x845   : > { %v2495_v7 = vpop.permute.xlu1 %2494  ;;  %v2483_v8 = vpop.permute.xlu0 %2482 }
 0x849   : > { %v2510_v9 = vpop.permute.xlu1 %2509  ;;  %v4243_v10 = vpop.permute.xlu0 %2521 }
 0x84d   : > { %v2467_v11 = vpop.permute.xlu0 %2466  ;;  %v2455_v12 = vpop.permute.xlu1 %2454 }
 0x84e   : > { %v2474_v13 = vsel %vm535_vm2, %v2471_v37, %v2467_v11  ;;  %v2462_v14 = vsel %vm522_vm3, %v2459_v38, %v2455_v12 }
 0x84f   : > { %2475 = vst [vmem:[#allocation2 + $0x18] sm:$0xff] %v2474_v13  ;;  %2463 = vst [vmem:[#allocation2] sm:$0xff] %v2462_v14  ;;  %v3136_v44 = vpack.c.bf16 %v2474_v13, %v2462_v14  ;;  %v3195_v13 = vld [vmem:[%s3753_s24 + $0x8] sm:$0xf] }
 0x851   : > { %v2479_v15 = vpop.permute.xlu0 %2478  ;;  %v2457_v25 = vpop.permute.xlu1 %2456 }
 0x852   : > { %v2486_v16 = vsel %vm557_vm4, %v2483_v8, %v2479_v15  ;;  %v2460_v17 = vsel %vm522_vm3, %v2457_v25, %v2459_v38  ;;  %v2461_v29 = vsel %vm522_vm3, %v2455_v12, %v2457_v25  ;;  %v3194_v38 = vld [vmem:[%s3753_s24] sm:$0xff] }
 0x853   : > { %2487 = vst [vmem:[#allocation2 + $0x30] sm:$0xff] %v2486_v16  ;;  %2464 = vst [vmem:[#allocation2 + $0x8] sm:$0xff] %v2461_v29 }
 0x854   : > { %2465 = vst [vmem:[#allocation2 + $0x10] sm:$0xff] %v2460_v17 }
 0x855   : > { %v2491_v32 = vpop.permute.xlu0 %2490  ;;  %v2469_v20 = vpop.permute.xlu1 %2468 }
 0x856   : > { %v2498_v21 = vsel %vm570_vm1, %v2495_v7, %v2491_v32  ;;  %v2472_v22 = vsel %vm535_vm2, %v2469_v20, %v2471_v37  ;;  %v2473_v1 = vsel %vm535_vm2, %v2467_v11, %v2469_v20 }
 0x857   : > { %2499 = vst [vmem:[#allocation2 + $0x48] sm:$0xff] %v2498_v21  ;;  %2476 = vst [vmem:[#allocation2 + $0x20] sm:$0xff] %v2473_v1  ;;  %v3134_v0 = vpack.c.bf16 %v2473_v1, %v2461_v29  ;;  %v3151_v18 = vpack.c.bf16 %v2472_v22, %v2460_v17  ;;  %v3140_v41 = vpack.c.bf16 %v2498_v21, %v2486_v16 }
 0x858   : > { %2477 = vst [vmem:[#allocation2 + $0x28] sm:$0xff] %v2472_v22 }
 0x859   : > { %v2506_v19 = vpop.permute.xlu0 %2505  ;;  %v2481_v46 = vpop.permute.xlu1 %2480  ;;  %3135 = vmatprep.subr.bf16.mxu0 %v3134_v0  ;;  %3152 = vmatpush3.bf16.msra.mxu1 %v3151_v18 }
 0x85a   : > { %v2513_v61 = vsel %vm595_vm5, %v2510_v9, %v2506_v19  ;;  %v2484_v23 = vsel %vm557_vm4, %v2481_v46, %v2483_v8  ;;  %v2485_v24 = vsel %vm557_vm4, %v2479_v15, %v2481_v46  ;;  %3137 = vmatpush1.bf16.msra.mxu0 %v3136_v44  ;;  %3153 = vmatprep.subr.bf16.mxu1 %v3208_v3 }
 0x85b   : > { %2516 = vst [vmem:[#allocation2 + $0x88] sm:$0xff] %v2513_v61  ;;  %2488 = vst [vmem:[#allocation2 + $0x38] sm:$0xff] %v2485_v24  ;;  %v3157_v40 = vpack.c.bf16 %v2513_v61, %v4184_v26 }
 0x85c   : > { %2489 = vst [vmem:[#allocation2 + $0x40] sm:$0xff] %v2484_v23 }
 0x85d   : > { %v2508_v43 = vpop.permute.xlu0 %2507  ;;  %v2493_v45 = vpop.permute.xlu1 %2492 }
 0x85e   : > { %v2511_v28 = vsel %vm595_vm5, %v2508_v43, %v2510_v9  ;;  %v2512_v33 = vsel %vm595_vm5, %v2506_v19, %v2508_v43  ;;  %v2496_v35 = vsel %vm570_vm1, %v2493_v45, %v2495_v7  ;;  %v2497_v39 = vsel %vm570_vm1, %v2491_v32, %v2493_v45 }
 0x85f   : > { %2514 = vst [vmem:[#allocation2 + $0x78] sm:$0xff] %v2512_v33  ;;  %2515 = vst [vmem:[#allocation2 + $0x80] sm:$0xff] %v2511_v28  ;;  %v3138_v42 = vpack.c.bf16 %v2497_v39, %v2485_v24  ;;  %v3154_v34 = vpack.c.bf16 %v2496_v35, %v2484_v23  ;;  %v3142_v48 = vpack.c.bf16 %v2511_v28, %v4187_v2 }
 0x860   : > { %2500 = vst [vmem:[#allocation2 + $0x50] sm:$0xff] %v2497_v39  ;;  %2501 = vst [vmem:[#allocation2 + $0x58] sm:$0xff] %v2496_v35  ;;  %v3144_v52 = vpack.c.bf16 %v2512_v33, %v4181_v63  ;;  %v2453_v63 = vld [vmem:[%s4323_s9] sm:$0xf]  ;;  %v2732_v7 = vcombine.high %v3194_v38, %v3194_v38 }
 0x861   : > { %v2534_v49 = vpop.permute.xlu0 %2533  ;;  %v2518_v30 = vpop.permute.xlu1 %2517  ;;  %3139 = vmatprep.subr.bf16.mxu0 %v3138_v42  ;;  %3155 = vmatpush3.bf16.msra.mxu1 %v3154_v34 }
 0x862   : > { %v2525_v51 = vsel %vm617_vm7, %v4243_v10, %v2518_v30  ;;  %3141 = vmatpush1.bf16.msra.mxu0 %v3140_v41  ;;  %3156 = vmatprep.subr.bf16.mxu1 %v3208_v3 }
 0x863   : > { %2528 = vst [vmem:[#allocation2 + $0xa0] sm:$0xff] %v2525_v51  ;;  %3143 = vmatprep.subr.bf16.mxu0 %v3142_v48 }
 0x865   : > { %v2530_v27 = vpop.permute.xlu0 %2529  ;;  %v2520_v53 = vpop.permute.xlu1 %2519  ;;  %3158 = vmatpush3.bf16.msra.mxu1 %v3157_v40 }
 0x866   : > { %v2537_v47 = vsel %vm630_vm6, %v2534_v49, %v2530_v27  ;;  %v2523_v54 = vsel %vm617_vm7, %v2520_v53, %v4243_v10  ;;  %v2524_v50 = vsel %vm617_vm7, %v2518_v30, %v2520_v53  ;;  %3145 = vmatpush1.bf16.msra.mxu0 %v3144_v52  ;;  %3159 = vmatprep.subr.bf16.mxu1 %v3208_v3 }
 0x867   : > { %2540 = vst [vmem:[#allocation2 + $0xb8] sm:$0xff] %v2537_v47  ;;  %2526 = vst [vmem:[#allocation2 + $0x90] sm:$0xff] %v2524_v50  ;;  %v3160_v55 = vpack.c.bf16 %v2537_v47, %v2525_v51 }
 0x868   : > { %2527 = vst [vmem:[#allocation2 + $0x98] sm:$0xff] %v2523_v54 }
 0x869   : > { %v2532_v56 = vpop.permute.xlu1 %2531  ;;  %3161 = vmatpush3.bf16.msra.mxu1 %v3160_v55  ;;  %v2546_v60 = vpop.permute.xlu0 %2545 }
 0x86a   : > { %v2535_v57 = vsel %vm630_vm6, %v2532_v56, %v2534_v49  ;;  %v2536_v58 = vsel %vm630_vm6, %v2530_v27, %v2532_v56  ;;  %3021 = vmatprep.subr.mxu1 %v3213_v4 }
 0x86b   : > { %2538 = vst [vmem:[#allocation2 + $0xa8] sm:$0xff] %v2536_v58  ;;  %2539 = vst [vmem:[#allocation2 + $0xb0] sm:$0xff] %v2535_v57  ;;  %v3146_v59 = vpack.c.bf16 %v2535_v57, %v2523_v54  ;;  %v3148_v31 = vpack.c.bf16 %v2536_v58, %v2524_v50 }
 0x86d   : > { %v2544_v3 = vpop.permute.xlu1 %2543  ;;  %3147 = vmatprep.subr.bf16.mxu0 %v3146_v59 }
 0x86e   : > { %v2547_v5 = vsel %vm652_vm8, %v2544_v3, %v2546_v60  ;;  %3149 = vmatpush1.bf16.msra.mxu0 %v3148_v31 }
 0x86f   : > { %2551 = vst [vmem:[#allocation2 + $0xc8] sm:$0xff] %v2547_v5  ;;  %2606 = vmatprep.subr.mxu0 %v2547_v5 }
 0x871   : > { %v2542_v62 = vpop.permute.xlu1 %2541 }
 0x872   : > { %v2548_v4 = vsel %vm652_vm8, %v2542_v62, %v2544_v3  ;;  %v2549_v26 = vsel %vm652_vm8, %v2546_v60, %v2542_v62 }
 0x873   : > { %2550 = vst [vmem:[#allocation2 + $0xc0] sm:$0xff] %v2548_v4  ;;  %2552 = vst [vmem:[#allocation2 + $0xd0] sm:$0xff] %v2549_v26  ;;  %2607 = vmatpush1.msra.mxu0 %v2548_v4  ;;  %3022 = vmatpush3.msra.mxu1 %v2549_v26 }
 0x874   : > { %2869 = vmatmul.mubr.msk.f32.vlgmr.msra.gmra.mrb[10].mxu0 %vm2586_vm14, %v2453_v63  ;;  %3024 = vmatmul.mubr.msk.f32.vlgmr.msra.gmra.mrb[10].mxu1 %vm2586_vm14, %v2453_v63 }
 0x87a   : > { %v2584_v2 = vpop.permute.xlu0 %2583 }
 0x947   : > { %v2656_v36 = vpop.f32.mrb[10].mxu0  ;;  %v2727_v37 = vpop.f32.mrb[10].mxu1 }
 0x948   : > { %v2657_v8 = vadd.f32 %v2656_v36, %v2584_v2  ;;  %v2728_v9 = vadd.f32 %v2727_v37, %v2584_v2  ;;  %v2658_v10 = vpop.f32.mrb[11].mxu0  ;;  %v3025_v11 = vpop.f32.mrb[11].mxu1 }
 0x949   : > { %v2659_v6 = vadd.f32 %v2658_v10, %v2584_v2 }
 0x94a   : > { %v2734_v12 = vadd.f32 %v3194_v38, %v2657_v8  ;;  %v2736_v14 = vadd.f32 %v3195_v13, %v2728_v9 }
 0x94b   : > { %v2735_v15 = vadd.f32 %v2732_v7, %v2659_v6 }
 0x94c   : > { %2742 = vst [vmem:[%s500_s20 + $0x8] sm:$0xf] %v2736_v14 }
 0x94d   : > { %v2739_v25 = vcombine.low %v2734_v12, %v2735_v15 }
 0x94f   : > { %2741 = vst [vmem:[%s500_s20] sm:$0xff] %v2739_v25 }
 0x950 PF: > { %s23_s25 = sadd.s32 1, %s3202_s25  }
 0x951   : > { %p20_p4 = scmp.ge.s32.totalorder %s23_s25, 4  }
 0x953   :  { %22 = sbr.rel (!%p20_p4) target bundleno = 1 (0x1), region = 111 }

</bundles_post_ra>
